<compile_context>
chip_gen: v6e
topology: v6e:2x2x1
jax: 0.10.0
libtpu: 0.0.40
codegen_flags: <defaults>
</compile_context>

<pallas_src>
import functools
import math

import jax
import jax.numpy as jnp
from jax.experimental import pallas as pl
from jax.experimental.pallas import tpu as pltpu


# ----------------------------------------------------------------------------
# Fused backbone kernel: for each (BN, P, D) block of rows it runs all encoder
# layers (MHA + residual + BN + FFN + residual + BN) followed by the linear head.
# ----------------------------------------------------------------------------
def _backbone_kernel(x_ref,
                     wqkv_ref, bqkv_ref, wo_ref,
                     w1_ref, b1_ref, w2_ref,
                     bn_ref,
                     hw_ref, hb_ref,
                     out_ref,
                     *, num_layers, num_heads, num_patches, compute_dtype):
    BN, P, D = x_ref.shape
    M = BN * P
    H = num_heads
    dh = D // H
    scale = 1.0 / math.sqrt(dh)

    def mm(a, b):
        # bf16 (or f32) MXU operands, f32 accumulation.
        return jnp.dot(a.astype(compute_dtype), b.astype(compute_dtype),
                       preferred_element_type=jnp.float32)

    # (BN, P, D) -> (BN*P, D): merge of leading dims only (layout friendly).
    x = x_ref[...].reshape(M, D)

    for l in range(num_layers):                     # small L -> static unroll
        wqkv_l = wqkv_ref[l]                        # (D, 3D)  compute_dtype
        bqkv_l = bqkv_ref[l]                        # (1, 3D)  f32
        wo_l = wo_ref[l]                            # (D, D)   compute_dtype
        w1_l = w1_ref[l]                            # (D, F)   compute_dtype
        b1_l = b1_ref[l]                            # (1, F)   f32
        w2_l = w2_ref[l]                            # (F, D)   compute_dtype
        bn_l = bn_ref[l]                            # (4, D): s1, sh1+bo*s1, s2, sh2+b2*s2

        # Fused QKV projection: one (M, D) x (D, 3D) MXU matmul.
        qkv = mm(x, wqkv_l) + bqkv_l                # (M, 3D) f32
        q = qkv[:, 0 * D:1 * D]
        k = qkv[:, 1 * D:2 * D]
        v = qkv[:, 2 * D:3 * D]

        # Per-head attention batched over the BN sequences (3-D einsums only).
        # TODO(synk): a fully head-batched (bh) layout would avoid the dh-wide
        # lane slices, but needs lane-splitting reshapes/4-D transposes with
        # shakier Mosaic lowering; H is small so the loop is statically unrolled.
        ohs = []
        for h in range(H):
            sl = slice(h * dh, (h + 1) * dh)
            qh = q[:, sl].reshape(BN, P, dh)
            kh = k[:, sl].reshape(BN, P, dh)
            vh = v[:, sl].reshape(BN, P, dh)
            s = jnp.einsum('bqd,bkd->bqk', qh, kh,
                           preferred_element_type=jnp.float32) * scale
            s = s - jnp.max(s, axis=-1, keepdims=True)
            pr = jnp.exp(s)
            pr = pr * pl.reciprocal(jnp.sum(pr, axis=-1, keepdims=True),
                                    approx=True)
            ohs.append(jnp.einsum('bqk,bkd->bqd', pr, vh,
                                  preferred_element_type=jnp.float32))

        # Single full-depth output projection: concat heads once, then one
        # (M, D) x (D, D) matmul instead of H depth-dh matmuls.
        attn = mm(jnp.concatenate(ohs, axis=-1).reshape(M, D), wo_l)

        # Residual + BatchNorm1d (eval mode; affine + attention-output bias
        # folded to scale/shift at pack time).
        x1 = (x + attn) * bn_l[0:1, :] + bn_l[1:2, :]

        # FFN: Linear -> GELU -> Linear (b2 folded into the BN2 shift).
        # TODO(synk): PyTorch nn.GELU default is exact erf-GELU; tanh approx is
        # used for guaranteed Mosaic lowering (~1e-3 numerics).
        h1 = mm(x1, w1_l) + b1_l
        h1 = jax.nn.gelu(h1, approximate=True)
        ff = mm(h1, w2_l)

        # Residual + BatchNorm1d.
        x = (x1 + ff) * bn_l[2:3, :] + bn_l[3:4, :]

    # Linear head on flatten(P*D), accumulated per patch (head weight stored as
    # (P, D, pred_pad) matching nn.Flatten(start_dim=-2) ordering).
    # TODO(synk): a single depth-P*D contraction needs an (M,D)->(BN,P*D) lane
    # reshape or a 2-contracting-dim dot_general whose Mosaic lowering is not
    # guaranteed; this loop runs once per block (not per layer) so cost is small.
    x3 = x.reshape(BN, P, D)
    acc = jnp.zeros((BN, hw_ref.shape[-1]), jnp.float32)
    for pi in range(num_patches):
        acc = acc + mm(x3[:, pi, :], hw_ref[pi])
    out_ref[...] = (acc + hb_ref[...]).astype(out_ref.dtype)


# ----------------------------------------------------------------------------
# Wrapper: blocks the N = B*C axis, keeps all weights resident (full-array
# BlockSpecs), pads the head output to a 128-lane-dense block.
# ----------------------------------------------------------------------------
def _round_up(x, m):
    return -(-x // m) * m


def _full_spec(a):
    nd = a.ndim
    return pl.BlockSpec(a.shape, lambda i, _nd=nd: (0,) * _nd)


def _vmem_limit_bytes():
    # Generation-aware scoped-VMEM limit: ~96 MiB on 128 MiB parts (v5e/v6e),
    # ~48 MiB on the 64 MiB v7x.
    try:
        cap = pltpu.get_tpu_info().vmem_capacity_bytes
    except Exception:
        cap = 64 * 1024 * 1024
    return int(max(32 * 1024 * 1024, min(0.75 * cap, 100 * 1024 * 1024)))


def patchtst_backbone(x, packed, *, num_heads,
                      block_rows=None, compute_dtype=jnp.bfloat16):
    B, C, P, D = x.shape
    N = B * C
    assert D % num_heads == 0
    L = packed['wqkv'].shape[0]
    pred_pad = packed['head_w'].shape[-1]
    pred_len = packed['pred_len']

    z = x.reshape(N, P, D)                          # x.view(B*C, P, D)

    # Block size on the N axis: target >=~2048 matmul rows per block
    # (M = bn_rows * P), multiple of 8 so the lane-dense output block stays
    # (8,128)-aligned.
    if block_rows is None:
        block_rows = max(8, _round_up(2048 // max(P, 1), 8))
    n_pad8 = _round_up(N, 8)
    bn_rows = min(block_rows, n_pad8)
    # Ensure >=2 "parallel" grid steps whenever N allows it so both v7x
    # TensorCores (megacore on other gens) get work.
    if n_pad8 // bn_rows < 2 and n_pad8 >= 16:
        bn_rows = max(8, _round_up(n_pad8 // 2, 8))
    n_pad = _round_up(N, bn_rows)
    if n_pad != N:
        z = jnp.pad(z, ((0, n_pad - N), (0, 0), (0, 0)))

    weight_keys = ('wqkv', 'bqkv', 'wo', 'w1', 'b1', 'w2', 'bn',
                   'head_w', 'head_b')
    weights = [packed[k] for k in weight_keys]

    kernel = functools.partial(
        _backbone_kernel, num_layers=L, num_heads=num_heads,
        num_patches=P, compute_dtype=compute_dtype)

    # TODO(synk): for very deep encoders on v7x (weights > ~20-30 MiB even in
    # bf16), stream per-layer weights via a trailing "arbitrary" grid axis
    # instead of keeping the full stack resident.
    out = pl.pallas_call(
        kernel,
        out_shape=jax.ShapeDtypeStruct((n_pad, pred_pad), jnp.float32),
        grid=(n_pad // bn_rows,),
        in_specs=[pl.BlockSpec((bn_rows, P, D), lambda i: (i, 0, 0))]
                 + [_full_spec(w) for w in weights],
        out_specs=pl.BlockSpec((bn_rows, pred_pad), lambda i: (i, 0)),
        compiler_params=pltpu.CompilerParams(
            dimension_semantics=("parallel",),
            vmem_limit_bytes=_vmem_limit_bytes()),
    )(z, *weights)

    return out[:N, :pred_len]                       # (B*C, pred_len)


# ----------------------------------------------------------------------------
# Parameter init (deterministic, synthetic) + packing into stacked arrays.
# Linear weights are stored (in_dim, out_dim) == PyTorch W.T; q/k/v weights map
# from nn.MultiheadAttention's packed in_proj rows [q;k;v] after transposition.
# ----------------------------------------------------------------------------
def init_params(key, num_enc_layers, d_model, d_ff, num_patches, pred_len):
    def w(k, shape, scale=0.02):
        return (scale * jax.random.normal(k, shape)).astype(jnp.float32)

    layers = []
    for _ in range(num_enc_layers):
        key, *ks = jax.random.split(key, 9)
        layers.append(dict(
            wq=w(ks[0], (d_model, d_model)), bq=jnp.zeros((d_model,), jnp.float32),
            wk=w(ks[1], (d_model, d_model)), bk=jnp.zeros((d_model,), jnp.float32),
            wv=w(ks[2], (d_model, d_model)), bv=jnp.zeros((d_model,), jnp.float32),
            wo=w(ks[3], (d_model, d_model)), bo=jnp.zeros((d_model,), jnp.float32),
            g1=jnp.ones((d_model,), jnp.float32), be1=jnp.zeros((d_model,), jnp.float32),
            rm1=w(ks[6], (d_model,), 0.1),
            rv1=1.0 + jnp.abs(w(ks[7], (d_model,), 0.1)),
            w1=w(ks[4], (d_model, d_ff)), bf1=jnp.zeros((d_ff,), jnp.float32),
            w2=w(ks[5], (d_ff, d_model)), bf2=jnp.zeros((d_model,), jnp.float32),
            g2=jnp.ones((d_model,), jnp.float32), be2=jnp.zeros((d_model,), jnp.float32),
            rm2=jnp.zeros((d_model,), jnp.float32), rv2=jnp.ones((d_model,), jnp.float32),
        ))
    key, kh = jax.random.split(key)
    head_w = w(kh, (num_patches * d_model, pred_len))
    head_b = jnp.zeros((pred_len,), jnp.float32)
    return dict(layers=layers, head_w=head_w, head_b=head_b)


def pack_params(params, num_patches, d_model, *, compute_dtype=jnp.bfloat16,
                eps=1e-5):
    Ls = params['layers']

    wqkv = jnp.stack([jnp.concatenate([l['wq'], l['wk'], l['wv']], axis=1)
                      for l in Ls], axis=0).astype(compute_dtype)   # (L, D, 3D)
    bqkv = jnp.stack([jnp.concatenate([l['bq'], l['bk'], l['bv']])[None, :]
                      for l in Ls], axis=0)                         # (L, 1, 3D)
    wo = jnp.stack([l['wo'] for l in Ls], 0).astype(compute_dtype)  # (L, D, D)
    w1 = jnp.stack([l['w1'] for l in Ls], 0).astype(compute_dtype)  # (L, D, F)
    b1 = jnp.stack([l['bf1'][None, :] for l in Ls], axis=0)         # (L, 1, F)
    w2 = jnp.stack([l['w2'] for l in Ls], 0).astype(compute_dtype)  # (L, F, D)

    def fold(g, be, rm, rv):                                        # eval-mode BN
        s = g * jax.lax.rsqrt(rv + eps)
        return s, be - rm * s

    bn_rows = []
    for l in Ls:
        s1, sh1 = fold(l['g1'], l['be1'], l['rm1'], l['rv1'])
        s2, sh2 = fold(l['g2'], l['be2'], l['rm2'], l['rv2'])
        # Fold the attention output bias / second FFN bias into the BN shifts:
        # (y + b) * s + sh == y * s + (sh + b * s).
        sh1 = sh1 + l['bo'] * s1
        sh2 = sh2 + l['bf2'] * s2
        bn_rows.append(jnp.stack([s1, sh1, s2, sh2], axis=0))       # (4, D)
    bn = jnp.stack(bn_rows, axis=0)                                 # (L, 4, D)

    pred_len = params['head_w'].shape[-1]
    pred_pad = _round_up(pred_len, 128)                             # lane-dense out
    hw = params['head_w'].reshape(num_patches, d_model, pred_len)
    hw = jnp.pad(hw, ((0, 0), (0, 0), (0, pred_pad - pred_len)))
    hw = hw.astype(compute_dtype)                                   # (P, D, pad)
    hb = jnp.pad(params['head_b'], (0, pred_pad - pred_len))[None, :]

    return dict(wqkv=wqkv, bqkv=bqkv, wo=wo, w1=w1, b1=b1, w2=w2, bn=bn,
                head_w=hw, head_b=hb, pred_len=pred_len)


if __name__ == "__main__":
    # Small config consistent with the module's __init__ / forward.
    B, C, P, D = 2, 4, 8, 32          # batch, num_channels, num_patches, d_model
    d_ff, num_heads = 64, 4
    num_enc_layers, pred_len = 2, 16

    key = jax.random.PRNGKey(0)
    kx, kp = jax.random.split(key)
    x = jax.random.normal(kx, (B, C, P, D), dtype=jnp.float32)
    params = init_params(kp, num_enc_layers, D, d_ff, P, pred_len)

    # bf16 MXU operands (f32 accumulation / elementwise) per the v6e/v7x
    # feedback; pass jnp.float32 here to reproduce the f32 reference exactly.
    compute_dtype = jnp.bfloat16
    packed = pack_params(params, P, D, compute_dtype=compute_dtype)

    out = patchtst_backbone(x, packed, num_heads=num_heads,
                            compute_dtype=compute_dtype)
    out = jax.block_until_ready(out)
    assert out.shape == (B * C, pred_len), out.shape
    assert bool(jnp.all(jnp.isfinite(out)))
    print("KERNEL_OK")
</pallas_src>

<mosaic_0001>
module attributes {stable_mosaic.version = 11 : i64} {
  func.func @_backbone_kernel(%arg0: i32, %arg1: memref<8x8x32xf32, #tpu.memory_space<vmem>>, %arg2: memref<2x32x96xbf16, #tpu.memory_space<vmem>>, %arg3: memref<2x1x96xf32, #tpu.memory_space<vmem>>, %arg4: memref<2x32x32xbf16, #tpu.memory_space<vmem>>, %arg5: memref<2x32x64xbf16, #tpu.memory_space<vmem>>, %arg6: memref<2x1x64xf32, #tpu.memory_space<vmem>>, %arg7: memref<2x64x32xbf16, #tpu.memory_space<vmem>>, %arg8: memref<2x4x32xf32, #tpu.memory_space<vmem>>, %arg9: memref<8x32x128xbf16, #tpu.memory_space<vmem>>, %arg10: memref<1x128xf32, #tpu.memory_space<vmem>>, %arg11: memref<8x128xf32, #tpu.memory_space<vmem>>) attributes {dimension_semantics = [#tpu.dimension_semantics<parallel>], iteration_bounds = array<i64: 1>, scalar_prefetch = 0 : i64, scratch_operands = 0 : i64, tpu.core_type = #tpu.core_type<tc>, window_params = [{transform_indices = @transform_0, window_bounds = array<i64: 8, 8, 32>}, {pipeline_mode = #tpu.pipeline_mode<synchronous>, transform_indices = @transform_1, window_bounds = array<i64: 2, 32, 96>}, {pipeline_mode = #tpu.pipeline_mode<synchronous>, transform_indices = @transform_2, window_bounds = array<i64: 2, 1, 96>}, {pipeline_mode = #tpu.pipeline_mode<synchronous>, transform_indices = @transform_3, window_bounds = array<i64: 2, 32, 32>}, {pipeline_mode = #tpu.pipeline_mode<synchronous>, transform_indices = @transform_4, window_bounds = array<i64: 2, 32, 64>}, {pipeline_mode = #tpu.pipeline_mode<synchronous>, transform_indices = @transform_5, window_bounds = array<i64: 2, 1, 64>}, {pipeline_mode = #tpu.pipeline_mode<synchronous>, transform_indices = @transform_6, window_bounds = array<i64: 2, 64, 32>}, {pipeline_mode = #tpu.pipeline_mode<synchronous>, transform_indices = @transform_7, window_bounds = array<i64: 2, 4, 32>}, {pipeline_mode = #tpu.pipeline_mode<synchronous>, transform_indices = @transform_8, window_bounds = array<i64: 8, 32, 128>}, {pipeline_mode = #tpu.pipeline_mode<synchronous>, transform_indices = @transform_9, window_bounds = array<i64: 1, 128>}, {transform_indices = @transform_10, window_bounds = array<i64: 8, 128>}]} {
    %c0 = arith.constant 0 : index
    %c0_0 = arith.constant 0 : index
    %c0_1 = arith.constant 0 : index
    %0 = vector.load %arg1[%c0, %c0_0, %c0_1] : memref<8x8x32xf32, #tpu.memory_space<vmem>>, vector<8x8x32xf32>
    %1 = vector.shape_cast %0 : vector<8x8x32xf32> to vector<64x32xf32>
    %c0_2 = arith.constant 0 : index
    %c0_3 = arith.constant 0 : index
    %c0_4 = arith.constant 0 : index
    %2 = vector.load %arg2[%c0_2, %c0_3, %c0_4] : memref<2x32x96xbf16, #tpu.memory_space<vmem>>, vector<1x32x96xbf16>
    %3 = vector.shape_cast %2 : vector<1x32x96xbf16> to vector<32x96xbf16>
    %c0_5 = arith.constant 0 : index
    %c0_6 = arith.constant 0 : index
    %c0_7 = arith.constant 0 : index
    %4 = vector.load %arg3[%c0_5, %c0_6, %c0_7] : memref<2x1x96xf32, #tpu.memory_space<vmem>>, vector<1x1x96xf32>
    %5 = vector.shape_cast %4 : vector<1x1x96xf32> to vector<1x96xf32>
    %c0_8 = arith.constant 0 : index
    %c0_9 = arith.constant 0 : index
    %c0_10 = arith.constant 0 : index
    %6 = vector.load %arg4[%c0_8, %c0_9, %c0_10] : memref<2x32x32xbf16, #tpu.memory_space<vmem>>, vector<1x32x32xbf16>
    %7 = vector.shape_cast %6 : vector<1x32x32xbf16> to vector<32x32xbf16>
    %c0_11 = arith.constant 0 : index
    %c0_12 = arith.constant 0 : index
    %c0_13 = arith.constant 0 : index
    %8 = vector.load %arg5[%c0_11, %c0_12, %c0_13] : memref<2x32x64xbf16, #tpu.memory_space<vmem>>, vector<1x32x64xbf16>
    %9 = vector.shape_cast %8 : vector<1x32x64xbf16> to vector<32x64xbf16>
    %c0_14 = arith.constant 0 : index
    %c0_15 = arith.constant 0 : index
    %c0_16 = arith.constant 0 : index
    %10 = vector.load %arg6[%c0_14, %c0_15, %c0_16] : memref<2x1x64xf32, #tpu.memory_space<vmem>>, vector<1x1x64xf32>
    %11 = vector.shape_cast %10 : vector<1x1x64xf32> to vector<1x64xf32>
    %c0_17 = arith.constant 0 : index
    %c0_18 = arith.constant 0 : index
    %c0_19 = arith.constant 0 : index
    %12 = vector.load %arg7[%c0_17, %c0_18, %c0_19] : memref<2x64x32xbf16, #tpu.memory_space<vmem>>, vector<1x64x32xbf16>
    %13 = vector.shape_cast %12 : vector<1x64x32xbf16> to vector<64x32xbf16>
    %c0_20 = arith.constant 0 : index
    %c0_21 = arith.constant 0 : index
    %c0_22 = arith.constant 0 : index
    %14 = vector.load %arg8[%c0_20, %c0_21, %c0_22] : memref<2x4x32xf32, #tpu.memory_space<vmem>>, vector<1x4x32xf32>
    %15 = vector.shape_cast %14 : vector<1x4x32xf32> to vector<4x32xf32>
    %16 = arith.truncf %1 : vector<64x32xf32> to vector<64x32xbf16>
    %cst = arith.constant dense<0.000000e+00> : vector<64x96xf32>
    %17 = tpu.matmul %16, %3, %cst {dimension_numbers = #tpu.dot_dimension_numbers<[1], [0], [0], [1], [0, 0, 1, 1], [], []>} : vector<64x32xbf16>, vector<32x96xbf16>, vector<64x96xf32> -> vector<64x96xf32>
    %18 = vector.broadcast %5 : vector<1x96xf32> to vector<64x96xf32>
    %19 = arith.addf %17, %18 : vector<64x96xf32>
    %20 = vector.extract_strided_slice %19 {offsets = [0, 0], sizes = [64, 32], strides = [1, 1]} : vector<64x96xf32> to vector<64x32xf32>
    %21 = vector.extract_strided_slice %19 {offsets = [0, 32], sizes = [64, 32], strides = [1, 1]} : vector<64x96xf32> to vector<64x32xf32>
    %22 = vector.extract_strided_slice %19 {offsets = [0, 64], sizes = [64, 32], strides = [1, 1]} : vector<64x96xf32> to vector<64x32xf32>
    %23 = vector.extract_strided_slice %20 {offsets = [0, 0], sizes = [64, 8], strides = [1, 1]} : vector<64x32xf32> to vector<64x8xf32>
    %24 = vector.shape_cast %23 : vector<64x8xf32> to vector<8x8x8xf32>
    %25 = vector.extract_strided_slice %21 {offsets = [0, 0], sizes = [64, 8], strides = [1, 1]} : vector<64x32xf32> to vector<64x8xf32>
    %26 = vector.shape_cast %25 : vector<64x8xf32> to vector<8x8x8xf32>
    %27 = vector.extract_strided_slice %22 {offsets = [0, 0], sizes = [64, 8], strides = [1, 1]} : vector<64x32xf32> to vector<64x8xf32>
    %28 = vector.shape_cast %27 : vector<64x8xf32> to vector<8x8x8xf32>
    "tpu.trace_start"() <{level = 10 : i32, message = "bqd,bkd->bqk"}> : () -> ()
    %cst_23 = arith.constant dense<0.000000e+00> : vector<8x8x8xf32>
    %29 = tpu.matmul %24, %26, %cst_23 {dimension_numbers = #tpu.dot_dimension_numbers<[2], [2], [1], [1], [0, 0, 0, 1, 1, 1], [0], [0]>} : vector<8x8x8xf32>, vector<8x8x8xf32>, vector<8x8x8xf32> -> vector<8x8x8xf32>
    "tpu.trace_stop"() : () -> ()
    %cst_24 = arith.constant 0.353553385 : f32
    %30 = vector.broadcast %cst_24 : f32 to vector<8x8x8xf32>
    %31 = arith.mulf %29, %30 : vector<8x8x8xf32>
    %cst_25 = arith.constant dense<0xFF800000> : vector<8x8xf32>
    %32 = vector.multi_reduction <maximumf>, %31, %cst_25 [2] : vector<8x8x8xf32> to vector<8x8xf32>
    %33 = vector.shape_cast %32 : vector<8x8xf32> to vector<8x8x1xf32>
    %34 = vector.broadcast %33 : vector<8x8x1xf32> to vector<8x8x8xf32>
    %35 = arith.subf %31, %34 : vector<8x8x8xf32>
    %36 = math.exp %35 : vector<8x8x8xf32>
    %cst_26 = arith.constant dense<0.000000e+00> : vector<8x8xf32>
    %37 = vector.multi_reduction <add>, %36, %cst_26 [2] : vector<8x8x8xf32> to vector<8x8xf32>
    %38 = vector.shape_cast %37 : vector<8x8xf32> to vector<8x8x1xf32>
    %39 = tpu.reciprocal %38 {approx = true} : vector<8x8x1xf32> -> vector<8x8x1xf32>
    %40 = vector.broadcast %39 : vector<8x8x1xf32> to vector<8x8x8xf32>
    %41 = arith.mulf %36, %40 : vector<8x8x8xf32>
    "tpu.trace_start"() <{level = 10 : i32, message = "bqk,bkd->bqd"}> : () -> ()
    %cst_27 = arith.constant dense<0.000000e+00> : vector<8x8x8xf32>
    %42 = tpu.matmul %41, %28, %cst_27 {dimension_numbers = #tpu.dot_dimension_numbers<[2], [1], [1], [2], [0, 0, 0, 1, 1, 2], [0], [0]>} : vector<8x8x8xf32>, vector<8x8x8xf32>, vector<8x8x8xf32> -> vector<8x8x8xf32>
    "tpu.trace_stop"() : () -> ()
    %43 = vector.extract_strided_slice %20 {offsets = [0, 8], sizes = [64, 8], strides = [1, 1]} : vector<64x32xf32> to vector<64x8xf32>
    %44 = vector.shape_cast %43 : vector<64x8xf32> to vector<8x8x8xf32>
    %45 = vector.extract_strided_slice %21 {offsets = [0, 8], sizes = [64, 8], strides = [1, 1]} : vector<64x32xf32> to vector<64x8xf32>
    %46 = vector.shape_cast %45 : vector<64x8xf32> to vector<8x8x8xf32>
    %47 = vector.extract_strided_slice %22 {offsets = [0, 8], sizes = [64, 8], strides = [1, 1]} : vector<64x32xf32> to vector<64x8xf32>
    %48 = vector.shape_cast %47 : vector<64x8xf32> to vector<8x8x8xf32>
    "tpu.trace_start"() <{level = 10 : i32, message = "bqd,bkd->bqk"}> : () -> ()
    %cst_28 = arith.constant dense<0.000000e+00> : vector<8x8x8xf32>
    %49 = tpu.matmul %44, %46, %cst_28 {dimension_numbers = #tpu.dot_dimension_numbers<[2], [2], [1], [1], [0, 0, 0, 1, 1, 1], [0], [0]>} : vector<8x8x8xf32>, vector<8x8x8xf32>, vector<8x8x8xf32> -> vector<8x8x8xf32>
    "tpu.trace_stop"() : () -> ()
    %cst_29 = arith.constant 0.353553385 : f32
    %50 = vector.broadcast %cst_29 : f32 to vector<8x8x8xf32>
    %51 = arith.mulf %49, %50 : vector<8x8x8xf32>
    %cst_30 = arith.constant dense<0xFF800000> : vector<8x8xf32>
    %52 = vector.multi_reduction <maximumf>, %51, %cst_30 [2] : vector<8x8x8xf32> to vector<8x8xf32>
    %53 = vector.shape_cast %52 : vector<8x8xf32> to vector<8x8x1xf32>
    %54 = vector.broadcast %53 : vector<8x8x1xf32> to vector<8x8x8xf32>
    %55 = arith.subf %51, %54 : vector<8x8x8xf32>
    %56 = math.exp %55 : vector<8x8x8xf32>
    %cst_31 = arith.constant dense<0.000000e+00> : vector<8x8xf32>
    %57 = vector.multi_reduction <add>, %56, %cst_31 [2] : vector<8x8x8xf32> to vector<8x8xf32>
    %58 = vector.shape_cast %57 : vector<8x8xf32> to vector<8x8x1xf32>
    %59 = tpu.reciprocal %58 {approx = true} : vector<8x8x1xf32> -> vector<8x8x1xf32>
    %60 = vector.broadcast %59 : vector<8x8x1xf32> to vector<8x8x8xf32>
    %61 = arith.mulf %56, %60 : vector<8x8x8xf32>
    "tpu.trace_start"() <{level = 10 : i32, message = "bqk,bkd->bqd"}> : () -> ()
    %cst_32 = arith.constant dense<0.000000e+00> : vector<8x8x8xf32>
    %62 = tpu.matmul %61, %48, %cst_32 {dimension_numbers = #tpu.dot_dimension_numbers<[2], [1], [1], [2], [0, 0, 0, 1, 1, 2], [0], [0]>} : vector<8x8x8xf32>, vector<8x8x8xf32>, vector<8x8x8xf32> -> vector<8x8x8xf32>
    "tpu.trace_stop"() : () -> ()
    %63 = vector.extract_strided_slice %20 {offsets = [0, 16], sizes = [64, 8], strides = [1, 1]} : vector<64x32xf32> to vector<64x8xf32>
    %64 = vector.shape_cast %63 : vector<64x8xf32> to vector<8x8x8xf32>
    %65 = vector.extract_strided_slice %21 {offsets = [0, 16], sizes = [64, 8], strides = [1, 1]} : vector<64x32xf32> to vector<64x8xf32>
    %66 = vector.shape_cast %65 : vector<64x8xf32> to vector<8x8x8xf32>
    %67 = vector.extract_strided_slice %22 {offsets = [0, 16], sizes = [64, 8], strides = [1, 1]} : vector<64x32xf32> to vector<64x8xf32>
    %68 = vector.shape_cast %67 : vector<64x8xf32> to vector<8x8x8xf32>
    "tpu.trace_start"() <{level = 10 : i32, message = "bqd,bkd->bqk"}> : () -> ()
    %cst_33 = arith.constant dense<0.000000e+00> : vector<8x8x8xf32>
    %69 = tpu.matmul %64, %66, %cst_33 {dimension_numbers = #tpu.dot_dimension_numbers<[2], [2], [1], [1], [0, 0, 0, 1, 1, 1], [0], [0]>} : vector<8x8x8xf32>, vector<8x8x8xf32>, vector<8x8x8xf32> -> vector<8x8x8xf32>
    "tpu.trace_stop"() : () -> ()
    %cst_34 = arith.constant 0.353553385 : f32
    %70 = vector.broadcast %cst_34 : f32 to vector<8x8x8xf32>
    %71 = arith.mulf %69, %70 : vector<8x8x8xf32>
    %cst_35 = arith.constant dense<0xFF800000> : vector<8x8xf32>
    %72 = vector.multi_reduction <maximumf>, %71, %cst_35 [2] : vector<8x8x8xf32> to vector<8x8xf32>
    %73 = vector.shape_cast %72 : vector<8x8xf32> to vector<8x8x1xf32>
    %74 = vector.broadcast %73 : vector<8x8x1xf32> to vector<8x8x8xf32>
    %75 = arith.subf %71, %74 : vector<8x8x8xf32>
    %76 = math.exp %75 : vector<8x8x8xf32>
    %cst_36 = arith.constant dense<0.000000e+00> : vector<8x8xf32>
    %77 = vector.multi_reduction <add>, %76, %cst_36 [2] : vector<8x8x8xf32> to vector<8x8xf32>
    %78 = vector.shape_cast %77 : vector<8x8xf32> to vector<8x8x1xf32>
    %79 = tpu.reciprocal %78 {approx = true} : vector<8x8x1xf32> -> vector<8x8x1xf32>
    %80 = vector.broadcast %79 : vector<8x8x1xf32> to vector<8x8x8xf32>
    %81 = arith.mulf %76, %80 : vector<8x8x8xf32>
    "tpu.trace_start"() <{level = 10 : i32, message = "bqk,bkd->bqd"}> : () -> ()
    %cst_37 = arith.constant dense<0.000000e+00> : vector<8x8x8xf32>
    %82 = tpu.matmul %81, %68, %cst_37 {dimension_numbers = #tpu.dot_dimension_numbers<[2], [1], [1], [2], [0, 0, 0, 1, 1, 2], [0], [0]>} : vector<8x8x8xf32>, vector<8x8x8xf32>, vector<8x8x8xf32> -> vector<8x8x8xf32>
    "tpu.trace_stop"() : () -> ()
    %83 = vector.extract_strided_slice %20 {offsets = [0, 24], sizes = [64, 8], strides = [1, 1]} : vector<64x32xf32> to vector<64x8xf32>
    %84 = vector.shape_cast %83 : vector<64x8xf32> to vector<8x8x8xf32>
    %85 = vector.extract_strided_slice %21 {offsets = [0, 24], sizes = [64, 8], strides = [1, 1]} : vector<64x32xf32> to vector<64x8xf32>
    %86 = vector.shape_cast %85 : vector<64x8xf32> to vector<8x8x8xf32>
    %87 = vector.extract_strided_slice %22 {offsets = [0, 24], sizes = [64, 8], strides = [1, 1]} : vector<64x32xf32> to vector<64x8xf32>
    %88 = vector.shape_cast %87 : vector<64x8xf32> to vector<8x8x8xf32>
    "tpu.trace_start"() <{level = 10 : i32, message = "bqd,bkd->bqk"}> : () -> ()
    %cst_38 = arith.constant dense<0.000000e+00> : vector<8x8x8xf32>
    %89 = tpu.matmul %84, %86, %cst_38 {dimension_numbers = #tpu.dot_dimension_numbers<[2], [2], [1], [1], [0, 0, 0, 1, 1, 1], [0], [0]>} : vector<8x8x8xf32>, vector<8x8x8xf32>, vector<8x8x8xf32> -> vector<8x8x8xf32>
    "tpu.trace_stop"() : () -> ()
    %cst_39 = arith.constant 0.353553385 : f32
    %90 = vector.broadcast %cst_39 : f32 to vector<8x8x8xf32>
    %91 = arith.mulf %89, %90 : vector<8x8x8xf32>
    %cst_40 = arith.constant dense<0xFF800000> : vector<8x8xf32>
    %92 = vector.multi_reduction <maximumf>, %91, %cst_40 [2] : vector<8x8x8xf32> to vector<8x8xf32>
    %93 = vector.shape_cast %92 : vector<8x8xf32> to vector<8x8x1xf32>
    %94 = vector.broadcast %93 : vector<8x8x1xf32> to vector<8x8x8xf32>
    %95 = arith.subf %91, %94 : vector<8x8x8xf32>
    %96 = math.exp %95 : vector<8x8x8xf32>
    %cst_41 = arith.constant dense<0.000000e+00> : vector<8x8xf32>
    %97 = vector.multi_reduction <add>, %96, %cst_41 [2] : vector<8x8x8xf32> to vector<8x8xf32>
    %98 = vector.shape_cast %97 : vector<8x8xf32> to vector<8x8x1xf32>
    %99 = tpu.reciprocal %98 {approx = true} : vector<8x8x1xf32> -> vector<8x8x1xf32>
    %100 = vector.broadcast %99 : vector<8x8x1xf32> to vector<8x8x8xf32>
    %101 = arith.mulf %96, %100 : vector<8x8x8xf32>
    "tpu.trace_start"() <{level = 10 : i32, message = "bqk,bkd->bqd"}> : () -> ()
    %cst_42 = arith.constant dense<0.000000e+00> : vector<8x8x8xf32>
    %102 = tpu.matmul %101, %88, %cst_42 {dimension_numbers = #tpu.dot_dimension_numbers<[2], [1], [1], [2], [0, 0, 0, 1, 1, 2], [0], [0]>} : vector<8x8x8xf32>, vector<8x8x8xf32>, vector<8x8x8xf32> -> vector<8x8x8xf32>
    "tpu.trace_stop"() : () -> ()
    %103 = tpu.concatenate %42, %62, %82, %102 in 2 : vector<8x8x8xf32>, vector<8x8x8xf32>, vector<8x8x8xf32>, vector<8x8x8xf32> -> vector<8x8x32xf32>
    %104 = vector.shape_cast %103 : vector<8x8x32xf32> to vector<64x32xf32>
    %105 = arith.truncf %104 : vector<64x32xf32> to vector<64x32xbf16>
    %cst_43 = arith.constant dense<0.000000e+00> : vector<64x32xf32>
    %106 = tpu.matmul %105, %7, %cst_43 {dimension_numbers = #tpu.dot_dimension_numbers<[1], [0], [0], [1], [0, 0, 1, 1], [], []>} : vector<64x32xbf16>, vector<32x32xbf16>, vector<64x32xf32> -> vector<64x32xf32>
    %107 = arith.addf %1, %106 : vector<64x32xf32>
    %108 = vector.extract_strided_slice %15 {offsets = [0, 0], sizes = [1, 32], strides = [1, 1]} : vector<4x32xf32> to vector<1x32xf32>
    %109 = vector.broadcast %108 : vector<1x32xf32> to vector<64x32xf32>
    %110 = arith.mulf %107, %109 : vector<64x32xf32>
    %111 = vector.extract_strided_slice %15 {offsets = [1, 0], sizes = [1, 32], strides = [1, 1]} : vector<4x32xf32> to vector<1x32xf32>
    %112 = vector.broadcast %111 : vector<1x32xf32> to vector<64x32xf32>
    %113 = arith.addf %110, %112 : vector<64x32xf32>
    %114 = arith.truncf %113 : vector<64x32xf32> to vector<64x32xbf16>
    %cst_44 = arith.constant dense<0.000000e+00> : vector<64x64xf32>
    %115 = tpu.matmul %114, %9, %cst_44 {dimension_numbers = #tpu.dot_dimension_numbers<[1], [0], [0], [1], [0, 0, 1, 1], [], []>} : vector<64x32xbf16>, vector<32x64xbf16>, vector<64x64xf32> -> vector<64x64xf32>
    %116 = vector.broadcast %11 : vector<1x64xf32> to vector<64x64xf32>
    %117 = arith.addf %115, %116 : vector<64x64xf32>
    %118 = arith.mulf %117, %117 : vector<64x64xf32>
    %119 = arith.mulf %117, %118 : vector<64x64xf32>
    %cst_45 = arith.constant 4.471500e-02 : f32
    %120 = vector.broadcast %cst_45 : f32 to vector<64x64xf32>
    %121 = arith.mulf %120, %119 : vector<64x64xf32>
    %122 = arith.addf %117, %121 : vector<64x64xf32>
    %cst_46 = arith.constant 0.797884583 : f32
    %123 = vector.broadcast %cst_46 : f32 to vector<64x64xf32>
    %124 = arith.mulf %123, %122 : vector<64x64xf32>
    %125 = math.tanh %124 : vector<64x64xf32>
    %cst_47 = arith.constant 1.000000e+00 : f32
    %126 = vector.broadcast %cst_47 : f32 to vector<64x64xf32>
    %127 = arith.addf %126, %125 : vector<64x64xf32>
    %cst_48 = arith.constant 5.000000e-01 : f32
    %128 = vector.broadcast %cst_48 : f32 to vector<64x64xf32>
    %129 = arith.mulf %128, %127 : vector<64x64xf32>
    %130 = arith.mulf %117, %129 : vector<64x64xf32>
    %131 = arith.truncf %130 : vector<64x64xf32> to vector<64x64xbf16>
    %cst_49 = arith.constant dense<0.000000e+00> : vector<64x32xf32>
    %132 = tpu.matmul %131, %13, %cst_49 {dimension_numbers = #tpu.dot_dimension_numbers<[1], [0], [0], [1], [0, 0, 1, 1], [], []>} : vector<64x64xbf16>, vector<64x32xbf16>, vector<64x32xf32> -> vector<64x32xf32>
    %133 = arith.addf %113, %132 : vector<64x32xf32>
    %134 = vector.extract_strided_slice %15 {offsets = [2, 0], sizes = [1, 32], strides = [1, 1]} : vector<4x32xf32> to vector<1x32xf32>
    %135 = vector.broadcast %134 : vector<1x32xf32> to vector<64x32xf32>
    %136 = arith.mulf %133, %135 : vector<64x32xf32>
    %137 = vector.extract_strided_slice %15 {offsets = [3, 0], sizes = [1, 32], strides = [1, 1]} : vector<4x32xf32> to vector<1x32xf32>
    %138 = vector.broadcast %137 : vector<1x32xf32> to vector<64x32xf32>
    %139 = arith.addf %136, %138 : vector<64x32xf32>
    %c1 = arith.constant 1 : index
    %c0_50 = arith.constant 0 : index
    %c0_51 = arith.constant 0 : index
    %140 = vector.load %arg2[%c1, %c0_50, %c0_51] : memref<2x32x96xbf16, #tpu.memory_space<vmem>>, vector<1x32x96xbf16>
    %141 = vector.shape_cast %140 : vector<1x32x96xbf16> to vector<32x96xbf16>
    %c1_52 = arith.constant 1 : index
    %c0_53 = arith.constant 0 : index
    %c0_54 = arith.constant 0 : index
    %142 = vector.load %arg3[%c1_52, %c0_53, %c0_54] : memref<2x1x96xf32, #tpu.memory_space<vmem>>, vector<1x1x96xf32>
    %143 = vector.shape_cast %142 : vector<1x1x96xf32> to vector<1x96xf32>
    %c1_55 = arith.constant 1 : index
    %c0_56 = arith.constant 0 : index
    %c0_57 = arith.constant 0 : index
    %144 = vector.load %arg4[%c1_55, %c0_56, %c0_57] : memref<2x32x32xbf16, #tpu.memory_space<vmem>>, vector<1x32x32xbf16>
    %145 = vector.shape_cast %144 : vector<1x32x32xbf16> to vector<32x32xbf16>
    %c1_58 = arith.constant 1 : index
    %c0_59 = arith.constant 0 : index
    %c0_60 = arith.constant 0 : index
    %146 = vector.load %arg5[%c1_58, %c0_59, %c0_60] : memref<2x32x64xbf16, #tpu.memory_space<vmem>>, vector<1x32x64xbf16>
    %147 = vector.shape_cast %146 : vector<1x32x64xbf16> to vector<32x64xbf16>
    %c1_61 = arith.constant 1 : index
    %c0_62 = arith.constant 0 : index
    %c0_63 = arith.constant 0 : index
    %148 = vector.load %arg6[%c1_61, %c0_62, %c0_63] : memref<2x1x64xf32, #tpu.memory_space<vmem>>, vector<1x1x64xf32>
    %149 = vector.shape_cast %148 : vector<1x1x64xf32> to vector<1x64xf32>
    %c1_64 = arith.constant 1 : index
    %c0_65 = arith.constant 0 : index
    %c0_66 = arith.constant 0 : index
    %150 = vector.load %arg7[%c1_64, %c0_65, %c0_66] : memref<2x64x32xbf16, #tpu.memory_space<vmem>>, vector<1x64x32xbf16>
    %151 = vector.shape_cast %150 : vector<1x64x32xbf16> to vector<64x32xbf16>
    %c1_67 = arith.constant 1 : index
    %c0_68 = arith.constant 0 : index
    %c0_69 = arith.constant 0 : index
    %152 = vector.load %arg8[%c1_67, %c0_68, %c0_69] : memref<2x4x32xf32, #tpu.memory_space<vmem>>, vector<1x4x32xf32>
    %153 = vector.shape_cast %152 : vector<1x4x32xf32> to vector<4x32xf32>
    %154 = arith.truncf %139 : vector<64x32xf32> to vector<64x32xbf16>
    %cst_70 = arith.constant dense<0.000000e+00> : vector<64x96xf32>
    %155 = tpu.matmul %154, %141, %cst_70 {dimension_numbers = #tpu.dot_dimension_numbers<[1], [0], [0], [1], [0, 0, 1, 1], [], []>} : vector<64x32xbf16>, vector<32x96xbf16>, vector<64x96xf32> -> vector<64x96xf32>
    %156 = vector.broadcast %143 : vector<1x96xf32> to vector<64x96xf32>
    %157 = arith.addf %155, %156 : vector<64x96xf32>
    %158 = vector.extract_strided_slice %157 {offsets = [0, 0], sizes = [64, 32], strides = [1, 1]} : vector<64x96xf32> to vector<64x32xf32>
    %159 = vector.extract_strided_slice %157 {offsets = [0, 32], sizes = [64, 32], strides = [1, 1]} : vector<64x96xf32> to vector<64x32xf32>
    %160 = vector.extract_strided_slice %157 {offsets = [0, 64], sizes = [64, 32], strides = [1, 1]} : vector<64x96xf32> to vector<64x32xf32>
    %161 = vector.extract_strided_slice %158 {offsets = [0, 0], sizes = [64, 8], strides = [1, 1]} : vector<64x32xf32> to vector<64x8xf32>
    %162 = vector.shape_cast %161 : vector<64x8xf32> to vector<8x8x8xf32>
    %163 = vector.extract_strided_slice %159 {offsets = [0, 0], sizes = [64, 8], strides = [1, 1]} : vector<64x32xf32> to vector<64x8xf32>
    %164 = vector.shape_cast %163 : vector<64x8xf32> to vector<8x8x8xf32>
    %165 = vector.extract_strided_slice %160 {offsets = [0, 0], sizes = [64, 8], strides = [1, 1]} : vector<64x32xf32> to vector<64x8xf32>
    %166 = vector.shape_cast %165 : vector<64x8xf32> to vector<8x8x8xf32>
    "tpu.trace_start"() <{level = 10 : i32, message = "bqd,bkd->bqk"}> : () -> ()
    %cst_71 = arith.constant dense<0.000000e+00> : vector<8x8x8xf32>
    %167 = tpu.matmul %162, %164, %cst_71 {dimension_numbers = #tpu.dot_dimension_numbers<[2], [2], [1], [1], [0, 0, 0, 1, 1, 1], [0], [0]>} : vector<8x8x8xf32>, vector<8x8x8xf32>, vector<8x8x8xf32> -> vector<8x8x8xf32>
    "tpu.trace_stop"() : () -> ()
    %cst_72 = arith.constant 0.353553385 : f32
    %168 = vector.broadcast %cst_72 : f32 to vector<8x8x8xf32>
    %169 = arith.mulf %167, %168 : vector<8x8x8xf32>
    %cst_73 = arith.constant dense<0xFF800000> : vector<8x8xf32>
    %170 = vector.multi_reduction <maximumf>, %169, %cst_73 [2] : vector<8x8x8xf32> to vector<8x8xf32>
    %171 = vector.shape_cast %170 : vector<8x8xf32> to vector<8x8x1xf32>
    %172 = vector.broadcast %171 : vector<8x8x1xf32> to vector<8x8x8xf32>
    %173 = arith.subf %169, %172 : vector<8x8x8xf32>
    %174 = math.exp %173 : vector<8x8x8xf32>
    %cst_74 = arith.constant dense<0.000000e+00> : vector<8x8xf32>
    %175 = vector.multi_reduction <add>, %174, %cst_74 [2] : vector<8x8x8xf32> to vector<8x8xf32>
    %176 = vector.shape_cast %175 : vector<8x8xf32> to vector<8x8x1xf32>
    %177 = tpu.reciprocal %176 {approx = true} : vector<8x8x1xf32> -> vector<8x8x1xf32>
    %178 = vector.broadcast %177 : vector<8x8x1xf32> to vector<8x8x8xf32>
    %179 = arith.mulf %174, %178 : vector<8x8x8xf32>
    "tpu.trace_start"() <{level = 10 : i32, message = "bqk,bkd->bqd"}> : () -> ()
    %cst_75 = arith.constant dense<0.000000e+00> : vector<8x8x8xf32>
    %180 = tpu.matmul %179, %166, %cst_75 {dimension_numbers = #tpu.dot_dimension_numbers<[2], [1], [1], [2], [0, 0, 0, 1, 1, 2], [0], [0]>} : vector<8x8x8xf32>, vector<8x8x8xf32>, vector<8x8x8xf32> -> vector<8x8x8xf32>
    "tpu.trace_stop"() : () -> ()
    %181 = vector.extract_strided_slice %158 {offsets = [0, 8], sizes = [64, 8], strides = [1, 1]} : vector<64x32xf32> to vector<64x8xf32>
    %182 = vector.shape_cast %181 : vector<64x8xf32> to vector<8x8x8xf32>
    %183 = vector.extract_strided_slice %159 {offsets = [0, 8], sizes = [64, 8], strides = [1, 1]} : vector<64x32xf32> to vector<64x8xf32>
    %184 = vector.shape_cast %183 : vector<64x8xf32> to vector<8x8x8xf32>
    %185 = vector.extract_strided_slice %160 {offsets = [0, 8], sizes = [64, 8], strides = [1, 1]} : vector<64x32xf32> to vector<64x8xf32>
    %186 = vector.shape_cast %185 : vector<64x8xf32> to vector<8x8x8xf32>
    "tpu.trace_start"() <{level = 10 : i32, message = "bqd,bkd->bqk"}> : () -> ()
    %cst_76 = arith.constant dense<0.000000e+00> : vector<8x8x8xf32>
    %187 = tpu.matmul %182, %184, %cst_76 {dimension_numbers = #tpu.dot_dimension_numbers<[2], [2], [1], [1], [0, 0, 0, 1, 1, 1], [0], [0]>} : vector<8x8x8xf32>, vector<8x8x8xf32>, vector<8x8x8xf32> -> vector<8x8x8xf32>
    "tpu.trace_stop"() : () -> ()
    %cst_77 = arith.constant 0.353553385 : f32
    %188 = vector.broadcast %cst_77 : f32 to vector<8x8x8xf32>
    %189 = arith.mulf %187, %188 : vector<8x8x8xf32>
    %cst_78 = arith.constant dense<0xFF800000> : vector<8x8xf32>
    %190 = vector.multi_reduction <maximumf>, %189, %cst_78 [2] : vector<8x8x8xf32> to vector<8x8xf32>
    %191 = vector.shape_cast %190 : vector<8x8xf32> to vector<8x8x1xf32>
    %192 = vector.broadcast %191 : vector<8x8x1xf32> to vector<8x8x8xf32>
    %193 = arith.subf %189, %192 : vector<8x8x8xf32>
    %194 = math.exp %193 : vector<8x8x8xf32>
    %cst_79 = arith.constant dense<0.000000e+00> : vector<8x8xf32>
    %195 = vector.multi_reduction <add>, %194, %cst_79 [2] : vector<8x8x8xf32> to vector<8x8xf32>
    %196 = vector.shape_cast %195 : vector<8x8xf32> to vector<8x8x1xf32>
    %197 = tpu.reciprocal %196 {approx = true} : vector<8x8x1xf32> -> vector<8x8x1xf32>
    %198 = vector.broadcast %197 : vector<8x8x1xf32> to vector<8x8x8xf32>
    %199 = arith.mulf %194, %198 : vector<8x8x8xf32>
    "tpu.trace_start"() <{level = 10 : i32, message = "bqk,bkd->bqd"}> : () -> ()
    %cst_80 = arith.constant dense<0.000000e+00> : vector<8x8x8xf32>
    %200 = tpu.matmul %199, %186, %cst_80 {dimension_numbers = #tpu.dot_dimension_numbers<[2], [1], [1], [2], [0, 0, 0, 1, 1, 2], [0], [0]>} : vector<8x8x8xf32>, vector<8x8x8xf32>, vector<8x8x8xf32> -> vector<8x8x8xf32>
    "tpu.trace_stop"() : () -> ()
    %201 = vector.extract_strided_slice %158 {offsets = [0, 16], sizes = [64, 8], strides = [1, 1]} : vector<64x32xf32> to vector<64x8xf32>
    %202 = vector.shape_cast %201 : vector<64x8xf32> to vector<8x8x8xf32>
    %203 = vector.extract_strided_slice %159 {offsets = [0, 16], sizes = [64, 8], strides = [1, 1]} : vector<64x32xf32> to vector<64x8xf32>
    %204 = vector.shape_cast %203 : vector<64x8xf32> to vector<8x8x8xf32>
    %205 = vector.extract_strided_slice %160 {offsets = [0, 16], sizes = [64, 8], strides = [1, 1]} : vector<64x32xf32> to vector<64x8xf32>
    %206 = vector.shape_cast %205 : vector<64x8xf32> to vector<8x8x8xf32>
    "tpu.trace_start"() <{level = 10 : i32, message = "bqd,bkd->bqk"}> : () -> ()
    %cst_81 = arith.constant dense<0.000000e+00> : vector<8x8x8xf32>
    %207 = tpu.matmul %202, %204, %cst_81 {dimension_numbers = #tpu.dot_dimension_numbers<[2], [2], [1], [1], [0, 0, 0, 1, 1, 1], [0], [0]>} : vector<8x8x8xf32>, vector<8x8x8xf32>, vector<8x8x8xf32> -> vector<8x8x8xf32>
    "tpu.trace_stop"() : () -> ()
    %cst_82 = arith.constant 0.353553385 : f32
    %208 = vector.broadcast %cst_82 : f32 to vector<8x8x8xf32>
    %209 = arith.mulf %207, %208 : vector<8x8x8xf32>
    %cst_83 = arith.constant dense<0xFF800000> : vector<8x8xf32>
    %210 = vector.multi_reduction <maximumf>, %209, %cst_83 [2] : vector<8x8x8xf32> to vector<8x8xf32>
    %211 = vector.shape_cast %210 : vector<8x8xf32> to vector<8x8x1xf32>
    %212 = vector.broadcast %211 : vector<8x8x1xf32> to vector<8x8x8xf32>
    %213 = arith.subf %209, %212 : vector<8x8x8xf32>
    %214 = math.exp %213 : vector<8x8x8xf32>
    %cst_84 = arith.constant dense<0.000000e+00> : vector<8x8xf32>
    %215 = vector.multi_reduction <add>, %214, %cst_84 [2] : vector<8x8x8xf32> to vector<8x8xf32>
    %216 = vector.shape_cast %215 : vector<8x8xf32> to vector<8x8x1xf32>
    %217 = tpu.reciprocal %216 {approx = true} : vector<8x8x1xf32> -> vector<8x8x1xf32>
    %218 = vector.broadcast %217 : vector<8x8x1xf32> to vector<8x8x8xf32>
    %219 = arith.mulf %214, %218 : vector<8x8x8xf32>
    "tpu.trace_start"() <{level = 10 : i32, message = "bqk,bkd->bqd"}> : () -> ()
    %cst_85 = arith.constant dense<0.000000e+00> : vector<8x8x8xf32>
    %220 = tpu.matmul %219, %206, %cst_85 {dimension_numbers = #tpu.dot_dimension_numbers<[2], [1], [1], [2], [0, 0, 0, 1, 1, 2], [0], [0]>} : vector<8x8x8xf32>, vector<8x8x8xf32>, vector<8x8x8xf32> -> vector<8x8x8xf32>
    "tpu.trace_stop"() : () -> ()
    %221 = vector.extract_strided_slice %158 {offsets = [0, 24], sizes = [64, 8], strides = [1, 1]} : vector<64x32xf32> to vector<64x8xf32>
    %222 = vector.shape_cast %221 : vector<64x8xf32> to vector<8x8x8xf32>
    %223 = vector.extract_strided_slice %159 {offsets = [0, 24], sizes = [64, 8], strides = [1, 1]} : vector<64x32xf32> to vector<64x8xf32>
    %224 = vector.shape_cast %223 : vector<64x8xf32> to vector<8x8x8xf32>
    %225 = vector.extract_strided_slice %160 {offsets = [0, 24], sizes = [64, 8], strides = [1, 1]} : vector<64x32xf32> to vector<64x8xf32>
    %226 = vector.shape_cast %225 : vector<64x8xf32> to vector<8x8x8xf32>
    "tpu.trace_start"() <{level = 10 : i32, message = "bqd,bkd->bqk"}> : () -> ()
    %cst_86 = arith.constant dense<0.000000e+00> : vector<8x8x8xf32>
    %227 = tpu.matmul %222, %224, %cst_86 {dimension_numbers = #tpu.dot_dimension_numbers<[2], [2], [1], [1], [0, 0, 0, 1, 1, 1], [0], [0]>} : vector<8x8x8xf32>, vector<8x8x8xf32>, vector<8x8x8xf32> -> vector<8x8x8xf32>
    "tpu.trace_stop"() : () -> ()
    %cst_87 = arith.constant 0.353553385 : f32
    %228 = vector.broadcast %cst_87 : f32 to vector<8x8x8xf32>
    %229 = arith.mulf %227, %228 : vector<8x8x8xf32>
    %cst_88 = arith.constant dense<0xFF800000> : vector<8x8xf32>
    %230 = vector.multi_reduction <maximumf>, %229, %cst_88 [2] : vector<8x8x8xf32> to vector<8x8xf32>
    %231 = vector.shape_cast %230 : vector<8x8xf32> to vector<8x8x1xf32>
    %232 = vector.broadcast %231 : vector<8x8x1xf32> to vector<8x8x8xf32>
    %233 = arith.subf %229, %232 : vector<8x8x8xf32>
    %234 = math.exp %233 : vector<8x8x8xf32>
    %cst_89 = arith.constant dense<0.000000e+00> : vector<8x8xf32>
    %235 = vector.multi_reduction <add>, %234, %cst_89 [2] : vector<8x8x8xf32> to vector<8x8xf32>
    %236 = vector.shape_cast %235 : vector<8x8xf32> to vector<8x8x1xf32>
    %237 = tpu.reciprocal %236 {approx = true} : vector<8x8x1xf32> -> vector<8x8x1xf32>
    %238 = vector.broadcast %237 : vector<8x8x1xf32> to vector<8x8x8xf32>
    %239 = arith.mulf %234, %238 : vector<8x8x8xf32>
    "tpu.trace_start"() <{level = 10 : i32, message = "bqk,bkd->bqd"}> : () -> ()
    %cst_90 = arith.constant dense<0.000000e+00> : vector<8x8x8xf32>
    %240 = tpu.matmul %239, %226, %cst_90 {dimension_numbers = #tpu.dot_dimension_numbers<[2], [1], [1], [2], [0, 0, 0, 1, 1, 2], [0], [0]>} : vector<8x8x8xf32>, vector<8x8x8xf32>, vector<8x8x8xf32> -> vector<8x8x8xf32>
    "tpu.trace_stop"() : () -> ()
    %241 = tpu.concatenate %180, %200, %220, %240 in 2 : vector<8x8x8xf32>, vector<8x8x8xf32>, vector<8x8x8xf32>, vector<8x8x8xf32> -> vector<8x8x32xf32>
    %242 = vector.shape_cast %241 : vector<8x8x32xf32> to vector<64x32xf32>
    %243 = arith.truncf %242 : vector<64x32xf32> to vector<64x32xbf16>
    %cst_91 = arith.constant dense<0.000000e+00> : vector<64x32xf32>
    %244 = tpu.matmul %243, %145, %cst_91 {dimension_numbers = #tpu.dot_dimension_numbers<[1], [0], [0], [1], [0, 0, 1, 1], [], []>} : vector<64x32xbf16>, vector<32x32xbf16>, vector<64x32xf32> -> vector<64x32xf32>
    %245 = arith.addf %139, %244 : vector<64x32xf32>
    %246 = vector.extract_strided_slice %153 {offsets = [0, 0], sizes = [1, 32], strides = [1, 1]} : vector<4x32xf32> to vector<1x32xf32>
    %247 = vector.broadcast %246 : vector<1x32xf32> to vector<64x32xf32>
    %248 = arith.mulf %245, %247 : vector<64x32xf32>
    %249 = vector.extract_strided_slice %153 {offsets = [1, 0], sizes = [1, 32], strides = [1, 1]} : vector<4x32xf32> to vector<1x32xf32>
    %250 = vector.broadcast %249 : vector<1x32xf32> to vector<64x32xf32>
    %251 = arith.addf %248, %250 : vector<64x32xf32>
    %252 = arith.truncf %251 : vector<64x32xf32> to vector<64x32xbf16>
    %cst_92 = arith.constant dense<0.000000e+00> : vector<64x64xf32>
    %253 = tpu.matmul %252, %147, %cst_92 {dimension_numbers = #tpu.dot_dimension_numbers<[1], [0], [0], [1], [0, 0, 1, 1], [], []>} : vector<64x32xbf16>, vector<32x64xbf16>, vector<64x64xf32> -> vector<64x64xf32>
    %254 = vector.broadcast %149 : vector<1x64xf32> to vector<64x64xf32>
    %255 = arith.addf %253, %254 : vector<64x64xf32>
    %256 = arith.mulf %255, %255 : vector<64x64xf32>
    %257 = arith.mulf %255, %256 : vector<64x64xf32>
    %cst_93 = arith.constant 4.471500e-02 : f32
    %258 = vector.broadcast %cst_93 : f32 to vector<64x64xf32>
    %259 = arith.mulf %258, %257 : vector<64x64xf32>
    %260 = arith.addf %255, %259 : vector<64x64xf32>
    %cst_94 = arith.constant 0.797884583 : f32
    %261 = vector.broadcast %cst_94 : f32 to vector<64x64xf32>
    %262 = arith.mulf %261, %260 : vector<64x64xf32>
    %263 = math.tanh %262 : vector<64x64xf32>
    %cst_95 = arith.constant 1.000000e+00 : f32
    %264 = vector.broadcast %cst_95 : f32 to vector<64x64xf32>
    %265 = arith.addf %264, %263 : vector<64x64xf32>
    %cst_96 = arith.constant 5.000000e-01 : f32
    %266 = vector.broadcast %cst_96 : f32 to vector<64x64xf32>
    %267 = arith.mulf %266, %265 : vector<64x64xf32>
    %268 = arith.mulf %255, %267 : vector<64x64xf32>
    %269 = arith.truncf %268 : vector<64x64xf32> to vector<64x64xbf16>
    %cst_97 = arith.constant dense<0.000000e+00> : vector<64x32xf32>
    %270 = tpu.matmul %269, %151, %cst_97 {dimension_numbers = #tpu.dot_dimension_numbers<[1], [0], [0], [1], [0, 0, 1, 1], [], []>} : vector<64x64xbf16>, vector<64x32xbf16>, vector<64x32xf32> -> vector<64x32xf32>
    %271 = arith.addf %251, %270 : vector<64x32xf32>
    %272 = vector.extract_strided_slice %153 {offsets = [2, 0], sizes = [1, 32], strides = [1, 1]} : vector<4x32xf32> to vector<1x32xf32>
    %273 = vector.broadcast %272 : vector<1x32xf32> to vector<64x32xf32>
    %274 = arith.mulf %271, %273 : vector<64x32xf32>
    %275 = vector.extract_strided_slice %153 {offsets = [3, 0], sizes = [1, 32], strides = [1, 1]} : vector<4x32xf32> to vector<1x32xf32>
    %276 = vector.broadcast %275 : vector<1x32xf32> to vector<64x32xf32>
    %277 = arith.addf %274, %276 : vector<64x32xf32>
    %278 = vector.shape_cast %277 : vector<64x32xf32> to vector<8x8x32xf32>
    %cst_98 = arith.constant 0.000000e+00 : f32
    %279 = vector.broadcast %cst_98 : f32 to vector<8x128xf32>
    %280 = vector.extract_strided_slice %278 {offsets = [0, 0, 0], sizes = [8, 1, 32], strides = [1, 1, 1]} : vector<8x8x32xf32> to vector<8x1x32xf32>
    %281 = vector.shape_cast %280 : vector<8x1x32xf32> to vector<8x32xf32>
    %c0_99 = arith.constant 0 : index
    %c0_100 = arith.constant 0 : index
    %c0_101 = arith.constant 0 : index
    %282 = vector.load %arg9[%c0_99, %c0_100, %c0_101] : memref<8x32x128xbf16, #tpu.memory_space<vmem>>, vector<1x32x128xbf16>
    %283 = vector.shape_cast %282 : vector<1x32x128xbf16> to vector<32x128xbf16>
    %284 = arith.truncf %281 : vector<8x32xf32> to vector<8x32xbf16>
    %cst_102 = arith.constant dense<0.000000e+00> : vector<8x128xf32>
    %285 = tpu.matmul %284, %283, %cst_102 {dimension_numbers = #tpu.dot_dimension_numbers<[1], [0], [0], [1], [0, 0, 1, 1], [], []>} : vector<8x32xbf16>, vector<32x128xbf16>, vector<8x128xf32> -> vector<8x128xf32>
    %286 = arith.addf %279, %285 : vector<8x128xf32>
    %287 = vector.extract_strided_slice %278 {offsets = [0, 1, 0], sizes = [8, 1, 32], strides = [1, 1, 1]} : vector<8x8x32xf32> to vector<8x1x32xf32>
    %288 = vector.shape_cast %287 : vector<8x1x32xf32> to vector<8x32xf32>
    %c1_103 = arith.constant 1 : index
    %c0_104 = arith.constant 0 : index
    %c0_105 = arith.constant 0 : index
    %289 = vector.load %arg9[%c1_103, %c0_104, %c0_105] : memref<8x32x128xbf16, #tpu.memory_space<vmem>>, vector<1x32x128xbf16>
    %290 = vector.shape_cast %289 : vector<1x32x128xbf16> to vector<32x128xbf16>
    %291 = arith.truncf %288 : vector<8x32xf32> to vector<8x32xbf16>
    %cst_106 = arith.constant dense<0.000000e+00> : vector<8x128xf32>
    %292 = tpu.matmul %291, %290, %cst_106 {dimension_numbers = #tpu.dot_dimension_numbers<[1], [0], [0], [1], [0, 0, 1, 1], [], []>} : vector<8x32xbf16>, vector<32x128xbf16>, vector<8x128xf32> -> vector<8x128xf32>
    %293 = arith.addf %286, %292 : vector<8x128xf32>
    %294 = vector.extract_strided_slice %278 {offsets = [0, 2, 0], sizes = [8, 1, 32], strides = [1, 1, 1]} : vector<8x8x32xf32> to vector<8x1x32xf32>
    %295 = vector.shape_cast %294 : vector<8x1x32xf32> to vector<8x32xf32>
    %c2 = arith.constant 2 : index
    %c0_107 = arith.constant 0 : index
    %c0_108 = arith.constant 0 : index
    %296 = vector.load %arg9[%c2, %c0_107, %c0_108] : memref<8x32x128xbf16, #tpu.memory_space<vmem>>, vector<1x32x128xbf16>
    %297 = vector.shape_cast %296 : vector<1x32x128xbf16> to vector<32x128xbf16>
    %298 = arith.truncf %295 : vector<8x32xf32> to vector<8x32xbf16>
    %cst_109 = arith.constant dense<0.000000e+00> : vector<8x128xf32>
    %299 = tpu.matmul %298, %297, %cst_109 {dimension_numbers = #tpu.dot_dimension_numbers<[1], [0], [0], [1], [0, 0, 1, 1], [], []>} : vector<8x32xbf16>, vector<32x128xbf16>, vector<8x128xf32> -> vector<8x128xf32>
    %300 = arith.addf %293, %299 : vector<8x128xf32>
    %301 = vector.extract_strided_slice %278 {offsets = [0, 3, 0], sizes = [8, 1, 32], strides = [1, 1, 1]} : vector<8x8x32xf32> to vector<8x1x32xf32>
    %302 = vector.shape_cast %301 : vector<8x1x32xf32> to vector<8x32xf32>
    %c3 = arith.constant 3 : index
    %c0_110 = arith.constant 0 : index
    %c0_111 = arith.constant 0 : index
    %303 = vector.load %arg9[%c3, %c0_110, %c0_111] : memref<8x32x128xbf16, #tpu.memory_space<vmem>>, vector<1x32x128xbf16>
    %304 = vector.shape_cast %303 : vector<1x32x128xbf16> to vector<32x128xbf16>
    %305 = arith.truncf %302 : vector<8x32xf32> to vector<8x32xbf16>
    %cst_112 = arith.constant dense<0.000000e+00> : vector<8x128xf32>
    %306 = tpu.matmul %305, %304, %cst_112 {dimension_numbers = #tpu.dot_dimension_numbers<[1], [0], [0], [1], [0, 0, 1, 1], [], []>} : vector<8x32xbf16>, vector<32x128xbf16>, vector<8x128xf32> -> vector<8x128xf32>
    %307 = arith.addf %300, %306 : vector<8x128xf32>
    %308 = vector.extract_strided_slice %278 {offsets = [0, 4, 0], sizes = [8, 1, 32], strides = [1, 1, 1]} : vector<8x8x32xf32> to vector<8x1x32xf32>
    %309 = vector.shape_cast %308 : vector<8x1x32xf32> to vector<8x32xf32>
    %c4 = arith.constant 4 : index
    %c0_113 = arith.constant 0 : index
    %c0_114 = arith.constant 0 : index
    %310 = vector.load %arg9[%c4, %c0_113, %c0_114] : memref<8x32x128xbf16, #tpu.memory_space<vmem>>, vector<1x32x128xbf16>
    %311 = vector.shape_cast %310 : vector<1x32x128xbf16> to vector<32x128xbf16>
    %312 = arith.truncf %309 : vector<8x32xf32> to vector<8x32xbf16>
    %cst_115 = arith.constant dense<0.000000e+00> : vector<8x128xf32>
    %313 = tpu.matmul %312, %311, %cst_115 {dimension_numbers = #tpu.dot_dimension_numbers<[1], [0], [0], [1], [0, 0, 1, 1], [], []>} : vector<8x32xbf16>, vector<32x128xbf16>, vector<8x128xf32> -> vector<8x128xf32>
    %314 = arith.addf %307, %313 : vector<8x128xf32>
    %315 = vector.extract_strided_slice %278 {offsets = [0, 5, 0], sizes = [8, 1, 32], strides = [1, 1, 1]} : vector<8x8x32xf32> to vector<8x1x32xf32>
    %316 = vector.shape_cast %315 : vector<8x1x32xf32> to vector<8x32xf32>
    %c5 = arith.constant 5 : index
    %c0_116 = arith.constant 0 : index
    %c0_117 = arith.constant 0 : index
    %317 = vector.load %arg9[%c5, %c0_116, %c0_117] : memref<8x32x128xbf16, #tpu.memory_space<vmem>>, vector<1x32x128xbf16>
    %318 = vector.shape_cast %317 : vector<1x32x128xbf16> to vector<32x128xbf16>
    %319 = arith.truncf %316 : vector<8x32xf32> to vector<8x32xbf16>
    %cst_118 = arith.constant dense<0.000000e+00> : vector<8x128xf32>
    %320 = tpu.matmul %319, %318, %cst_118 {dimension_numbers = #tpu.dot_dimension_numbers<[1], [0], [0], [1], [0, 0, 1, 1], [], []>} : vector<8x32xbf16>, vector<32x128xbf16>, vector<8x128xf32> -> vector<8x128xf32>
    %321 = arith.addf %314, %320 : vector<8x128xf32>
    %322 = vector.extract_strided_slice %278 {offsets = [0, 6, 0], sizes = [8, 1, 32], strides = [1, 1, 1]} : vector<8x8x32xf32> to vector<8x1x32xf32>
    %323 = vector.shape_cast %322 : vector<8x1x32xf32> to vector<8x32xf32>
    %c6 = arith.constant 6 : index
    %c0_119 = arith.constant 0 : index
    %c0_120 = arith.constant 0 : index
    %324 = vector.load %arg9[%c6, %c0_119, %c0_120] : memref<8x32x128xbf16, #tpu.memory_space<vmem>>, vector<1x32x128xbf16>
    %325 = vector.shape_cast %324 : vector<1x32x128xbf16> to vector<32x128xbf16>
    %326 = arith.truncf %323 : vector<8x32xf32> to vector<8x32xbf16>
    %cst_121 = arith.constant dense<0.000000e+00> : vector<8x128xf32>
    %327 = tpu.matmul %326, %325, %cst_121 {dimension_numbers = #tpu.dot_dimension_numbers<[1], [0], [0], [1], [0, 0, 1, 1], [], []>} : vector<8x32xbf16>, vector<32x128xbf16>, vector<8x128xf32> -> vector<8x128xf32>
    %328 = arith.addf %321, %327 : vector<8x128xf32>
    %329 = vector.extract_strided_slice %278 {offsets = [0, 7, 0], sizes = [8, 1, 32], strides = [1, 1, 1]} : vector<8x8x32xf32> to vector<8x1x32xf32>
    %330 = vector.shape_cast %329 : vector<8x1x32xf32> to vector<8x32xf32>
    %c7 = arith.constant 7 : index
    %c0_122 = arith.constant 0 : index
    %c0_123 = arith.constant 0 : index
    %331 = vector.load %arg9[%c7, %c0_122, %c0_123] : memref<8x32x128xbf16, #tpu.memory_space<vmem>>, vector<1x32x128xbf16>
    %332 = vector.shape_cast %331 : vector<1x32x128xbf16> to vector<32x128xbf16>
    %333 = arith.truncf %330 : vector<8x32xf32> to vector<8x32xbf16>
    %cst_124 = arith.constant dense<0.000000e+00> : vector<8x128xf32>
    %334 = tpu.matmul %333, %332, %cst_124 {dimension_numbers = #tpu.dot_dimension_numbers<[1], [0], [0], [1], [0, 0, 1, 1], [], []>} : vector<8x32xbf16>, vector<32x128xbf16>, vector<8x128xf32> -> vector<8x128xf32>
    %335 = arith.addf %328, %334 : vector<8x128xf32>
    %c0_125 = arith.constant 0 : index
    %c0_126 = arith.constant 0 : index
    %336 = vector.load %arg10[%c0_125, %c0_126] : memref<1x128xf32, #tpu.memory_space<vmem>>, vector<1x128xf32>
    %337 = vector.broadcast %336 : vector<1x128xf32> to vector<8x128xf32>
    %338 = arith.addf %335, %337 : vector<8x128xf32>
    %c0_127 = arith.constant 0 : index
    %c0_128 = arith.constant 0 : index
    %339 = vector.load %arg11[%c0_127, %c0_128] : memref<8x128xf32, #tpu.memory_space<vmem>>, vector<8x128xf32>
    tpu.vector_store %arg11[%c0_127, %c0_128], %338 {strides = array<i32>} : memref<8x128xf32, #tpu.memory_space<vmem>>, vector<8x128xf32>,
    return
  }
  func.func @transform_0(%arg0: i32) -> (i32, i32, i32) {
    %c0_i32 = arith.constant 0 : i32
    %c0_i32_0 = arith.constant 0 : i32
    %c0_i32_1 = arith.constant 0 : i32
    return %arg0, %c0_i32, %c0_i32_0 : i32, i32, i32
  }
  func.func @transform_1(%arg0: i32) -> (i32, i32, i32) {
    %c0_i32 = arith.constant 0 : i32
    %c0_i32_0 = arith.constant 0 : i32
    %c0_i32_1 = arith.constant 0 : i32
    %c0_i32_2 = arith.constant 0 : i32
    return %c0_i32, %c0_i32_0, %c0_i32_1 : i32, i32, i32
  }
  func.func @transform_2(%arg0: i32) -> (i32, i32, i32) {
    %c0_i32 = arith.constant 0 : i32
    %c0_i32_0 = arith.constant 0 : i32
    %c0_i32_1 = arith.constant 0 : i32
    %c0_i32_2 = arith.constant 0 : i32
    return %c0_i32, %c0_i32_0, %c0_i32_1 : i32, i32, i32
  }
  func.func @transform_3(%arg0: i32) -> (i32, i32, i32) {
    %c0_i32 = arith.constant 0 : i32
    %c0_i32_0 = arith.constant 0 : i32
    %c0_i32_1 = arith.constant 0 : i32
    %c0_i32_2 = arith.constant 0 : i32
    return %c0_i32, %c0_i32_0, %c0_i32_1 : i32, i32, i32
  }
  func.func @transform_4(%arg0: i32) -> (i32, i32, i32) {
    %c0_i32 = arith.constant 0 : i32
    %c0_i32_0 = arith.constant 0 : i32
    %c0_i32_1 = arith.constant 0 : i32
    %c0_i32_2 = arith.constant 0 : i32
    return %c0_i32, %c0_i32_0, %c0_i32_1 : i32, i32, i32
  }
  func.func @transform_5(%arg0: i32) -> (i32, i32, i32) {
    %c0_i32 = arith.constant 0 : i32
    %c0_i32_0 = arith.constant 0 : i32
    %c0_i32_1 = arith.constant 0 : i32
    %c0_i32_2 = arith.constant 0 : i32
    return %c0_i32, %c0_i32_0, %c0_i32_1 : i32, i32, i32
  }
  func.func @transform_6(%arg0: i32) -> (i32, i32, i32) {
    %c0_i32 = arith.constant 0 : i32
    %c0_i32_0 = arith.constant 0 : i32
    %c0_i32_1 = arith.constant 0 : i32
    %c0_i32_2 = arith.constant 0 : i32
    return %c0_i32, %c0_i32_0, %c0_i32_1 : i32, i32, i32
  }
  func.func @transform_7(%arg0: i32) -> (i32, i32, i32) {
    %c0_i32 = arith.constant 0 : i32
    %c0_i32_0 = arith.constant 0 : i32
    %c0_i32_1 = arith.constant 0 : i32
    %c0_i32_2 = arith.constant 0 : i32
    return %c0_i32, %c0_i32_0, %c0_i32_1 : i32, i32, i32
  }
  func.func @transform_8(%arg0: i32) -> (i32, i32, i32) {
    %c0_i32 = arith.constant 0 : i32
    %c0_i32_0 = arith.constant 0 : i32
    %c0_i32_1 = arith.constant 0 : i32
    %c0_i32_2 = arith.constant 0 : i32
    return %c0_i32, %c0_i32_0, %c0_i32_1 : i32, i32, i32
  }
  func.func @transform_9(%arg0: i32) -> (i32, i32) {
    %c0_i32 = arith.constant 0 : i32
    %c0_i32_0 = arith.constant 0 : i32
    %c0_i32_1 = arith.constant 0 : i32
    return %c0_i32, %c0_i32_0 : i32, i32
  }
  func.func @transform_10(%arg0: i32) -> (i32, i32) {
    %c0_i32 = arith.constant 0 : i32
    %c0_i32_0 = arith.constant 0 : i32
    return %arg0, %c0_i32 : i32, i32
  }
}

</mosaic_0001>

<bundles_post_ra>
// kernel: tpu_custom_call.1
= control target key start
LH: loop header
LB: loop body
LE: loop exit
PB: predicated region body
PF: predicated region fallthrough
CT: control target
= control target key end

     0   :  { %15 = vsyncpa [#allocation3], 0  ;;  %s17112_s0 = inlined_call_operand.vmem [shape: f32[8,8,32], index: 0, kind: input, shape index: {}]   ;;  %s17113_s1 = inlined_call_operand.vmem [shape: bf16[2,32,96], index: 1, kind: input, shape index: {}]   ;;  %s17114_s2 = inlined_call_operand.hbm [shape: f32[2,1,96], index: 2, kind: input, shape index: {}]   ;;  %s17115_s3 = inlined_call_operand.hbm [shape: bf16[2,32,32], index: 3, kind: input, shape index: {}]   ;;  %s17116_s4 = inlined_call_operand.hbm [shape: bf16[2,32,64], index: 4, kind: input, shape index: {}]   ;;  %s17117_s5 = inlined_call_operand.hbm [shape: f32[2,1,64], index: 5, kind: input, shape index: {}]   ;;  %s17118_s6 = inlined_call_operand.vmem [shape: bf16[2,64,32], index: 6, kind: input, shape index: {}]   ;;  %s17119_s7 = inlined_call_operand.vmem [shape: f32[2,4,32], index: 7, kind: input, shape index: {}]   ;;  %s17120_s8 = inlined_call_operand.hbm [shape: bf16[8,32,128], index: 8, kind: input, shape index: {}]   ;;  %s17121_s9 = inlined_call_operand.vmem [shape: f32[1,128], index: 9, kind: input, shape index: {}]   ;;  %s17122_s10 = inlined_call_operand.hbm [shape: f32[8,128], index: 10, kind: output, shape index: {}]  }
   0x1   :  { %16 = vsyncpa [#allocation6], 0 }
   0x2   :  { %17 = vsyncpa [#allocation9], 0 }
   0x3   :  { %18 = vsyncpa [#allocation4], 0  ;;  %s14775_s13 = smov [#allocation5]  }
   0x4   :  { %s40_s14 = sshll.u32 %s14775_s13, 4  ;;  %s41_s14 = int_to_ptr.vmem [resolvable:$true] %s40_s14 }
   0x5   :  { %s14655_s15 = scalar_lea.vmem %s41_s14, 512  ;;  %p14660_p1 = scmp.lt.s32.totalorder %s41_s14, %s41_s14 }
   0x6   :  { %p14656_p0 = scmp.ne.s32.totalorder %s41_s14, %s14655_s15  ;;  %p14661_p2 = scmp.lt.s32.totalorder %s14655_s15, %s14655_s15 }
   0x8   :  { %p14662_p3 = por %p14661_p2, %p14660_p1 }
   0xa   :  { %p14663_p4 = pnand %p14662_p3, %p14656_p0 }
   0xc   :  { %14666 = shalt.err (!%p14663_p4)
}
   0xd   :  { %s14776_s16 = smov 64   ;;  %s14777_s17 = smov 4  }
   0xe   :  { %46 = dma.hbm_to_vmem [thread:$0]  %s17115_s3, 512, %s41_s14, [#allocation6], %s14776_s16, %s14776_s16, %s14777_s17  }
   0xf   :  { %s14778_s20 = smov [#allocation8]   ;;  %s14779_s22 = smov [#allocation2]  }
  0x10   :  { %s64_s21 = sshll.u32 %s14778_s20, 4  ;;  %s28_s23 = sshll.u32 %s14779_s22, 4  ;;  %s65_s21 = int_to_ptr.vmem [resolvable:$true] %s64_s21  ;;  %s29_s23 = int_to_ptr.vmem [resolvable:$true] %s28_s23 }
  0x11   :  { %s14675_s24 = scalar_lea.vmem %s65_s21, 32  ;;  %p14680_p6 = scmp.lt.s32.totalorder %s65_s21, %s65_s21 }
  0x12   :  { %p14676_p5 = scmp.ne.s32.totalorder %s65_s21, %s14675_s24  ;;  %p14681_p7 = scmp.lt.s32.totalorder %s14675_s24, %s14675_s24 }
  0x14   :  { %p14682_p8 = por %p14681_p7, %p14680_p6 }
  0x16   :  { %p14683_p9 = pnand %p14682_p8, %p14676_p5 }
  0x18   :  { %14686 = shalt.err (!%p14683_p9)
}
  0x19   :  { %s14780_s25 = smov 16   ;;  %s14781_s26 = smov 1  }
  0x1a   :  { %70 = dma.hbm_to_vmem [thread:$0]  %s17117_s5, 32, %s65_s21, [#allocation9], %s14780_s25, %s14780_s25, %s14781_s26  }
  0x1b   :  { %s14695_s3 = scalar_lea.vmem %s29_s23, 32  ;;  %p14700_p11 = scmp.lt.s32.totalorder %s29_s23, %s29_s23 }
  0x1c   :  { %p14696_p10 = scmp.ne.s32.totalorder %s29_s23, %s14695_s3  ;;  %p14701_p12 = scmp.lt.s32.totalorder %s14695_s3, %s14695_s3 }
  0x1e   :  { %p14702_p13 = por %p14701_p12, %p14700_p11 }
  0x20   :  { %p14703_p0 = pnand %p14702_p13, %p14696_p10 }
  0x22   :  { %14706 = shalt.err (!%p14703_p0)
}
  0x23   :  { %34 = dma.hbm_to_vmem [thread:$0]  %s17114_s2, 32, %s29_s23, [#allocation3], %s14780_s25, %s14780_s25, %s14781_s26  }
  0x24   :  { %s14782_s11 = smov [#allocation7]   ;;  %s14783_s13 = smov [#allocation10]  }
  0x25   :  { %s52_s12 = sshll.u32 %s14782_s11, 4  ;;  %s80_s14 = sshll.u32 %s14783_s13, 4  ;;  %s53_s12 = int_to_ptr.vmem [resolvable:$true] %s52_s12  ;;  %s81_s14 = int_to_ptr.vmem [resolvable:$true] %s80_s14 }
  0x26   :  { %s14715_s5 = scalar_lea.vmem %s53_s12, 512  ;;  %p14720_p2 = scmp.lt.s32.totalorder %s53_s12, %s53_s12 }
  0x27   :  { %p14716_p1 = scmp.ne.s32.totalorder %s53_s12, %s14715_s5  ;;  %p14721_p3 = scmp.lt.s32.totalorder %s14715_s5, %s14715_s5 }
  0x29   :  { %p14722_p4 = por %p14721_p3, %p14720_p2 }
  0x2b   :  { %p14723_p5 = pnand %p14722_p4, %p14716_p1 }
  0x2d   :  { %14726 = shalt.err (!%p14723_p5)
}
  0x2e   :  { %58 = dma.hbm_to_vmem [thread:$0]  %s17116_s4, 512, %s53_s12, [#allocation6], %s14776_s16, %s14776_s16, %s14777_s17  }
  0x2f   :  { %s14735_s2 = scalar_lea.vmem %s81_s14, 2048  ;;  %p14740_p7 = scmp.lt.s32.totalorder %s81_s14, %s81_s14 }
  0x30   :  { %p14736_p6 = scmp.ne.s32.totalorder %s81_s14, %s14735_s2  ;;  %p14741_p8 = scmp.lt.s32.totalorder %s14735_s2, %s14735_s2 }
  0x32   :  { %p14742_p9 = por %p14741_p8, %p14740_p7 }
  0x34   :  { %p14743_p10 = pnand %p14742_p9, %p14736_p6 }
  0x36   :  { %14746 = shalt.err (!%p14743_p10)
}
  0x37   :  { %86 = dma.hbm_to_vmem [thread:$0]  %s17120_s8, 2048, %s81_s14, [#allocation9], %s14776_s16, %s14776_s16, %s14777_s17  }
  0x38   :  { %14767 = dma.done.wait [#allocation3], 32  }
  0x39   :  { %14768 = vsyncadd [#allocation3], 4294967264 }
  0x3a   :  { %14769 = dma.done.wait [#allocation6], 1024  }
  0x3b   :  { %14770 = vsyncadd [#allocation6], 4294966272 }
  0x3c   :  { %14771 = dma.done.wait [#allocation9], 2080  }
  0x3d   :  { %14772 = vsyncadd [#allocation9], 4294965216  ;;  %v14315_v0 = vld [vmem:[%s17113_s1 + $0x8] sm:$0xff]   ;;  %v14316_v1 = vld [vmem:[%s17113_s1] sm:$0xff]   ;;  %vm158_vm0 = vcmask 261120   ;;  %v17127_v14 = vmov 0.0  }
  0x3e   :  { %13363 = vmatprep.subr.bf16.mxu0 %v14315_v0  ;;  %v105_v2 = vld [vmem:[%s17112_s0] sm:$0xff]  ;;  %v106_v3 = vld [vmem:[%s17112_s0 + $0x8] sm:$0xff]  ;;  %v107_v5 = vld [vmem:[%s17112_s0 + $0x10] sm:$0xff]  ;;  %13375 = vmatprep.subr.mxu1 %v17127_v14  ;;  %vm14785_vm1 = vmmov 0   ;;  %s14786_s2 = smov 96   ;;  %vm239_vm2 = vcmask 64512  }
  0x3f   :  { %13364 = vmatpush3.bf16.msra.mxu0 %v14315_v0  ;;  %v136_v4 = vpack.c.bf16 %v106_v3, %v105_v2  ;;  %v108_v6 = vld [vmem:[%s17112_s0 + $0x18] sm:$0xff]  ;;  %v109_v7 = vld [vmem:[%s17112_s0 + $0x20] sm:$0xff]  ;;  %v110_v8 = vld [vmem:[%s17112_s0 + $0x28] sm:$0xff]  ;;  %13377 = vmatprep.mubr.msk.f32.mxu1 %vm14785_vm1, %v17127_v14  ;;  %s14787_s19 = smov 88   ;;  %s14788_s20 = smov 120   ;;  %vm5645_vm3 = vcmask 130048  }
  0x40   :  { %13365 = vmatprep.subr.bf16.mxu0 %v14316_v1  ;;  %v137_v9 = vpack.c.bf16 %v108_v6, %v107_v5  ;;  %v138_v10 = vpack.c.bf16 %v110_v8, %v109_v7  ;;  %v111_v11 = vld [vmem:[%s17112_s0 + $0x30] sm:$0xff]  ;;  %v112_v12 = vld [vmem:[%s17112_s0 + $0x38] sm:$0xff]  ;;  %v12745_v15 = vld [vmem:[#allocation2] ss:$0 sm:$0xff]  ;;  %s14789_s4 = smov 56   ;;  %s14790_s21 = smov 80  }
  0x41   :  { %13367 = vmatprep.mubr.msk.bf16.mxu0 %vm158_vm0, %v136_v4  ;;  %v139_v13 = vpack.c.bf16 %v112_v12, %v111_v11  ;;  %s14791_s22 = smov 112   ;;  %s14792_s23 = smov 48   ;;  %vm5654_vm4 = vcmask 195584   ;;  %vm5987_vm5 = vcmask 523264   ;;  %vm12117_vm6 = vcmask 1041409  }
  0x42   :  { %s14793_s24 = smov 72   ;;  %s14794_s26 = smov 104   ;;  %vm12120_vm7 = vcmask 1042434   ;;  %vm12123_vm8 = vcmask 1043459   ;;  %vm12126_vm9 = vcmask 1044484   ;;  %vm12129_vm10 = vcmask 1045509  }
  0x43   :  { %13366 = vmatpush3.bf16.msra.mxu0 %v14316_v1  ;;  %s14795_s8 = smov 40   ;;  %s14796_s17 = smov 8   ;;  %vm12132_vm11 = vcmask 1046534   ;;  %vm12135_vm12 = vcmask 1047559  }
  0x44   :  { %13400 = vmatprep.subr.mxu0 %v17127_v14  ;;  %s14797_s27 = smov 24  }
  0x46   :  { %13368 = vmatmul.mubr.msk.bf16.vlgmr.msra.gmra.mxu0 %vm158_vm0, %v137_v9 }
  0x47   :  { %13371 = vmatprep.mubr.msk.bf16.mxu0 %vm158_vm0, %v138_v10 }
  0x4e   :  { %13372 = vmatmul.mubr.msk.bf16.gmra.mxu0 %vm158_vm0, %v139_v13 }
  0x4f   :  { %13402 = vmatprep.mubr.msk.f32.mxu0 %vm14785_vm1, %v17127_v14 }
 0x106   :  { %v13369_v16 = vpop.f32.mrf.mxu0 }
 0x107   :  { %v14922_v17 = vadd.f32 %v13369_v16, %v12745_v15 }
 0x108   :  { %v205_v18 = vpop.f32.mrf.mxu0 }
 0x109   :  { %v14924_v19 = vadd.f32 %v12745_v15, %v205_v18  ;;  %392 = vrot.lane.b32.xlu1 %v14922_v17, %s14786_s2 }
 0x10a   :  { %v13370_v20 = vpop.f32.mrf.mxu0 }
 0x10b   :  { %v14928_v21 = vadd.f32 %v13370_v20, %v12745_v15  ;;  %237 = vrot.lane.b32.xlu0 %v14924_v19, %s14786_s2 }
 0x10c   :  { %v208_v22 = vpop.f32.mrf.mxu0 }
 0x10d   :  { %v14932_v23 = vadd.f32 %v12745_v15, %v208_v22  ;;  %469 = vrot.lane.b32.xlu1 %v14928_v21, %s14786_s2 }
 0x10e   :  { %v13373_v24 = vpop.f32.mrf.mxu0 }
 0x10f   :  { %315 = vrot.lane.b32.xlu0 %v14932_v23, %s14786_s2  ;;  %v14940_v28 = vadd.f32 %v13373_v24, %v12745_v15 }
 0x110   :  { %v221_v25 = vpop.f32.mrf.mxu0 }
 0x111   :  { %v14938_v26 = vadd.f32 %v12745_v15, %v221_v25 }
 0x112   :  { %v13374_v27 = vpop.f32.mrf.mxu0 }
 0x113   :  { %546 = vrot.lane.b32.xlu0 %v14938_v26, %s14786_s2  ;;  %v14950_v31 = vadd.f32 %v13374_v27, %v12745_v15 }
 0x114   :  { %v224_v29 = vpop.f32.mrf.mxu0 }
 0x115   :  { %v14944_v30 = vadd.f32 %v12745_v15, %v224_v29 }
 0x117   :  { %623 = vrot.lane.b32.xlu1 %v14944_v30, %s14786_s2  ;;  %700 = vrot.lane.b32.xlu0 %v14940_v28, %s14786_s2 }
 0x11b   :  { %777 = vrot.lane.b32.xlu1 %v14950_v31, %s14786_s2 }
 0x17b   :  { %v393_v33 = vpop.permute.xlu1 %392 }
 0x17d   :  { %v238_v32 = vpop.permute.xlu0 %237 }
 0x17e   :  { %13376 = vmatpush3.xpose.msk.msra.mxu1 %vm239_vm2, %v238_v32 }
 0x17f   :  { %13380 = vmatprep.subr.mxu1 %v17127_v14  ;;  %v470_v35 = vpop.permute.xlu1 %469 }
 0x181   :  { %13378 = vmatmul.mubr.msk.f32.vlgmr.msra.gmra.mxu1 %vm239_vm2, %v14924_v19  ;;  %v316_v34 = vpop.permute.xlu0 %315 }
 0x182   :  { %13381 = vmatpush3.xpose.msk.msra.mxu1 %vm239_vm2, %v316_v34  ;;  %13382 = vmatprep.mubr.msk.f32.mxu1 %vm14785_vm1, %v17127_v14 }
 0x183   :  { %13385 = vmatprep.subr.mxu1 %v17127_v14 }
 0x185   :  { %13383 = vmatmul.mubr.msk.f32.vlgmr.msra.gmra.mxu1 %vm239_vm2, %v14932_v23  ;;  %v547_v37 = vpop.permute.xlu0 %546 }
 0x186   :  { %13386 = vmatpush3.xpose.msk.msra.mxu1 %vm239_vm2, %v393_v33  ;;  %13387 = vmatprep.mubr.msk.f32.mxu1 %vm14785_vm1, %v17127_v14 }
 0x187   :  { %13390 = vmatprep.subr.mxu1 %v17127_v14 }
 0x189   :  { %v624_v36 = vpop.permute.xlu1 %623  ;;  %13388 = vmatmul.mubr.msk.f32.vlgmr.msra.gmra.mxu1 %vm239_vm2, %v14922_v17  ;;  %v701_v39 = vpop.permute.xlu0 %700 }
 0x18a   :  { %13391 = vmatpush3.xpose.msk.msra.mxu1 %vm239_vm2, %v470_v35  ;;  %13401 = vmatpush3.xpose.msk.msra.mxu0 %vm239_vm2, %v624_v36 }
 0x18b   :  { %13392 = vmatprep.mubr.msk.f32.mxu1 %vm14785_vm1, %v17127_v14  ;;  %13410 = vmatprep.subr.mxu0 %v17127_v14 }
 0x18c   :  { %13395 = vmatprep.subr.mxu1 %v17127_v14 }
 0x18d   :  { %13403 = vmatmul.mubr.msk.f32.vlgmr.msra.gmra.mxu0 %vm239_vm2, %v14944_v30  ;;  %v778_v38 = vpop.permute.xlu1 %777  ;;  %13393 = vmatmul.mubr.msk.f32.vlgmr.msra.gmra.mxu1 %vm239_vm2, %v14928_v21 }
 0x18e   :  { %13396 = vmatpush3.xpose.msk.msra.mxu1 %vm239_vm2, %v547_v37  ;;  %13411 = vmatpush3.xpose.msk.msra.mxu0 %vm239_vm2, %v778_v38 }
 0x18f   :  { %13397 = vmatprep.mubr.msk.f32.mxu1 %vm14785_vm1, %v17127_v14  ;;  %13412 = vmatprep.mubr.msk.f32.mxu0 %vm14785_vm1, %v17127_v14 }
 0x190   :  { %13405 = vmatprep.subr.mxu1 %v17127_v14  ;;  %13420 = vmatprep.subr.mxu0 %v17127_v14 }
 0x191   :  { %13398 = vmatmul.mubr.msk.f32.vlgmr.msra.gmra.mxu1 %vm239_vm2, %v14938_v26  ;;  %13413 = vmatmul.mubr.msk.f32.vlgmr.msra.gmra.mxu0 %vm239_vm2, %v14950_v31 }
 0x192   :  { %13406 = vmatpush3.xpose.msk.msra.mxu1 %vm239_vm2, %v701_v39  ;;  %13407 = vmatprep.mubr.msk.f32.mxu1 %vm14785_vm1, %v17127_v14 }
 0x193   :  { %13415 = vmatprep.subr.mxu1 %v17127_v14  ;;  %13422 = vmatprep.mubr.msk.f32.mxu0 %vm14785_vm1, %v17127_v14 }
 0x195   :  { %13408 = vmatmul.mubr.msk.f32.vlgmr.msra.gmra.mxu1 %vm239_vm2, %v14940_v28 }
 0x196   :  { %13417 = vmatprep.mubr.msk.f32.mxu1 %vm14785_vm1, %v17127_v14 }
 0x241   :  { %v310_v40 = vpop.f32.mrf.mxu1 }
 0x242   :  { %v853_v41 = vmul.f32 0.35355338, %v310_v40 }
 0x243   :  { %v13379_v42 = vpop.f32.mrf.mxu1 }
 0x244   :  { %v861_v43 = vsel %vm239_vm2, %v853_v41, -inf }
 0x245   :  { %862 = vmax.xlane.f32.xlu0 %v861_v43  ;;  %v387_v44 = vpop.f32.mrf.mxu1 }
 0x246   :  { %v854_v45 = vmul.f32 0.35355338, %v387_v44 }
 0x247   :  { %v13384_v46 = vpop.f32.mrf.mxu1 }
 0x248   :  { %v864_v47 = vsel %vm239_vm2, %v854_v45, -inf }
 0x249   :  { %865 = vmax.xlane.f32.xlu1 %v864_v47  ;;  %v464_v48 = vpop.f32.mrf.mxu1 }
 0x24a   :  { %v855_v49 = vmul.f32 0.35355338, %v464_v48 }
 0x24b   :  { %v13389_v50 = vpop.f32.mrf.mxu1 }
 0x24c   :  { %v867_v51 = vsel %vm239_vm2, %v855_v49, -inf }
 0x24d   :  { %v695_v52 = vpop.f32.mrf.mxu0  ;;  %868 = vmax.xlane.f32.xlu0 %v867_v51  ;;  %v541_v53 = vpop.f32.mrf.mxu1 }
 0x24e   :  { %v856_v54 = vmul.f32 0.35355338, %v541_v53  ;;  %v858_v57 = vmul.f32 0.35355338, %v695_v52 }
 0x24f   :  { %v13394_v55 = vpop.f32.mrf.mxu1  ;;  %v13404_v56 = vpop.f32.mrf.mxu0 }
 0x250   :  { %v870_v58 = vsel %vm239_vm2, %v856_v54, -inf  ;;  %v876_v1 = vsel %vm239_vm2, %v858_v57, -inf }
 0x251   :  { %v849_v59 = vpop.f32.mrf.mxu0  ;;  %871 = vmax.xlane.f32.xlu0 %v870_v58  ;;  %v618_v60 = vpop.f32.mrf.mxu1 }
 0x252   :  { %v857_v61 = vmul.f32 0.35355338, %v618_v60  ;;  %v860_v0 = vmul.f32 0.35355338, %v849_v59 }
 0x253   :  { %v13399_v62 = vpop.f32.mrf.mxu1  ;;  %v13414_v63 = vpop.f32.mrf.mxu0 }
 0x254   :  { %v873_v2 = vsel %vm239_vm2, %v857_v61, -inf  ;;  %v882_v5 = vsel %vm239_vm2, %v860_v0, -inf }
 0x255   :  { %877 = vmax.xlane.f32.xlu0 %v876_v1  ;;  %874 = vmax.xlane.f32.xlu1 %v873_v2  ;;  %v772_v3 = vpop.f32.mrf.mxu1 }
 0x256   :  { %v15035_v6 = vmul.f32 0.35355338, %v772_v3 }
 0x257   :  { %v13409_v4 = vpop.f32.mrf.mxu1 }
 0x258   :  { %v879_v7 = vsel %vm239_vm2, %v15035_v6, -inf }
 0x259   :  { %883 = vmax.xlane.f32.xlu0 %v882_v5 }
 0x266   :  { %949 = vrot.lane.b32.xlu1 %v14924_v19, %s14776_s16 }
 0x26a   :  { %1101 = vrot.lane.b32.xlu1 %v14922_v17, %s14776_s16 }
 0x26e   :  { %1177 = vrot.lane.b32.xlu1 %v14928_v21, %s14776_s16 }
 0x26f   :  { %1025 = vrot.lane.b32.xlu0 %v14932_v23, %s14776_s16 }
 0x272   :  { %1329 = vrot.lane.b32.xlu1 %v14944_v30, %s14776_s16 }
 0x273   :  { %1253 = vrot.lane.b32.xlu0 %v14938_v26, %s14776_s16 }
 0x276   :  { %1481 = vrot.lane.b32.xlu1 %v14950_v31, %s14776_s16 }
 0x277   :  { %1405 = vrot.lane.b32.xlu0 %v14940_v28, %s14776_s16 }
 0x27a   :  { %1637 = vrot.lane.b32.xlu1 %v14932_v23, %s14787_s19 }
 0x27b   :  { %1559 = vrot.lane.b32.xlu0 %v14924_v19, %s14787_s19 }
 0x27e   :  { %1635 = vrot.lane.b32.xlu1 %v14932_v23, %s14788_s20 }
 0x27f   :  { %1557 = vrot.lane.b32.xlu0 %v14924_v19, %s14788_s20 }
 0x283   :  { %1715 = vrot.lane.b32.xlu0 %v14922_v17, %s14787_s19 }
 0x2a2   :  { %880 = vmax.xlane.f32.xlu1 %v879_v7 }
 0x2b3   :  { %1793 = vrot.lane.b32.xlu1 %v14928_v21, %s14787_s19 }
 0x2ce   :  { %v863_v8 = vpop.xlane.xlu0 %862 }
 0x2cf   :  { %v885_v9 = vsub.f32 %v853_v41, %v863_v8 }
 0x2d1   :  { %v893_v10 = vmul.f32 1.442695, %v885_v9 }
 0x2d2   :  { %v866_v11 = vpop.xlane.xlu1 %865 }
 0x2d3   :  { %14351 = vpow2.f32 %v893_v10  ;;  %v886_v12 = vsub.f32 %v854_v45, %v866_v11 }
 0x2d5   :  { %v895_v13 = vmul.f32 1.442695, %v886_v12 }
 0x2d6   :  { %v869_v15 = vpop.xlane.xlu0 %868 }
 0x2d7   :  { %14353 = vpow2.f32 %v895_v13  ;;  %v887_v16 = vsub.f32 %v855_v49, %v869_v15 }
 0x2d9   :  { %v897_v18 = vmul.f32 1.442695, %v887_v16 }
 0x2da   :  { %v872_v20 = vpop.xlane.xlu0 %871 }
 0x2db   :  { %14355 = vpow2.f32 %v897_v18  ;;  %v888_v22 = vsub.f32 %v856_v54, %v872_v20 }
 0x2dd   :  { %v899_v24 = vmul.f32 1.442695, %v888_v22 }
 0x2de   :  { %v875_v25 = vpop.xlane.xlu1 %874  ;;  %v878_v27 = vpop.xlane.xlu0 %877 }
 0x2df   :  { %14357 = vpow2.f32 %v899_v24  ;;  %v889_v29 = vsub.f32 %v857_v61, %v875_v25  ;;  %v890_v32 = vsub.f32 %v858_v57, %v878_v27 }
 0x2e0   :  { %v15041_v33 = vpop.eup %14351 }
 0x2e1   :  { %v901_v34 = vmul.f32 1.442695, %v889_v29  ;;  %v903_v35 = vmul.f32 1.442695, %v890_v32  ;;  %v909_v36 = vsel %vm239_vm2, %v15041_v33, 0.0 }
 0x2e2   :  { %v950_v37 = vpop.permute.xlu1 %949  ;;  %910 = vadd.xlane.f32.xlu1 %v909_v36  ;;  %v884_v38 = vpop.xlane.xlu0 %883 }
 0x2e3   :  { %14359 = vpow2.f32 %v901_v34  ;;  %v892_v39 = vsub.f32 %v860_v0, %v884_v38  ;;  %13416 = vmatpush3.msra.mxu1 %v950_v37 }
 0x2e4   :  { %v15045_v40 = vpop.eup %14353  ;;  %14361 = vpow2.f32 %v903_v35  ;;  %13425 = vmatprep.subr.mxu1 %v17127_v14 }
 0x2e5   :  { %v907_v41 = vmul.f32 1.442695, %v892_v39  ;;  %v912_v42 = vsel %vm239_vm2, %v15045_v40, 0.0 }
 0x2e6   :  { %913 = vadd.xlane.f32.xlu0 %v912_v42  ;;  %v1026_v43 = vpop.permute.xlu0 %1025  ;;  %v1102_v54 = vpop.permute.xlu1 %1101 }
 0x2e7   :  { %14363 = vpow2.f32 %v907_v41  ;;  %13421 = vmatpush3.msra.mxu0 %v1026_v43 }
 0x2e8   :  { %v15050_v44 = vpop.eup %14355  ;;  %13430 = vmatprep.subr.mxu0 %v17127_v14 }
 0x2e9   :  { %v915_v45 = vsel %vm239_vm2, %v15050_v44, 0.0 }
 0x2ea   :  { %916 = vadd.xlane.f32.xlu1 %v915_v45  ;;  %v1178_v55 = vpop.permute.xlu1 %1177  ;;  %v1254_v1 = vpop.permute.xlu0 %1253 }
 0x2ec   :  { %v15055_v46 = vpop.eup %14357 }
 0x2ed   :  { %v918_v47 = vsel %vm239_vm2, %v15055_v46, 0.0 }
 0x2ee   :  { %919 = vadd.xlane.f32.xlu0 %v918_v47  ;;  %v1330_v56 = vpop.permute.xlu1 %1329  ;;  %v1406_v2 = vpop.permute.xlu0 %1405 }
 0x2f0   :  { %v15059_v48 = vpop.eup %14359 }
 0x2f1   :  { %v15061_v49 = vpop.eup %14361  ;;  %v921_v50 = vsel %vm239_vm2, %v15059_v48, 0.0 }
 0x2f2   :  { %922 = vadd.xlane.f32.xlu1 %v921_v50  ;;  %v924_v51 = vsel %vm239_vm2, %v15061_v49, 0.0  ;;  %v15083_v57 = vpop.permute.xlu1 %1481  ;;  %v15102_v3 = vpop.permute.xlu0 %1559 }
 0x2f3   :  { %925 = vadd.xlane.f32.xlu0 %v924_v51 }
 0x2f4   :  { %v15067_v52 = vpop.eup %14363 }
 0x2f5   :  { %v930_v53 = vsel %vm239_vm2, %v15067_v52, 0.0 }
 0x2f6   :  { %v15087_v58 = vpop.permute.xlu1 %1637  ;;  %v15104_v4 = vpop.permute.xlu0 %1557 }
 0x2f7   :  { %931 = vadd.xlane.f32.xlu0 %v930_v53 }
 0x2fa   :  { %v15089_v59 = vpop.permute.xlu1 %1635 }
 0x303   :  { %1791 = vrot.lane.b32.xlu1 %v14928_v21, %s14788_s20 }
 0x307   :  { %1949 = vrot.lane.b32.xlu1 %v14944_v30, %s14787_s19 }
 0x30d   :  { %1713 = vrot.lane.b32.xlu0 %v14922_v17, %s14788_s20 }
 0x311   :  { %1871 = vrot.lane.b32.xlu0 %v14938_v26, %s14787_s19 }
 0x315   :  { %1869 = vrot.lane.b32.xlu0 %v14938_v26, %s14788_s20 }
 0x319   :  { %2027 = vrot.lane.b32.xlu0 %v14940_v28, %s14787_s19 }
 0x31d   :  { %2025 = vrot.lane.b32.xlu0 %v14940_v28, %s14788_s20 }
 0x32b   :  { %v881_v60 = vpop.xlane.xlu1 %880 }
 0x32c   :  { %v891_v61 = vsub.f32 %v15035_v6, %v881_v60  ;;  %v15106_v6 = vpop.permute.xlu0 %1715 }
 0x32e   :  { %v905_v62 = vmul.f32 1.442695, %v891_v61 }
 0x32f   :  { %v1794_v5 = vpop.permute.xlu1 %1793 }
 0x330   :  { %14365 = vpow2.f32 %v905_v62 }
 0x33d   :  { %v15092_v63 = vpop.eup %14365 }
 0x33e   :  { %v927_v0 = vsel %vm239_vm2, %v15092_v63, 0.0 }
 0x33f   :  { %928 = vadd.xlane.f32.xlu1 %v927_v0 }
 0x350   :  { %1947 = vrot.lane.b32.xlu1 %v14944_v30, %s14788_s20 }
 0x354   :  { %2105 = vrot.lane.b32.xlu1 %v14950_v31, %s14787_s19 }
 0x358   :  { %2103 = vrot.lane.b32.xlu1 %v14950_v31, %s14788_s20 }
 0x36b   :  { %v911_v7 = vpop.xlane.xlu1 %910 }
 0x36c   :  { %14367 = vrcp.f32 %v911_v7 }
 0x36f   :  { %v914_v8 = vpop.xlane.xlu0 %913 }
 0x370   :  { %14369 = vrcp.f32 %v914_v8 }
 0x373   :  { %v917_v9 = vpop.xlane.xlu1 %916 }
 0x374   :  { %14371 = vrcp.f32 %v917_v9 }
 0x377   :  { %v920_v10 = vpop.xlane.xlu0 %919 }
 0x378   :  { %14373 = vrcp.f32 %v920_v10 }
 0x379   :  { %v14368_v11 = vpop.eup %14367 }
 0x37a   :  { %v941_v12 = vmul.f32 %v14368_v11, %v15041_v33 }
 0x37b   :  { %v923_v13 = vpop.xlane.xlu1 %922 }
 0x37c   :  { %14375 = vrcp.f32 %v923_v13  ;;  %v926_v15 = vpop.xlane.xlu0 %925  ;;  %13418 = vmatmul.mubr.msk.f32.vlgmr.msra.gmra.mxu1 %vm239_vm2, %v941_v12 }
 0x37d   :  { %v14370_v16 = vpop.eup %14369  ;;  %14377 = vrcp.f32 %v926_v15  ;;  %13426 = vmatpush3.msra.mxu1 %v1102_v54  ;;  %13427 = vmatprep.mubr.msk.f32.mxu1 %vm14785_vm1, %v17127_v14 }
 0x37e   :  { %v942_v18 = vmul.f32 %v14370_v16, %v15045_v40  ;;  %13435 = vmatprep.subr.mxu1 %v17127_v14 }
 0x37f   :  { %v1792_v37 = vpop.permute.xlu1 %1791 }
 0x380   :  { %v932_v20 = vpop.xlane.xlu0 %931  ;;  %13423 = vmatmul.mubr.msk.f32.vlgmr.msra.gmra.mxu0 %vm239_vm2, %v942_v18 }
 0x381   :  { %v14372_v22 = vpop.eup %14371  ;;  %14379 = vrcp.f32 %v932_v20  ;;  %13431 = vmatpush3.msra.mxu0 %v1178_v55  ;;  %13432 = vmatprep.mubr.msk.f32.mxu0 %vm14785_vm1, %v17127_v14 }
 0x382   :  { %v943_v24 = vmul.f32 %v14372_v22, %v15050_v44  ;;  %13440 = vmatprep.subr.mxu0 %v17127_v14 }
 0x383   :  { %v1950_v38 = vpop.permute.xlu1 %1949 }
 0x384   :  { %13428 = vmatmul.mubr.msk.f32.vlgmr.msra.gmra.mxu1 %vm239_vm2, %v943_v24  ;;  %v1714_v41 = vpop.permute.xlu0 %1713 }
 0x385   :  { %v14374_v25 = vpop.eup %14373  ;;  %13436 = vmatpush3.msra.mxu1 %v1254_v1  ;;  %13437 = vmatprep.mubr.msk.f32.mxu1 %vm14785_vm1, %v17127_v14 }
 0x386   :  { %v944_v27 = vmul.f32 %v14374_v25, %v15055_v46  ;;  %13445 = vmatprep.subr.mxu1 %v17127_v14 }
 0x388   :  { %13433 = vmatmul.mubr.msk.f32.vlgmr.msra.gmra.mxu0 %vm239_vm2, %v944_v27  ;;  %v1872_v45 = vpop.permute.xlu0 %1871 }
 0x389   :  { %v14376_v29 = vpop.eup %14375  ;;  %13441 = vmatpush3.msra.mxu0 %v1330_v56  ;;  %13442 = vmatprep.mubr.msk.f32.mxu0 %vm14785_vm1, %v17127_v14 }
 0x38a   :  { %v14378_v32 = vpop.eup %14377  ;;  %13450 = vmatprep.subr.mxu0 %v17127_v14  ;;  %v945_v33 = vmul.f32 %v14376_v29, %v15059_v48 }
 0x38b   :  { %v946_v34 = vmul.f32 %v14378_v32, %v15061_v49 }
 0x38c   :  { %13438 = vmatmul.mubr.msk.f32.vlgmr.msra.gmra.mxu1 %vm239_vm2, %v945_v33  ;;  %v1870_v47 = vpop.permute.xlu0 %1869 }
 0x38d   :  { %13443 = vmatmul.mubr.msk.f32.vlgmr.msra.gmra.mxu0 %vm239_vm2, %v946_v34  ;;  %13446 = vmatpush3.msra.mxu1 %v1406_v2 }
 0x38e   :  { %v14380_v35 = vpop.eup %14379  ;;  %13451 = vmatpush3.msra.mxu0 %v15083_v57  ;;  %13452 = vmatprep.mubr.msk.f32.mxu0 %vm14785_vm1, %v17127_v14 }
 0x38f   :  { %13460 = vmatprep.subr.mxu0 %v17127_v14  ;;  %v948_v36 = vmul.f32 %v14380_v35, %v15067_v52  ;;  %13447 = vmatprep.mubr.msk.f32.mxu1 %vm14785_vm1, %v17127_v14 }
 0x390   :  { %13455 = vmatprep.subr.mxu1 %v17127_v14  ;;  %v2028_v48 = vpop.permute.xlu0 %2027 }
 0x391   :  { %13453 = vmatmul.mubr.msk.f32.vlgmr.msra.gmra.mxu0 %vm239_vm2, %v948_v36 }
 0x392   :  { %13461 = vmatpush3.xpose.msk.msra.mxu0 %vm239_vm2, %v15087_v58  ;;  %13462 = vmatprep.mubr.msk.f32.mxu0 %vm14785_vm1, %v17127_v14 }
 0x393   :  { %13470 = vmatprep.subr.mxu0 %v17127_v14 }
 0x394   :  { %v2026_v49 = vpop.permute.xlu0 %2025 }
 0x395   :  { %13463 = vmatmul.mubr.msk.f32.vlgmr.msra.gmra.mxu0 %vm239_vm2, %v15089_v59 }
 0x396   :  { %13471 = vmatpush3.xpose.msk.msra.mxu0 %vm239_vm2, %v1794_v5  ;;  %13472 = vmatprep.mubr.msk.f32.mxu0 %vm14785_vm1, %v17127_v14 }
 0x397   :  { %13480 = vmatprep.subr.mxu0 %v17127_v14 }
 0x399   :  { %13473 = vmatmul.mubr.msk.f32.vlgmr.msra.gmra.mxu0 %vm239_vm2, %v1792_v37 }
 0x39a   :  { %13481 = vmatpush3.xpose.msk.msra.mxu0 %vm239_vm2, %v1950_v38  ;;  %13482 = vmatprep.mubr.msk.f32.mxu0 %vm14785_vm1, %v17127_v14 }
 0x39b   :  { %13490 = vmatprep.subr.mxu0 %v17127_v14 }
 0x3c8   :  { %v929_v39 = vpop.xlane.xlu1 %928 }
 0x3c9   :  { %14381 = vrcp.f32 %v929_v39 }
 0x3cc   :  { %v1948_v40 = vpop.permute.xlu1 %1947 }
 0x3cd   :  { %13483 = vmatmul.mubr.msk.f32.vlgmr.msra.gmra.mxu0 %vm239_vm2, %v1948_v40 }
 0x3ce   :  { %13492 = vmatprep.mubr.msk.f32.mxu0 %vm14785_vm1, %v17127_v14 }
 0x3d0   :  { %v2106_v42 = vpop.permute.xlu1 %2105 }
 0x3d1   :  { %13491 = vmatpush3.xpose.msk.msra.mxu0 %vm239_vm2, %v2106_v42 }
 0x3d2   :  { %13500 = vmatprep.subr.mxu0 %v17127_v14 }
 0x3d4   :  { %v2104_v43 = vpop.permute.xlu1 %2103 }
 0x3d5   :  { %13493 = vmatmul.mubr.msk.f32.vlgmr.msra.gmra.mxu0 %vm239_vm2, %v2104_v43 }
 0x3d6   :  { %v14382_v44 = vpop.eup %14381  ;;  %13502 = vmatprep.mubr.msk.f32.mxu0 %vm14785_vm1, %v17127_v14 }
 0x3d7   :  { %v947_v46 = vmul.f32 %v14382_v44, %v15092_v63 }
 0x3d9   :  { %13448 = vmatmul.mubr.msk.f32.vlgmr.msra.gmra.mxu1 %vm239_vm2, %v947_v46 }
 0x3da   :  { %13456 = vmatpush3.xpose.msk.msra.mxu1 %vm239_vm2, %v15102_v3  ;;  %13457 = vmatprep.mubr.msk.f32.mxu1 %vm14785_vm1, %v17127_v14 }
 0x3db   :  { %13465 = vmatprep.subr.mxu1 %v17127_v14 }
 0x3dd   :  { %13458 = vmatmul.mubr.msk.f32.vlgmr.msra.gmra.mxu1 %vm239_vm2, %v15104_v4 }
 0x3de   :  { %13466 = vmatpush3.xpose.msk.msra.mxu1 %vm239_vm2, %v15106_v6  ;;  %13467 = vmatprep.mubr.msk.f32.mxu1 %vm14785_vm1, %v17127_v14 }
 0x3df   :  { %13475 = vmatprep.subr.mxu1 %v17127_v14 }
 0x3e1   :  { %13468 = vmatmul.mubr.msk.f32.vlgmr.msra.gmra.mxu1 %vm239_vm2, %v1714_v41 }
 0x3e2   :  { %13476 = vmatpush3.xpose.msk.msra.mxu1 %vm239_vm2, %v1872_v45  ;;  %13477 = vmatprep.mubr.msk.f32.mxu1 %vm14785_vm1, %v17127_v14 }
 0x3e3   :  { %13485 = vmatprep.subr.mxu1 %v17127_v14 }
 0x3e5   :  { %13478 = vmatmul.mubr.msk.f32.vlgmr.msra.gmra.mxu1 %vm239_vm2, %v1870_v47 }
 0x3e6   :  { %13486 = vmatpush3.xpose.msk.msra.mxu1 %vm239_vm2, %v2028_v48  ;;  %13487 = vmatprep.mubr.msk.f32.mxu1 %vm14785_vm1, %v17127_v14 }
 0x3e7   :  { %13495 = vmatprep.subr.mxu1 %v17127_v14 }
 0x3e9   :  { %13488 = vmatmul.mubr.msk.f32.vlgmr.msra.gmra.mxu1 %vm239_vm2, %v2026_v49 }
 0x3ea   :  { %13497 = vmatprep.mubr.msk.f32.mxu1 %vm14785_vm1, %v17127_v14 }
 0x43c   :  { %v15192_v50 = vpop.f32.mrf.mxu1 }
 0x43e   :  { %v13419_v51 = vpop.f32.mrf.mxu1 }
 0x440   :  { %v15194_v52 = vpop.f32.mrf.mxu0 }
 0x442   :  { %v13424_v53 = vpop.f32.mrf.mxu0 }
 0x444   :  { %v15196_v54 = vpop.f32.mrf.mxu1 }
 0x446   :  { %v13429_v55 = vpop.f32.mrf.mxu1 }
 0x448   :  { %v15198_v56 = vpop.f32.mrf.mxu0 }
 0x44a   :  { %v13434_v57 = vpop.f32.mrf.mxu0 }
 0x44c   :  { %v15200_v58 = vpop.f32.mrf.mxu1 }
 0x44d   :  { %v15202_v59 = vpop.f32.mrf.mxu0 }
 0x44e   :  { %v13439_v60 = vpop.f32.mrf.mxu1 }
 0x44f   :  { %v13444_v61 = vpop.f32.mrf.mxu0 }
 0x451   :  { %v15204_v62 = vpop.f32.mrf.mxu0 }
 0x453   :  { %v13454_v63 = vpop.f32.mrf.mxu0 }
 0x455   :  { %v1709_v0 = vpop.f32.mrf.mxu0 }
 0x456   :  { %v2182_v1 = vmul.f32 0.35355338, %v1709_v0 }
 0x457   :  { %v13464_v2 = vpop.f32.mrf.mxu0 }
 0x458   :  { %v2192_v3 = vsel %vm239_vm2, %v2182_v1, -inf }
 0x459   :  { %2193 = vmax.xlane.f32.xlu1 %v2192_v3  ;;  %v1865_v4 = vpop.f32.mrf.mxu0 }
 0x45a   :  { %v2184_v24 = vmul.f32 0.35355338, %v1865_v4 }
 0x45b   :  { %v13474_v5 = vpop.f32.mrf.mxu0 }
 0x45c   :  { %v2198_v34 = vsel %vm239_vm2, %v2184_v24, -inf }
 0x48d   :  { %v2021_v6 = vpop.f32.mrf.mxu0 }
 0x48e   :  { %v2186_v33 = vmul.f32 0.35355338, %v2021_v6 }
 0x48f   :  { %v13484_v7 = vpop.f32.mrf.mxu0 }
 0x490   :  { %v2204_v40 = vsel %vm239_vm2, %v2186_v33, -inf }
 0x495   :  { %v2177_v8 = vpop.f32.mrf.mxu0 }
 0x496   :  { %v2188_v39 = vmul.f32 0.35355338, %v2177_v8 }
 0x497   :  { %v13494_v9 = vpop.f32.mrf.mxu0 }
 0x498   :  { %v2210_v42 = vsel %vm239_vm2, %v2188_v39, -inf }
 0x499   :  { %v15207_v10 = vpop.f32.mrf.mxu1 }
 0x49b   :  { %v13449_v11 = vpop.f32.mrf.mxu1 }
 0x49d   :  { %v1631_v12 = vpop.f32.mrf.mxu1 }
 0x49e   :  { %v2181_v13 = vmul.f32 0.35355338, %v1631_v12 }
 0x49f   :  { %v13459_v15 = vpop.f32.mrf.mxu1 }
 0x4a0   :  { %v2189_v16 = vsel %vm239_vm2, %v2181_v13, -inf }
 0x4a1   :  { %2190 = vmax.xlane.f32.xlu0 %v2189_v16  ;;  %v1787_v18 = vpop.f32.mrf.mxu1 }
 0x4a2   :  { %v2183_v20 = vmul.f32 0.35355338, %v1787_v18 }
 0x4a3   :  { %v13469_v22 = vpop.f32.mrf.mxu1 }
 0x4a4   :  { %v2195_v25 = vsel %vm239_vm2, %v2183_v20, -inf }
 0x4a5   :  { %2196 = vmax.xlane.f32.xlu0 %v2195_v25  ;;  %v1943_v27 = vpop.f32.mrf.mxu1 }
 0x4a6   :  { %v2185_v29 = vmul.f32 0.35355338, %v1943_v27 }
 0x4a7   :  { %v13479_v32 = vpop.f32.mrf.mxu1 }
 0x4a8   :  { %v2201_v35 = vsel %vm239_vm2, %v2185_v29, -inf }
 0x4a9   :  { %2199 = vmax.xlane.f32.xlu0 %v2198_v34  ;;  %2202 = vmax.xlane.f32.xlu1 %v2201_v35  ;;  %v2099_v36 = vpop.f32.mrf.mxu1 }
 0x4aa   :  { %v2187_v37 = vmul.f32 0.35355338, %v2099_v36 }
 0x4ab   :  { %v13489_v38 = vpop.f32.mrf.mxu1 }
 0x4ac   :  { %v2207_v41 = vsel %vm239_vm2, %v2187_v37, -inf }
 0x4ad   :  { %2205 = vmax.xlane.f32.xlu0 %v2204_v40  ;;  %2208 = vmax.xlane.f32.xlu1 %v2207_v41 }
 0x4b1   :  { %2211 = vmax.xlane.f32.xlu0 %v2210_v42 }
 0x4be   :  { %2277 = vrot.lane.b32.xlu1 %v14924_v19, %s14789_s4 }
 0x4c2   :  { %2429 = vrot.lane.b32.xlu1 %v14922_v17, %s14789_s4 }
 0x4c6   :  { %2505 = vrot.lane.b32.xlu1 %v14928_v21, %s14789_s4 }
 0x4c7   :  { %2353 = vrot.lane.b32.xlu0 %v14932_v23, %s14789_s4 }
 0x4ca   :  { %2657 = vrot.lane.b32.xlu1 %v14944_v30, %s14789_s4 }
 0x4cb   :  { %2581 = vrot.lane.b32.xlu0 %v14938_v26, %s14789_s4 }
 0x4ce   :  { %2809 = vrot.lane.b32.xlu1 %v14950_v31, %s14789_s4 }
 0x4cf   :  { %2733 = vrot.lane.b32.xlu0 %v14940_v28, %s14789_s4 }
 0x4d2   :  { %2965 = vrot.lane.b32.xlu1 %v14932_v23, %s14790_s21 }
 0x4d3   :  { %2887 = vrot.lane.b32.xlu0 %v14924_v19, %s14790_s21 }
 0x4d6   :  { %2963 = vrot.lane.b32.xlu1 %v14932_v23, %s14791_s22 }
 0x4d7   :  { %2885 = vrot.lane.b32.xlu0 %v14924_v19, %s14791_s22 }
 0x4da   :  { %3121 = vrot.lane.b32.xlu1 %v14928_v21, %s14790_s21 }
 0x4db   :  { %3043 = vrot.lane.b32.xlu0 %v14922_v17, %s14790_s21 }
 0x4e2   :  { %v2194_v43 = vpop.xlane.xlu1 %2193 }
 0x4e3   :  { %v2214_v44 = vsub.f32 %v2182_v1, %v2194_v43 }
 0x4e5   :  { %v2223_v45 = vmul.f32 1.442695, %v2214_v44 }
 0x4e7   :  { %14383 = vpow2.f32 %v2223_v45 }
 0x4f4   :  { %v15244_v46 = vpop.eup %14383 }
 0x4f5   :  { %v2240_v47 = vsel %vm239_vm2, %v15244_v46, 0.0 }
 0x4fa   :  { %2241 = vadd.xlane.f32.xlu0 %v2240_v47 }
 0x52a   :  { %v2191_v48 = vpop.xlane.xlu0 %2190 }
 0x52b   :  { %v2213_v49 = vsub.f32 %v2181_v13, %v2191_v48 }
 0x52d   :  { %v2221_v51 = vmul.f32 1.442695, %v2213_v49 }
 0x52e   :  { %v2197_v53 = vpop.xlane.xlu0 %2196 }
 0x52f   :  { %14385 = vpow2.f32 %v2221_v51  ;;  %v2215_v55 = vsub.f32 %v2183_v20, %v2197_v53 }
 0x531   :  { %v2225_v57 = vmul.f32 1.442695, %v2215_v55 }
 0x532   :  { %v2203_v60 = vpop.xlane.xlu1 %2202  ;;  %v2200_v61 = vpop.xlane.xlu0 %2199 }
 0x533   :  { %14387 = vpow2.f32 %v2225_v57  ;;  %v2217_v63 = vsub.f32 %v2185_v29, %v2203_v60  ;;  %v2216_v0 = vsub.f32 %v2184_v24, %v2200_v61 }
 0x535   :  { %v2229_v1 = vmul.f32 1.442695, %v2217_v63  ;;  %v2227_v2 = vmul.f32 1.442695, %v2216_v0 }
 0x536   :  { %v2209_v3 = vpop.xlane.xlu1 %2208  ;;  %v2206_v4 = vpop.xlane.xlu0 %2205 }
 0x537   :  { %14389 = vpow2.f32 %v2229_v1  ;;  %v2219_v5 = vsub.f32 %v2187_v37, %v2209_v3  ;;  %v2218_v6 = vsub.f32 %v2186_v33, %v2206_v4 }
 0x538   :  { %14391 = vpow2.f32 %v2227_v2 }
 0x539   :  { %v2233_v7 = vmul.f32 1.442695, %v2219_v5  ;;  %v2231_v8 = vmul.f32 1.442695, %v2218_v6 }
 0x53a   :  { %v2278_v9 = vpop.permute.xlu1 %2277  ;;  %v2212_v11 = vpop.xlane.xlu0 %2211 }
 0x53b   :  { %14393 = vpow2.f32 %v2233_v7  ;;  %v2220_v12 = vsub.f32 %v2188_v39, %v2212_v11  ;;  %13496 = vmatpush3.msra.mxu1 %v2278_v9 }
 0x53c   :  { %v15248_v13 = vpop.eup %14385  ;;  %14395 = vpow2.f32 %v2231_v8  ;;  %13505 = vmatprep.subr.mxu1 %v17127_v14 }
 0x53d   :  { %v2235_v15 = vmul.f32 1.442695, %v2220_v12  ;;  %v2237_v16 = vsel %vm239_vm2, %v15248_v13, 0.0 }
 0x53e   :  { %2238 = vadd.xlane.f32.xlu1 %v2237_v16  ;;  %v2354_v18 = vpop.permute.xlu0 %2353  ;;  %v2430_v44 = vpop.permute.xlu1 %2429 }
 0x53f   :  { %14397 = vpow2.f32 %v2235_v15  ;;  %13501 = vmatpush3.msra.mxu0 %v2354_v18 }
 0x540   :  { %v15253_v20 = vpop.eup %14387  ;;  %13510 = vmatprep.subr.mxu0 %v17127_v14 }
 0x541   :  { %v2243_v22 = vsel %vm239_vm2, %v15253_v20, 0.0 }
 0x542   :  { %2244 = vadd.xlane.f32.xlu1 %v2243_v22  ;;  %v2582_v38 = vpop.permute.xlu0 %2581  ;;  %v2506_v48 = vpop.permute.xlu1 %2505 }
 0x544   :  { %v15258_v24 = vpop.eup %14389 }
 0x545   :  { %v15260_v25 = vpop.eup %14391  ;;  %v2249_v27 = vsel %vm239_vm2, %v15258_v24, 0.0 }
 0x546   :  { %2250 = vadd.xlane.f32.xlu1 %v2249_v27  ;;  %v2246_v29 = vsel %vm239_vm2, %v15260_v25, 0.0  ;;  %v2734_v39 = vpop.permute.xlu0 %2733  ;;  %v2658_v49 = vpop.permute.xlu1 %2657 }
 0x547   :  { %2247 = vadd.xlane.f32.xlu0 %v2246_v29 }
 0x548   :  { %v15266_v32 = vpop.eup %14393 }
 0x549   :  { %v15268_v33 = vpop.eup %14395  ;;  %v2255_v34 = vsel %vm239_vm2, %v15266_v32, 0.0 }
 0x54a   :  { %2256 = vadd.xlane.f32.xlu1 %v2255_v34  ;;  %v2252_v35 = vsel %vm239_vm2, %v15268_v33, 0.0  ;;  %v15296_v40 = vpop.permute.xlu0 %2887  ;;  %v2810_v51 = vpop.permute.xlu1 %2809 }
 0x54b   :  { %2253 = vadd.xlane.f32.xlu0 %v2252_v35 }
 0x54c   :  { %v15274_v36 = vpop.eup %14397 }
 0x54d   :  { %v2258_v37 = vsel %vm239_vm2, %v15274_v36, 0.0 }
 0x54e   :  { %v15300_v41 = vpop.permute.xlu0 %2885  ;;  %v15309_v53 = vpop.permute.xlu1 %2965 }
 0x54f   :  { %2259 = vadd.xlane.f32.xlu0 %v2258_v37 }
 0x552   :  { %v15302_v42 = vpop.permute.xlu0 %3043  ;;  %v15311_v55 = vpop.permute.xlu1 %2963 }
 0x556   :  { %v15313_v57 = vpop.permute.xlu1 %3121 }
 0x55b   :  { %3119 = vrot.lane.b32.xlu1 %v14928_v21, %s14791_s22 }
 0x55f   :  { %3277 = vrot.lane.b32.xlu1 %v14944_v30, %s14790_s21 }
 0x563   :  { %3275 = vrot.lane.b32.xlu1 %v14944_v30, %s14791_s22 }
 0x565   :  { %3041 = vrot.lane.b32.xlu0 %v14922_v17, %s14791_s22 }
 0x567   :  { %3433 = vrot.lane.b32.xlu1 %v14950_v31, %s14790_s21 }
 0x569   :  { %3199 = vrot.lane.b32.xlu0 %v14938_v26, %s14790_s21 }
 0x56b   :  { %3431 = vrot.lane.b32.xlu1 %v14950_v31, %s14791_s22 }
 0x56d   :  { %3197 = vrot.lane.b32.xlu0 %v14938_v26, %s14791_s22 }
 0x571   :  { %3355 = vrot.lane.b32.xlu0 %v14940_v28, %s14790_s21 }
 0x575   :  { %3353 = vrot.lane.b32.xlu0 %v14940_v28, %s14791_s22 }
 0x583   :  { %v2242_v43 = vpop.xlane.xlu0 %2241 }
 0x584   :  { %14399 = vrcp.f32 %v2242_v43 }
 0x591   :  { %v14400_v45 = vpop.eup %14399 }
 0x592   :  { %v2270_v47 = vmul.f32 %v14400_v45, %v15244_v46 }
 0x594   :  { %13503 = vmatmul.mubr.msk.f32.vlgmr.msra.gmra.mxu0 %vm239_vm2, %v2270_v47 }
 0x595   :  { %13511 = vmatpush3.msra.mxu0 %v2506_v48  ;;  %13512 = vmatprep.mubr.msk.f32.mxu0 %vm14785_vm1, %v17127_v14 }
 0x596   :  { %13520 = vmatprep.subr.mxu0 %v17127_v14 }
 0x5c7   :  { %v2239_v60 = vpop.xlane.xlu1 %2238 }
 0x5c8   :  { %14401 = vrcp.f32 %v2239_v60 }
 0x5cb   :  { %v2245_v46 = vpop.xlane.xlu1 %2244 }
 0x5cc   :  { %14403 = vrcp.f32 %v2245_v46 }
 0x5cf   :  { %v2251_v61 = vpop.xlane.xlu1 %2250 }
 0x5d0   :  { %14405 = vrcp.f32 %v2251_v61  ;;  %v2248_v63 = vpop.xlane.xlu0 %2247 }
 0x5d1   :  { %14407 = vrcp.f32 %v2248_v63 }
 0x5d3   :  { %v2257_v0 = vpop.xlane.xlu1 %2256 }
 0x5d4   :  { %14409 = vrcp.f32 %v2257_v0  ;;  %v2254_v1 = vpop.xlane.xlu0 %2253 }
 0x5d5   :  { %v14402_v2 = vpop.eup %14401  ;;  %14411 = vrcp.f32 %v2254_v1 }
 0x5d6   :  { %v2269_v3 = vmul.f32 %v14402_v2, %v15248_v13 }
 0x5d7   :  { %v3120_v13 = vpop.permute.xlu1 %3119 }
 0x5d8   :  { %v2260_v4 = vpop.xlane.xlu0 %2259  ;;  %13498 = vmatmul.mubr.msk.f32.vlgmr.msra.gmra.mxu1 %vm239_vm2, %v2269_v3 }
 0x5d9   :  { %v14404_v5 = vpop.eup %14403  ;;  %14413 = vrcp.f32 %v2260_v4  ;;  %13506 = vmatpush3.msra.mxu1 %v2430_v44  ;;  %13507 = vmatprep.mubr.msk.f32.mxu1 %vm14785_vm1, %v17127_v14 }
 0x5da   :  { %13515 = vmatprep.subr.mxu1 %v17127_v14  ;;  %v2271_v6 = vmul.f32 %v14404_v5, %v15253_v20 }
 0x5dc   :  { %v3042_v7 = vpop.permute.xlu0 %3041  ;;  %13508 = vmatmul.mubr.msk.f32.vlgmr.msra.gmra.mxu1 %vm239_vm2, %v2271_v6 }
 0x5dd   :  { %v14406_v8 = vpop.eup %14405  ;;  %13516 = vmatpush3.msra.mxu1 %v2582_v38  ;;  %13517 = vmatprep.mubr.msk.f32.mxu1 %vm14785_vm1, %v17127_v14 }
 0x5de   :  { %v14408_v9 = vpop.eup %14407  ;;  %13525 = vmatprep.subr.mxu1 %v17127_v14  ;;  %v2273_v11 = vmul.f32 %v14406_v8, %v15258_v24 }
 0x5df   :  { %v2272_v12 = vmul.f32 %v14408_v9, %v15260_v25  ;;  %v3278_v25 = vpop.permute.xlu1 %3277 }
 0x5e0   :  { %13518 = vmatmul.mubr.msk.f32.vlgmr.msra.gmra.mxu1 %vm239_vm2, %v2273_v11  ;;  %v3200_v16 = vpop.permute.xlu0 %3199 }
 0x5e1   :  { %v14410_v15 = vpop.eup %14409  ;;  %13513 = vmatmul.mubr.msk.f32.vlgmr.msra.gmra.mxu0 %vm239_vm2, %v2272_v12  ;;  %13526 = vmatpush3.msra.mxu1 %v2734_v39 }
 0x5e2   :  { %v14412_v18 = vpop.eup %14411  ;;  %13521 = vmatpush3.msra.mxu0 %v2658_v49  ;;  %13522 = vmatprep.mubr.msk.f32.mxu0 %vm14785_vm1, %v17127_v14  ;;  %v2275_v20 = vmul.f32 %v14410_v15, %v15266_v32 }
 0x5e3   :  { %13527 = vmatprep.mubr.msk.f32.mxu1 %vm14785_vm1, %v17127_v14  ;;  %13530 = vmatprep.subr.mxu0 %v17127_v14  ;;  %v2274_v22 = vmul.f32 %v14412_v18, %v15268_v33  ;;  %v3276_v32 = vpop.permute.xlu1 %3275 }
 0x5e4   :  { %13535 = vmatprep.subr.mxu1 %v17127_v14  ;;  %13528 = vmatmul.mubr.msk.f32.vlgmr.msra.gmra.mxu1 %vm239_vm2, %v2275_v20  ;;  %v3198_v27 = vpop.permute.xlu0 %3197 }
 0x5e5   :  { %13523 = vmatmul.mubr.msk.f32.vlgmr.msra.gmra.mxu0 %vm239_vm2, %v2274_v22  ;;  %13536 = vmatpush3.xpose.msk.msra.mxu1 %vm239_vm2, %v15296_v40 }
 0x5e6   :  { %v14414_v24 = vpop.eup %14413  ;;  %13531 = vmatpush3.msra.mxu0 %v2810_v51  ;;  %13532 = vmatprep.mubr.msk.f32.mxu0 %vm14785_vm1, %v17127_v14 }
 0x5e7   :  { %13537 = vmatprep.mubr.msk.f32.mxu1 %vm14785_vm1, %v17127_v14  ;;  %13540 = vmatprep.subr.mxu0 %v17127_v14  ;;  %v2276_v29 = vmul.f32 %v14414_v24, %v15274_v36  ;;  %v3434_v34 = vpop.permute.xlu1 %3433 }
 0x5e8   :  { %13545 = vmatprep.subr.mxu1 %v17127_v14  ;;  %13538 = vmatmul.mubr.msk.f32.vlgmr.msra.gmra.mxu1 %vm239_vm2, %v15300_v41  ;;  %v3356_v33 = vpop.permute.xlu0 %3355 }
 0x5e9   :  { %13533 = vmatmul.mubr.msk.f32.vlgmr.msra.gmra.mxu0 %vm239_vm2, %v2276_v29  ;;  %13546 = vmatpush3.xpose.msk.msra.mxu1 %vm239_vm2, %v15302_v42 }
 0x5ea   :  { %13541 = vmatpush3.xpose.msk.msra.mxu0 %vm239_vm2, %v15309_v53  ;;  %13542 = vmatprep.mubr.msk.f32.mxu0 %vm14785_vm1, %v17127_v14 }
 0x5eb   :  { %13547 = vmatprep.mubr.msk.f32.mxu1 %vm14785_vm1, %v17127_v14  ;;  %13550 = vmatprep.subr.mxu0 %v17127_v14  ;;  %v3432_v36 = vpop.permute.xlu1 %3431 }
 0x5ec   :  { %13555 = vmatprep.subr.mxu1 %v17127_v14  ;;  %13548 = vmatmul.mubr.msk.f32.vlgmr.msra.gmra.mxu1 %vm239_vm2, %v3042_v7  ;;  %v3354_v35 = vpop.permute.xlu0 %3353 }
 0x5ed   :  { %13543 = vmatmul.mubr.msk.f32.vlgmr.msra.gmra.mxu0 %vm239_vm2, %v15311_v55  ;;  %13556 = vmatpush3.xpose.msk.msra.mxu1 %vm239_vm2, %v3200_v16 }
 0x5ee   :  { %13551 = vmatpush3.xpose.msk.msra.mxu0 %vm239_vm2, %v15313_v57  ;;  %13552 = vmatprep.mubr.msk.f32.mxu0 %vm14785_vm1, %v17127_v14 }
 0x5ef   :  { %13557 = vmatprep.mubr.msk.f32.mxu1 %vm14785_vm1, %v17127_v14  ;;  %13560 = vmatprep.subr.mxu0 %v17127_v14 }
 0x5f0   :  { %13565 = vmatprep.subr.mxu1 %v17127_v14  ;;  %13558 = vmatmul.mubr.msk.f32.vlgmr.msra.gmra.mxu1 %vm239_vm2, %v3198_v27 }
 0x5f1   :  { %13553 = vmatmul.mubr.msk.f32.vlgmr.msra.gmra.mxu0 %vm239_vm2, %v3120_v13  ;;  %13566 = vmatpush3.xpose.msk.msra.mxu1 %vm239_vm2, %v3356_v33 }
 0x5f2   :  { %13561 = vmatpush3.xpose.msk.msra.mxu0 %vm239_vm2, %v3278_v25  ;;  %13562 = vmatprep.mubr.msk.f32.mxu0 %vm14785_vm1, %v17127_v14 }
 0x5f3   :  { %13567 = vmatprep.mubr.msk.f32.mxu1 %vm14785_vm1, %v17127_v14  ;;  %13570 = vmatprep.subr.mxu0 %v17127_v14 }
 0x5f4   :  { %13568 = vmatmul.mubr.msk.f32.vlgmr.msra.gmra.mxu1 %vm239_vm2, %v3354_v35  ;;  %13575 = vmatprep.subr.mxu1 %v17127_v14 }
 0x5f5   :  { %13563 = vmatmul.mubr.msk.f32.vlgmr.msra.gmra.mxu0 %vm239_vm2, %v3276_v32  ;;  %13577 = vmatprep.mubr.msk.f32.mxu1 %vm14785_vm1, %v17127_v14 }
 0x5f6   :  { %13571 = vmatpush3.xpose.msk.msra.mxu0 %vm239_vm2, %v3434_v34  ;;  %13572 = vmatprep.mubr.msk.f32.mxu0 %vm14785_vm1, %v17127_v14 }
 0x5f7   :  { %13580 = vmatprep.subr.mxu0 %v17127_v14 }
 0x5f9   :  { %13573 = vmatmul.mubr.msk.f32.vlgmr.msra.gmra.mxu0 %vm239_vm2, %v3432_v36 }
 0x5fa   :  { %13582 = vmatprep.mubr.msk.f32.mxu0 %vm14785_vm1, %v17127_v14 }
 0x654   :  { %v15394_v37 = vpop.f32.mrf.mxu0 }
 0x656   :  { %v13504_v38 = vpop.f32.mrf.mxu0 }
 0x698   :  { %v15396_v39 = vpop.f32.mrf.mxu1 }
 0x69a   :  { %v13499_v40 = vpop.f32.mrf.mxu1 }
 0x69c   :  { %v15398_v41 = vpop.f32.mrf.mxu1 }
 0x69e   :  { %v13509_v42 = vpop.f32.mrf.mxu1 }
 0x6a0   :  { %v15400_v43 = vpop.f32.mrf.mxu1 }
 0x6a1   :  { %v15402_v44 = vpop.f32.mrf.mxu0 }
 0x6a2   :  { %v14200_v45 = vpack.i.bf16 %v15402_v44, %v15398_v41  ;;  %v13519_v47 = vpop.f32.mrf.mxu1 }
 0x6a3   :  { %v13514_v48 = vpop.f32.mrf.mxu0 }
 0x6a4   :  { %v15406_v49 = vpop.f32.mrf.mxu1 }
 0x6a5   :  { %v15408_v51 = vpop.f32.mrf.mxu0 }
 0x6a6   :  { %v14215_v53 = vpack.i.bf16 %v15408_v51, %v15400_v43  ;;  %v13529_v55 = vpop.f32.mrf.mxu1 }
 0x6a7   :  { %v13524_v57 = vpop.f32.mrf.mxu0 }
 0x6a8   :  { %v2959_v60 = vpop.f32.mrf.mxu1 }
 0x6a9   :  { %v15412_v46 = vpop.f32.mrf.mxu0  ;;  %v3509_v61 = vmul.f32 0.35355338, %v2959_v60 }
 0x6aa   :  { %v14220_v63 = vpack.i.bf16 %v15412_v46, %v15406_v49  ;;  %v13539_v0 = vpop.f32.mrf.mxu1 }
 0x6ab   :  { %v13534_v1 = vpop.f32.mrf.mxu0  ;;  %v3517_v2 = vsel %vm239_vm2, %v3509_v61, -inf }
 0x6ac   :  { %3518 = vmax.xlane.f32.xlu0 %v3517_v2  ;;  %v3115_v3 = vpop.f32.mrf.mxu1 }
 0x6ad   :  { %v3037_v4 = vpop.f32.mrf.mxu0  ;;  %v3511_v5 = vmul.f32 0.35355338, %v3115_v3 }
 0x6ae   :  { %v3510_v6 = vmul.f32 0.35355338, %v3037_v4  ;;  %v13549_v7 = vpop.f32.mrf.mxu1 }
 0x6af   :  { %v13544_v8 = vpop.f32.mrf.mxu0  ;;  %v3523_v9 = vsel %vm239_vm2, %v3511_v5, -inf }
 0x6b0   :  { %v3520_v11 = vsel %vm239_vm2, %v3510_v6, -inf  ;;  %3524 = vmax.xlane.f32.xlu0 %v3523_v9  ;;  %v3271_v12 = vpop.f32.mrf.mxu1 }
 0x6b1   :  { %3521 = vmax.xlane.f32.xlu1 %v3520_v11  ;;  %v3193_v13 = vpop.f32.mrf.mxu0  ;;  %v3513_v15 = vmul.f32 0.35355338, %v3271_v12 }
 0x6b2   :  { %v3512_v16 = vmul.f32 0.35355338, %v3193_v13  ;;  %v13559_v18 = vpop.f32.mrf.mxu1 }
 0x6b3   :  { %v13554_v20 = vpop.f32.mrf.mxu0  ;;  %v3529_v22 = vsel %vm239_vm2, %v3513_v15, -inf }
 0x6b4   :  { %v3526_v24 = vsel %vm239_vm2, %v3512_v16, -inf  ;;  %v3427_v25 = vpop.f32.mrf.mxu1 }
 0x6b5   :  { %v3349_v27 = vpop.f32.mrf.mxu0  ;;  %3527 = vmax.xlane.f32.xlu0 %v3526_v24  ;;  %3530 = vmax.xlane.f32.xlu1 %v3529_v22  ;;  %v3515_v29 = vmul.f32 0.35355338, %v3427_v25 }
 0x6b6   :  { %v3514_v32 = vmul.f32 0.35355338, %v3349_v27  ;;  %v13569_v33 = vpop.f32.mrf.mxu1 }
 0x6b7   :  { %v13564_v34 = vpop.f32.mrf.mxu0  ;;  %v3535_v35 = vsel %vm239_vm2, %v3515_v29, -inf }
 0x6b8   :  { %v3532_v36 = vsel %vm239_vm2, %v3514_v32, -inf }
 0x6b9   :  { %v3505_v38 = vpop.f32.mrf.mxu0  ;;  %3533 = vmax.xlane.f32.xlu0 %v3532_v36  ;;  %3536 = vmax.xlane.f32.xlu1 %v3535_v35 }
 0x6ba   :  { %v3516_v40 = vmul.f32 0.35355338, %v3505_v38 }
 0x6bb   :  { %v13574_v42 = vpop.f32.mrf.mxu0 }
 0x6bc   :  { %v3538_v47 = vsel %vm239_vm2, %v3516_v40, -inf }
 0x6bd   :  { %3539 = vmax.xlane.f32.xlu0 %v3538_v47 }
 0x6ca   :  { %3605 = vrot.lane.b32.xlu1 %v14924_v19, %s14792_s23 }
 0x6ce   :  { %3757 = vrot.lane.b32.xlu1 %v14922_v17, %s14792_s23 }
 0x6d2   :  { %3833 = vrot.lane.b32.xlu1 %v14928_v21, %s14792_s23 }
 0x6d3   :  { %3681 = vrot.lane.b32.xlu0 %v14932_v23, %s14792_s23 }
 0x6d6   :  { %3985 = vrot.lane.b32.xlu1 %v14944_v30, %s14792_s23 }
 0x6d7   :  { %3909 = vrot.lane.b32.xlu0 %v14938_v26, %s14792_s23 }
 0x6da   :  { %4137 = vrot.lane.b32.xlu1 %v14950_v31, %s14792_s23 }
 0x6db   :  { %4061 = vrot.lane.b32.xlu0 %v14940_v28, %s14792_s23 }
 0x6de   :  { %4293 = vrot.lane.b32.xlu1 %v14932_v23, %s14793_s24 }
 0x6df   :  { %4215 = vrot.lane.b32.xlu0 %v14924_v19, %s14793_s24 }
 0x6e2   :  { %4291 = vrot.lane.b32.xlu1 %v14932_v23, %s14794_s26 }
 0x6e3   :  { %4213 = vrot.lane.b32.xlu0 %v14924_v19, %s14794_s26 }
 0x6e6   :  { %4449 = vrot.lane.b32.xlu1 %v14928_v21, %s14793_s24 }
 0x6e7   :  { %4371 = vrot.lane.b32.xlu0 %v14922_v17, %s14793_s24 }
 0x735   :  { %v3519_v48 = vpop.xlane.xlu0 %3518 }
 0x736   :  { %v3541_v55 = vsub.f32 %v3509_v61, %v3519_v48 }
 0x738   :  { %v3549_v57 = vmul.f32 1.442695, %v3541_v55 }
 0x739   :  { %v3525_v60 = vpop.xlane.xlu0 %3524 }
 0x73a   :  { %14415 = vpow2.f32 %v3549_v57  ;;  %v3522_v0 = vpop.xlane.xlu1 %3521  ;;  %v3543_v1 = vsub.f32 %v3511_v5, %v3525_v60 }
 0x73b   :  { %v3542_v2 = vsub.f32 %v3510_v6, %v3522_v0 }
 0x73c   :  { %v3553_v3 = vmul.f32 1.442695, %v3543_v1 }
 0x73d   :  { %v3551_v4 = vmul.f32 1.442695, %v3542_v2 }
 0x73e   :  { %14417 = vpow2.f32 %v3553_v3  ;;  %v3531_v7 = vpop.xlane.xlu1 %3530  ;;  %v3528_v8 = vpop.xlane.xlu0 %3527 }
 0x73f   :  { %14419 = vpow2.f32 %v3551_v4  ;;  %v3545_v9 = vsub.f32 %v3513_v15, %v3531_v7  ;;  %v3544_v11 = vsub.f32 %v3512_v16, %v3528_v8 }
 0x741   :  { %v3557_v12 = vmul.f32 1.442695, %v3545_v9  ;;  %v3555_v13 = vmul.f32 1.442695, %v3544_v11 }
 0x742   :  { %v3537_v18 = vpop.xlane.xlu1 %3536  ;;  %v3534_v20 = vpop.xlane.xlu0 %3533 }
 0x743   :  { %14421 = vpow2.f32 %v3557_v12  ;;  %v3547_v61 = vsub.f32 %v3515_v29, %v3537_v18  ;;  %v3546_v22 = vsub.f32 %v3514_v32, %v3534_v20 }
 0x744   :  { %14423 = vpow2.f32 %v3555_v13 }
 0x745   :  { %v3561_v24 = vmul.f32 1.442695, %v3547_v61  ;;  %v3559_v25 = vmul.f32 1.442695, %v3546_v22 }
 0x746   :  { %v3606_v5 = vpop.permute.xlu1 %3605  ;;  %v3540_v6 = vpop.xlane.xlu0 %3539 }
 0x747   :  { %v15452_v27 = vpop.eup %14415  ;;  %14425 = vpow2.f32 %v3561_v24  ;;  %v3548_v33 = vsub.f32 %v3516_v40, %v3540_v6  ;;  %13576 = vmatpush3.msra.mxu1 %v3606_v5 }
 0x748   :  { %14427 = vpow2.f32 %v3559_v25  ;;  %v3565_v15 = vsel %vm239_vm2, %v15452_v27, 0.0  ;;  %13585 = vmatprep.subr.mxu1 %v17127_v14 }
 0x749   :  { %v3563_v16 = vmul.f32 1.442695, %v3548_v33  ;;  %3566 = vadd.xlane.f32.xlu1 %v3565_v15 }
 0x74a   :  { %v3682_v29 = vpop.permute.xlu0 %3681  ;;  %v3758_v2 = vpop.permute.xlu1 %3757 }
 0x74b   :  { %v15457_v32 = vpop.eup %14417  ;;  %14429 = vpow2.f32 %v3563_v16  ;;  %13581 = vmatpush3.msra.mxu0 %v3682_v29 }
 0x74c   :  { %v15459_v34 = vpop.eup %14419  ;;  %v3571_v35 = vsel %vm239_vm2, %v15457_v32, 0.0  ;;  %13590 = vmatprep.subr.mxu0 %v17127_v14 }
 0x74d   :  { %v3568_v36 = vsel %vm239_vm2, %v15459_v34, 0.0  ;;  %3572 = vadd.xlane.f32.xlu1 %v3571_v35 }
 0x74e   :  { %3569 = vadd.xlane.f32.xlu0 %v3568_v36  ;;  %v3834_v3 = vpop.permute.xlu1 %3833  ;;  %v3910_v7 = vpop.permute.xlu0 %3909 }
 0x750   :  { %v15466_v38 = vpop.eup %14421 }
 0x751   :  { %v15468_v40 = vpop.eup %14423  ;;  %v3577_v42 = vsel %vm239_vm2, %v15466_v38, 0.0 }
 0x752   :  { %3578 = vadd.xlane.f32.xlu1 %v3577_v42  ;;  %v3574_v47 = vsel %vm239_vm2, %v15468_v40, 0.0  ;;  %v3986_v4 = vpop.permute.xlu1 %3985  ;;  %v4062_v9 = vpop.permute.xlu0 %4061 }
 0x753   :  { %3575 = vadd.xlane.f32.xlu0 %v3574_v47 }
 0x754   :  { %v15474_v48 = vpop.eup %14425 }
 0x755   :  { %v15476_v55 = vpop.eup %14427  ;;  %v3583_v57 = vsel %vm239_vm2, %v15474_v48, 0.0 }
 0x756   :  { %3584 = vadd.xlane.f32.xlu1 %v3583_v57  ;;  %v3580_v60 = vsel %vm239_vm2, %v15476_v55, 0.0  ;;  %v15506_v8 = vpop.permute.xlu1 %4137  ;;  %v4216_v12 = vpop.permute.xlu0 %4215 }
 0x757   :  { %3581 = vadd.xlane.f32.xlu0 %v3580_v60 }
 0x758   :  { %v15482_v0 = vpop.eup %14429 }
 0x759   :  { %v3586_v1 = vsel %vm239_vm2, %v15482_v0, 0.0 }
 0x75a   :  { %v15508_v11 = vpop.permute.xlu1 %4293  ;;  %v15512_v18 = vpop.permute.xlu0 %4213 }
 0x75b   :  { %3587 = vadd.xlane.f32.xlu0 %v3586_v1 }
 0x75e   :  { %v15510_v13 = vpop.permute.xlu1 %4291  ;;  %v15516_v22 = vpop.permute.xlu0 %4371 }
 0x762   :  { %v15514_v20 = vpop.permute.xlu1 %4449 }
 0x767   :  { %4447 = vrot.lane.b32.xlu1 %v14928_v21, %s14794_s26 }
 0x76b   :  { %4605 = vrot.lane.b32.xlu1 %v14944_v30, %s14793_s24 }
 0x76f   :  { %4603 = vrot.lane.b32.xlu1 %v14944_v30, %s14794_s26 }
 0x771   :  { %4369 = vrot.lane.b32.xlu0 %v14922_v17, %s14794_s26 }
 0x773   :  { %4761 = vrot.lane.b32.xlu1 %v14950_v31, %s14793_s24 }
 0x775   :  { %4527 = vrot.lane.b32.xlu0 %v14938_v26, %s14793_s24 }
 0x777   :  { %4759 = vrot.lane.b32.xlu1 %v14950_v31, %s14794_s26 }
 0x779   :  { %4525 = vrot.lane.b32.xlu0 %v14938_v26, %s14794_s26 }
 0x77d   :  { %4683 = vrot.lane.b32.xlu0 %v14940_v28, %s14793_s24 }
 0x781   :  { %4681 = vrot.lane.b32.xlu0 %v14940_v28, %s14794_s26 }
 0x7d2   :  { %v3567_v61 = vpop.xlane.xlu1 %3566 }
 0x7d3   :  { %14431 = vrcp.f32 %v3567_v61 }
 0x7d6   :  { %v3573_v24 = vpop.xlane.xlu1 %3572 }
 0x7d7   :  { %14433 = vrcp.f32 %v3573_v24  ;;  %v3570_v25 = vpop.xlane.xlu0 %3569 }
 0x7d8   :  { %14435 = vrcp.f32 %v3570_v25 }
 0x7db   :  { %v3579_v5 = vpop.xlane.xlu1 %3578 }
 0x7dc   :  { %14437 = vrcp.f32 %v3579_v5  ;;  %v3576_v6 = vpop.xlane.xlu0 %3575 }
 0x7dd   :  { %14439 = vrcp.f32 %v3576_v6 }
 0x7df   :  { %v3585_v33 = vpop.xlane.xlu1 %3584 }
 0x7e0   :  { %v14432_v15 = vpop.eup %14431  ;;  %14441 = vrcp.f32 %v3585_v33  ;;  %v3582_v16 = vpop.xlane.xlu0 %3581 }
 0x7e1   :  { %14443 = vrcp.f32 %v3582_v16  ;;  %v3597_v29 = vmul.f32 %v14432_v15, %v15452_v27 }
 0x7e3   :  { %13578 = vmatmul.mubr.msk.f32.vlgmr.msra.gmra.mxu1 %vm239_vm2, %v3597_v29 }
 0x7e4   :  { %v14434_v35 = vpop.eup %14433  ;;  %v3588_v36 = vpop.xlane.xlu0 %3587  ;;  %13586 = vmatpush3.msra.mxu1 %v3758_v2  ;;  %13587 = vmatprep.mubr.msk.f32.mxu1 %vm14785_vm1, %v17127_v14 }
 0x7e5   :  { %v14436_v42 = vpop.eup %14435  ;;  %14445 = vrcp.f32 %v3588_v36  ;;  %13595 = vmatprep.subr.mxu1 %v17127_v14  ;;  %v3599_v47 = vmul.f32 %v14434_v35, %v15457_v32  ;;  %v4448_v2 = vpop.permute.xlu1 %4447 }
 0x7e6   :  { %v3598_v57 = vmul.f32 %v14436_v42, %v15459_v34 }
 0x7e7   :  { %13588 = vmatmul.mubr.msk.f32.vlgmr.msra.gmra.mxu1 %vm239_vm2, %v3599_v47 }
 0x7e8   :  { %v4370_v60 = vpop.permute.xlu0 %4369  ;;  %13583 = vmatmul.mubr.msk.f32.vlgmr.msra.gmra.mxu0 %vm239_vm2, %v3598_v57  ;;  %13596 = vmatpush3.msra.mxu1 %v3910_v7 }
 0x7e9   :  { %v14438_v27 = vpop.eup %14437  ;;  %13591 = vmatpush3.msra.mxu0 %v3834_v3  ;;  %13597 = vmatprep.mubr.msk.f32.mxu1 %vm14785_vm1, %v17127_v14 }
 0x7ea   :  { %v14440_v1 = vpop.eup %14439  ;;  %13592 = vmatprep.mubr.msk.f32.mxu0 %vm14785_vm1, %v17127_v14  ;;  %13600 = vmatprep.subr.mxu0 %v17127_v14  ;;  %v3601_v32 = vmul.f32 %v14438_v27, %v15466_v38 }
 0x7eb   :  { %13605 = vmatprep.subr.mxu1 %v17127_v14  ;;  %v3600_v34 = vmul.f32 %v14440_v1, %v15468_v40 }
 0x7ec   :  { %13598 = vmatmul.mubr.msk.f32.vlgmr.msra.gmra.mxu1 %vm239_vm2, %v3601_v32  ;;  %v4528_v3 = vpop.permute.xlu0 %4527 }
 0x7ed   :  { %v14442_v7 = vpop.eup %14441  ;;  %13593 = vmatmul.mubr.msk.f32.vlgmr.msra.gmra.mxu0 %vm239_vm2, %v3600_v34  ;;  %13606 = vmatpush3.msra.mxu1 %v4062_v9 }
 0x7ee   :  { %v14444_v61 = vpop.eup %14443  ;;  %13601 = vmatpush3.msra.mxu0 %v3986_v4  ;;  %13602 = vmatprep.mubr.msk.f32.mxu0 %vm14785_vm1, %v17127_v14  ;;  %v3603_v24 = vmul.f32 %v14442_v7, %v15474_v48  ;;  %v4606_v4 = vpop.permute.xlu1 %4605 }
 0x7ef   :  { %13607 = vmatprep.mubr.msk.f32.mxu1 %vm14785_vm1, %v17127_v14  ;;  %13610 = vmatprep.subr.mxu0 %v17127_v14  ;;  %v3602_v38 = vmul.f32 %v14444_v61, %v15476_v55 }
 0x7f0   :  { %13615 = vmatprep.subr.mxu1 %v17127_v14  ;;  %13608 = vmatmul.mubr.msk.f32.vlgmr.msra.gmra.mxu1 %vm239_vm2, %v3603_v24  ;;  %v4526_v48 = vpop.permute.xlu0 %4525 }
 0x7f1   :  { %13603 = vmatmul.mubr.msk.f32.vlgmr.msra.gmra.mxu0 %vm239_vm2, %v3602_v38  ;;  %13616 = vmatpush3.xpose.msk.msra.mxu1 %vm239_vm2, %v4216_v12 }
 0x7f2   :  { %v14446_v40 = vpop.eup %14445  ;;  %13611 = vmatpush3.msra.mxu0 %v15506_v8  ;;  %13612 = vmatprep.mubr.msk.f32.mxu0 %vm14785_vm1, %v17127_v14 }
 0x7f3   :  { %13617 = vmatprep.mubr.msk.f32.mxu1 %vm14785_vm1, %v17127_v14  ;;  %13620 = vmatprep.subr.mxu0 %v17127_v14  ;;  %v3604_v55 = vmul.f32 %v14446_v40, %v15482_v0  ;;  %v4604_v0 = vpop.permute.xlu1 %4603 }
 0x7f4   :  { %13625 = vmatprep.subr.mxu1 %v17127_v14  ;;  %13618 = vmatmul.mubr.msk.f32.vlgmr.msra.gmra.mxu1 %vm239_vm2, %v15512_v18  ;;  %v4684_v8 = vpop.permute.xlu0 %4683 }
 0x7f5   :  { %13613 = vmatmul.mubr.msk.f32.vlgmr.msra.gmra.mxu0 %vm239_vm2, %v3604_v55  ;;  %13626 = vmatpush3.xpose.msk.msra.mxu1 %vm239_vm2, %v15516_v22 }
 0x7f6   :  { %13621 = vmatpush3.xpose.msk.msra.mxu0 %vm239_vm2, %v15508_v11  ;;  %13622 = vmatprep.mubr.msk.f32.mxu0 %vm14785_vm1, %v17127_v14 }
 0x7f7   :  { %13627 = vmatprep.mubr.msk.f32.mxu1 %vm14785_vm1, %v17127_v14  ;;  %13630 = vmatprep.subr.mxu0 %v17127_v14  ;;  %v4762_v9 = vpop.permute.xlu1 %4761 }
 0x7f8   :  { %13635 = vmatprep.subr.mxu1 %v17127_v14  ;;  %13628 = vmatmul.mubr.msk.f32.vlgmr.msra.gmra.mxu1 %vm239_vm2, %v4370_v60  ;;  %v4682_v11 = vpop.permute.xlu0 %4681 }
 0x7f9   :  { %13623 = vmatmul.mubr.msk.f32.vlgmr.msra.gmra.mxu0 %vm239_vm2, %v15510_v13  ;;  %13636 = vmatpush3.xpose.msk.msra.mxu1 %vm239_vm2, %v4528_v3 }
 0x7fa   :  { %13631 = vmatpush3.xpose.msk.msra.mxu0 %vm239_vm2, %v15514_v20  ;;  %13632 = vmatprep.mubr.msk.f32.mxu0 %vm14785_vm1, %v17127_v14 }
 0x7fb   :  { %13637 = vmatprep.mubr.msk.f32.mxu1 %vm14785_vm1, %v17127_v14  ;;  %13640 = vmatprep.subr.mxu0 %v17127_v14  ;;  %v4760_v12 = vpop.permute.xlu1 %4759 }
 0x7fc   :  { %13645 = vmatprep.subr.mxu1 %v17127_v14  ;;  %13638 = vmatmul.mubr.msk.f32.vlgmr.msra.gmra.mxu1 %vm239_vm2, %v4526_v48 }
 0x7fd   :  { %13633 = vmatmul.mubr.msk.f32.vlgmr.msra.gmra.mxu0 %vm239_vm2, %v4448_v2  ;;  %13646 = vmatpush3.xpose.msk.msra.mxu1 %vm239_vm2, %v4684_v8 }
 0x7fe   :  { %13641 = vmatpush3.xpose.msk.msra.mxu0 %vm239_vm2, %v4606_v4  ;;  %13642 = vmatprep.mubr.msk.f32.mxu0 %vm14785_vm1, %v17127_v14 }
 0x7ff   :  { %13647 = vmatprep.mubr.msk.f32.mxu1 %vm14785_vm1, %v17127_v14  ;;  %13650 = vmatprep.subr.mxu0 %v17127_v14 }
 0x800   :  { %13648 = vmatmul.mubr.msk.f32.vlgmr.msra.gmra.mxu1 %vm239_vm2, %v4682_v11  ;;  %13655 = vmatprep.subr.mxu1 %v17127_v14 }
 0x801   :  { %13643 = vmatmul.mubr.msk.f32.vlgmr.msra.gmra.mxu0 %vm239_vm2, %v4604_v0  ;;  %13657 = vmatprep.mubr.msk.f32.mxu1 %vm14785_vm1, %v17127_v14 }
 0x802   :  { %13651 = vmatpush3.xpose.msk.msra.mxu0 %vm239_vm2, %v4762_v9  ;;  %13652 = vmatprep.mubr.msk.f32.mxu0 %vm14785_vm1, %v17127_v14 }
 0x803   :  { %13660 = vmatprep.subr.mxu0 %v17127_v14 }
 0x805   :  { %13653 = vmatmul.mubr.msk.f32.vlgmr.msra.gmra.mxu0 %vm239_vm2, %v4760_v12 }
 0x806   :  { %13662 = vmatprep.mubr.msk.f32.mxu0 %vm14785_vm1, %v17127_v14 }
 0x8a3   :  { %v15602_v13 = vpop.f32.mrf.mxu1 }
 0x8a5   :  { %v13579_v18 = vpop.f32.mrf.mxu1 }
 0x8a7   :  { %v15604_v20 = vpop.f32.mrf.mxu1 }
 0x8a8   :  { %v15606_v22 = vpop.f32.mrf.mxu0 }
 0x8a9   :  { %v14205_v25 = vpack.i.bf16 %v15606_v22, %v15602_v13  ;;  %v13589_v5 = vpop.f32.mrf.mxu1 }
 0x8aa   :  { %v13584_v6 = vpop.f32.mrf.mxu0 }
 0x8ac   :  { %v15610_v33 = vpop.f32.mrf.mxu1 }
 0x8ad   :  { %v15612_v15 = vpop.f32.mrf.mxu0 }
 0x8ae   :  { %v14210_v16 = vpack.i.bf16 %v15612_v15, %v15604_v20  ;;  %v13599_v29 = vpop.f32.mrf.mxu1 }
 0x8af   :  { %v13594_v35 = vpop.f32.mrf.mxu0 }
 0x8b0   :  { %v15616_v36 = vpop.f32.mrf.mxu1 }
 0x8b1   :  { %v15618_v42 = vpop.f32.mrf.mxu0 }
 0x8b2   :  { %v14230_v47 = vpack.i.bf16 %v15618_v42, %v15610_v33  ;;  %v13609_v57 = vpop.f32.mrf.mxu1 }
 0x8b3   :  { %v13604_v60 = vpop.f32.mrf.mxu0 }
 0x8b4   :  { %v4287_v27 = vpop.f32.mrf.mxu1 }
 0x8b5   :  { %v15622_v1 = vpop.f32.mrf.mxu0  ;;  %v4837_v32 = vmul.f32 0.35355338, %v4287_v27 }
 0x8b6   :  { %v14240_v34 = vpack.i.bf16 %v15622_v1, %v15616_v36  ;;  %v13619_v2 = vpop.f32.mrf.mxu1 }
 0x8b7   :  { %v13614_v7 = vpop.f32.mrf.mxu0  ;;  %v4845_v3 = vsel %vm239_vm2, %v4837_v32, -inf }
 0x8b8   :  { %4846 = vmax.xlane.f32.xlu0 %v4845_v3  ;;  %v4443_v61 = vpop.f32.mrf.mxu1 }
 0x8b9   :  { %v4365_v24 = vpop.f32.mrf.mxu0  ;;  %v4839_v38 = vmul.f32 0.35355338, %v4443_v61 }
 0x8ba   :  { %v4838_v40 = vmul.f32 0.35355338, %v4365_v24  ;;  %v13629_v4 = vpop.f32.mrf.mxu1 }
 0x8bb   :  { %v13624_v48 = vpop.f32.mrf.mxu0  ;;  %v4851_v55 = vsel %vm239_vm2, %v4839_v38, -inf }
 0x8bc   :  { %v4848_v0 = vsel %vm239_vm2, %v4838_v40, -inf  ;;  %4852 = vmax.xlane.f32.xlu0 %v4851_v55  ;;  %v4599_v8 = vpop.f32.mrf.mxu1 }
 0x8bd   :  { %4849 = vmax.xlane.f32.xlu1 %v4848_v0  ;;  %v4521_v9 = vpop.f32.mrf.mxu0  ;;  %v4841_v11 = vmul.f32 0.35355338, %v4599_v8 }
 0x8be   :  { %v4840_v12 = vmul.f32 0.35355338, %v4521_v9  ;;  %v13639_v18 = vpop.f32.mrf.mxu1 }
 0x8bf   :  { %v13634_v5 = vpop.f32.mrf.mxu0  ;;  %v4857_v6 = vsel %vm239_vm2, %v4841_v11, -inf }
 0x8c0   :  { %v4854_v29 = vsel %vm239_vm2, %v4840_v12, -inf  ;;  %v4755_v35 = vpop.f32.mrf.mxu1 }
 0x8c1   :  { %v4677_v57 = vpop.f32.mrf.mxu0  ;;  %4855 = vmax.xlane.f32.xlu0 %v4854_v29  ;;  %4858 = vmax.xlane.f32.xlu1 %v4857_v6  ;;  %v4843_v60 = vmul.f32 0.35355338, %v4755_v35 }
 0x8c2   :  { %v4842_v27 = vmul.f32 0.35355338, %v4677_v57  ;;  %v13649_v2 = vpop.f32.mrf.mxu1 }
 0x8c3   :  { %v13644_v7 = vpop.f32.mrf.mxu0  ;;  %v4863_v3 = vsel %vm239_vm2, %v4843_v60, -inf }
 0x8c4   :  { %v4860_v61 = vsel %vm239_vm2, %v4842_v27, -inf }
 0x8c5   :  { %v4833_v24 = vpop.f32.mrf.mxu0  ;;  %4861 = vmax.xlane.f32.xlu0 %v4860_v61  ;;  %4864 = vmax.xlane.f32.xlu1 %v4863_v3 }
 0x8c6   :  { %v4844_v4 = vmul.f32 0.35355338, %v4833_v24 }
 0x8c7   :  { %v13654_v48 = vpop.f32.mrf.mxu0 }
 0x8c8   :  { %v4866_v55 = vsel %vm239_vm2, %v4844_v4, -inf }
 0x8c9   :  { %4867 = vmax.xlane.f32.xlu0 %v4866_v55 }
 0x8d6   :  { %4933 = vrot.lane.b32.xlu1 %v14924_v19, %s14795_s8 }
 0x8da   :  { %5085 = vrot.lane.b32.xlu1 %v14922_v17, %s14795_s8 }
 0x8de   :  { %5161 = vrot.lane.b32.xlu1 %v14928_v21, %s14795_s8 }
 0x8df   :  { %5009 = vrot.lane.b32.xlu0 %v14932_v23, %s14795_s8 }
 0x8e2   :  { %5313 = vrot.lane.b32.xlu1 %v14944_v30, %s14795_s8 }
 0x8e3   :  { %5237 = vrot.lane.b32.xlu0 %v14938_v26, %s14795_s8 }
 0x941   :  { %v4847_v0 = vpop.xlane.xlu0 %4846 }
 0x942   :  { %v4869_v8 = vsub.f32 %v4837_v32, %v4847_v0 }
 0x944   :  { %v4877_v9 = vmul.f32 1.442695, %v4869_v8 }
 0x945   :  { %v4853_v18 = vpop.xlane.xlu0 %4852 }
 0x946   :  { %14447 = vpow2.f32 %v4877_v9  ;;  %v4850_v19 = vpop.xlane.xlu1 %4849  ;;  %v4871_v5 = vsub.f32 %v4839_v38, %v4853_v18 }
 0x947   :  { %v4870_v17 = vsub.f32 %v4838_v40, %v4850_v19 }
 0x948   :  { %v4881_v6 = vmul.f32 1.442695, %v4871_v5 }
 0x949   :  { %v4879_v29 = vmul.f32 1.442695, %v4870_v17 }
 0x94a   :  { %14449 = vpow2.f32 %v4881_v6  ;;  %v4859_v21 = vpop.xlane.xlu1 %4858  ;;  %v4856_v35 = vpop.xlane.xlu0 %4855 }
 0x94b   :  { %14451 = vpow2.f32 %v4879_v29  ;;  %v4873_v23 = vsub.f32 %v4841_v11, %v4859_v21  ;;  %v4872_v57 = vsub.f32 %v4840_v12, %v4856_v35 }
 0x94d   :  { %v4885_v30 = vmul.f32 1.442695, %v4873_v23  ;;  %v4883_v2 = vmul.f32 1.442695, %v4872_v57  ;;  %v14195_v57 = vpack.i.bf16 %v15394_v37, %v15396_v39 }
 0x94e   :  { %v4865_v7 = vpop.xlane.xlu1 %4864  ;;  %v4862_v26 = vpop.xlane.xlu0 %4861 }
 0x94f   :  { %14453 = vpow2.f32 %v4885_v30  ;;  %v4875_v32 = vsub.f32 %v4843_v60, %v4865_v7  ;;  %v4874_v3 = vsub.f32 %v4842_v27, %v4862_v26 }
 0x950   :  { %14455 = vpow2.f32 %v4883_v2 }
 0x951   :  { %v4889_v61 = vmul.f32 1.442695, %v4875_v32  ;;  %v4887_v24 = vmul.f32 1.442695, %v4874_v3 }
 0x952   :  { %v4934_v38 = vpop.permute.xlu1 %4933  ;;  %v4868_v40 = vpop.xlane.xlu0 %4867 }
 0x953   :  { %v15646_v48 = vpop.eup %14447  ;;  %14457 = vpow2.f32 %v4889_v61  ;;  %v4876_v55 = vsub.f32 %v4844_v4, %v4868_v40  ;;  %13656 = vmatpush3.msra.mxu1 %v4934_v38 }
 0x954   :  { %14459 = vpow2.f32 %v4887_v24  ;;  %v4893_v11 = vsel %vm239_vm2, %v15646_v48, 0.0  ;;  %13665 = vmatprep.subr.mxu1 %v17127_v14 }
 0x955   :  { %v4891_v12 = vmul.f32 1.442695, %v4876_v55  ;;  %4894 = vadd.xlane.f32.xlu1 %v4893_v11  ;;  %v14317_v55 = vld [vmem:[#allocation5 + $0x8] sm:$0xff]  }
 0x956   :  { %v5010_v60 = vpop.permute.xlu0 %5009 }
 0x957   :  { %v14450_v27 = vpop.eup %14449  ;;  %14461 = vpow2.f32 %v4891_v12  ;;  %13661 = vmatpush3.msra.mxu0 %v5010_v60  ;;  %v14318_v12 = vld [vmem:[#allocation5] sm:$0xff]  }
 0x958   :  { %v14452_v0 = vpop.eup %14451  ;;  %v4899_v8 = vsel %vm239_vm2, %v14450_v27, 0.0  ;;  %13670 = vmatprep.subr.mxu0 %v17127_v14 }
 0x959   :  { %v4896_v4 = vsel %vm239_vm2, %v14452_v0, 0.0  ;;  %4900 = vadd.xlane.f32.xlu1 %v4899_v8 }
 0x95a   :  { %4897 = vadd.xlane.f32.xlu0 %v4896_v4  ;;  %v5238_v41 = vpop.permute.xlu0 %5237 }
 0x95c   :  { %v15654_v9 = vpop.eup %14453 }
 0x95d   :  { %v15656_v18 = vpop.eup %14455  ;;  %v4905_v19 = vsel %vm239_vm2, %v15654_v9, 0.0 }
 0x95e   :  { %4906 = vadd.xlane.f32.xlu1 %v4905_v19  ;;  %v4902_v5 = vsel %vm239_vm2, %v15656_v18, 0.0 }
 0x95f   :  { %4903 = vadd.xlane.f32.xlu0 %v4902_v5 }
 0x960   :  { %v15662_v17 = vpop.eup %14457 }
 0x961   :  { %v15664_v6 = vpop.eup %14459  ;;  %v4911_v29 = vsel %vm239_vm2, %v15662_v17, 0.0 }
 0x962   :  { %4912 = vadd.xlane.f32.xlu1 %v4911_v29  ;;  %v4908_v21 = vsel %vm239_vm2, %v15664_v6, 0.0 }
 0x963   :  { %4909 = vadd.xlane.f32.xlu0 %v4908_v21 }
 0x964   :  { %v15670_v35 = vpop.eup %14461 }
 0x965   :  { %v4914_v23 = vsel %vm239_vm2, %v15670_v35, 0.0 }
 0x967   :  { %4915 = vadd.xlane.f32.xlu0 %v4914_v23 }
 0x973   :  { %5465 = vrot.lane.b32.xlu1 %v14950_v31, %s14795_s8 }
 0x977   :  { %14201 = vrot.lane.b32.xlu1 %v14200_v45, %s14796_s17 }
 0x97b   :  { %14211 = vrot.lane.b32.xlu1 %v14210_v16, %s14780_s25 }
 0x97d   :  { %5389 = vrot.lane.b32.xlu0 %v14940_v28, %s14795_s8  ;;  %v5086_v28 = vpop.permute.xlu1 %5085 }
 0x97f   :  { %14221 = vrot.lane.b32.xlu1 %v14220_v63, %s14796_s17 }
 0x981   :  { %14196 = vrot.lane.b32.xlu0 %v14195_v57, %s14796_s17  ;;  %v5162_v31 = vpop.permute.xlu1 %5161 }
 0x985   :  { %14206 = vrot.lane.b32.xlu0 %v14205_v25, %s14780_s25  ;;  %v5314_v37 = vpop.permute.xlu1 %5313 }
 0x989   :  { %14216 = vrot.lane.b32.xlu0 %v14215_v53, %s14796_s17 }
 0x9de   :  { %v4895_v39 = vpop.xlane.xlu1 %4894 }
 0x9df   :  { %14463 = vrcp.f32 %v4895_v39 }
 0x9e2   :  { %v4901_v44 = vpop.xlane.xlu1 %4900 }
 0x9e3   :  { %14465 = vrcp.f32 %v4901_v44  ;;  %v4898_v45 = vpop.xlane.xlu0 %4897 }
 0x9e4   :  { %14467 = vrcp.f32 %v4898_v45 }
 0x9e7   :  { %v4907_v49 = vpop.xlane.xlu1 %4906 }
 0x9e8   :  { %14469 = vrcp.f32 %v4907_v49  ;;  %v4904_v46 = vpop.xlane.xlu0 %4903 }
 0x9e9   :  { %14471 = vrcp.f32 %v4904_v46 }
 0x9eb   :  { %v4913_v63 = vpop.xlane.xlu1 %4912 }
 0x9ec   :  { %v14464_v13 = vpop.eup %14463  ;;  %14473 = vrcp.f32 %v4913_v63  ;;  %v4910_v20 = vpop.xlane.xlu0 %4909 }
 0x9ed   :  { %14475 = vrcp.f32 %v4910_v20  ;;  %v4925_v43 = vmul.f32 %v14464_v13, %v15646_v48 }
 0x9ef   :  { %13658 = vmatmul.mubr.msk.f32.vlgmr.msra.gmra.mxu1 %vm239_vm2, %v4925_v43  ;;  %v5466_v38 = vpop.permute.xlu1 %5465 }
 0x9f0   :  { %v14466_v51 = vpop.eup %14465  ;;  %v4916_v53 = vpop.xlane.xlu0 %4915  ;;  %13666 = vmatpush3.msra.mxu1 %v5086_v28  ;;  %13667 = vmatprep.mubr.msk.f32.mxu1 %vm14785_vm1, %v17127_v14 }
 0x9f1   :  { %v14468_v22 = vpop.eup %14467  ;;  %14477 = vrcp.f32 %v4916_v53  ;;  %13675 = vmatprep.subr.mxu1 %v17127_v14  ;;  %v4927_v25 = vmul.f32 %v14466_v51, %v14450_v27 }
 0x9f2   :  { %v4926_v15 = vmul.f32 %v14468_v22, %v14452_v0 }
 0x9f3   :  { %13668 = vmatmul.mubr.msk.f32.vlgmr.msra.gmra.mxu1 %vm239_vm2, %v4927_v25  ;;  %v14202_v42 = vpop.permute.xlu1 %14201 }
 0x9f4   :  { %13663 = vmatmul.mubr.msk.f32.vlgmr.msra.gmra.mxu0 %vm239_vm2, %v4926_v15  ;;  %13676 = vmatpush3.msra.mxu1 %v5238_v41  ;;  %v5390_v26 = vpop.permute.xlu0 %5389  ;;  %v14204_v63 = vunpack.i.h.bf16 %v14202_v42  ;;  %v14203_v13 = vunpack.i.l.bf16 %v14202_v42 }
 0x9f5   :  { %v14470_v16 = vpop.eup %14469  ;;  %13671 = vmatpush3.msra.mxu0 %v5162_v31  ;;  %13677 = vmatprep.mubr.msk.f32.mxu1 %vm14785_vm1, %v17127_v14 }
 0x9f6   :  { %v14472_v30 = vpop.eup %14471  ;;  %13672 = vmatprep.mubr.msk.f32.mxu0 %vm14785_vm1, %v17127_v14  ;;  %13680 = vmatprep.subr.mxu0 %v17127_v14  ;;  %v4929_v2 = vmul.f32 %v14470_v16, %v15654_v9 }
 0x9f7   :  { %13685 = vmatprep.subr.mxu1 %v17127_v14  ;;  %v4928_v7 = vmul.f32 %v14472_v30, %v15656_v18  ;;  %v14212_v39 = vpop.permute.xlu1 %14211 }
 0x9f8   :  { %13678 = vmatmul.mubr.msk.f32.vlgmr.msra.gmra.mxu1 %vm239_vm2, %v4929_v2  ;;  %v14197_v33 = vpop.permute.xlu0 %14196  ;;  %v14214_v25 = vunpack.i.h.bf16 %v14212_v39  ;;  %v14213_v15 = vunpack.i.l.bf16 %v14212_v39  ;;  %v14319_v39 = vld [vmem:[#allocation7 + $0x8] sm:$0xff]  }
 0x9f9   :  { %v14474_v32 = vpop.eup %14473  ;;  %13673 = vmatmul.mubr.msk.f32.vlgmr.msra.gmra.mxu0 %vm239_vm2, %v4928_v7  ;;  %13686 = vmatpush3.msra.mxu1 %v5390_v26  ;;  %v14199_v44 = vunpack.i.h.bf16 %v14197_v33  ;;  %v14198_v45 = vunpack.i.l.bf16 %v14197_v33 }
 0x9fa   :  { %v14476_v3 = vpop.eup %14475  ;;  %13681 = vmatpush3.msra.mxu0 %v5314_v37  ;;  %13682 = vmatprep.mubr.msk.f32.mxu0 %vm14785_vm1, %v17127_v14  ;;  %v4931_v61 = vmul.f32 %v14474_v32, %v15662_v17 }
 0x9fb   :  { %13687 = vmatprep.mubr.msk.f32.mxu1 %vm14785_vm1, %v17127_v14  ;;  %13690 = vmatprep.subr.mxu0 %v17127_v14  ;;  %v4930_v24 = vmul.f32 %v14476_v3, %v15664_v6  ;;  %v5638_v1 = vsel %vm239_vm2, %v15194_v52, %v14199_v44  ;;  %v14222_v20 = vpop.permute.xlu1 %14221  ;;  %v5640_v52 = vsel %vm239_vm2, %v15198_v56, %v14204_v63  ;;  %v14639_v63 = vld [vmem:[%s17112_s0] sm:$0xff] }
 0x9fc   :  { %13688 = vmatmul.mubr.msk.f32.vlgmr.msra.gmra.mxu1 %vm239_vm2, %v4931_v61  ;;  %13695 = vmatprep.subr.bf16.mxu1 %v14317_v55 }
 0x9fd   :  { %13683 = vmatmul.mubr.msk.f32.vlgmr.msra.gmra.mxu0 %vm239_vm2, %v4930_v24  ;;  %13696 = vmatpush3.bf16.msra.mxu1 %v14317_v55 }
 0x9fe   :  { %v14478_v40 = vpop.eup %14477  ;;  %13691 = vmatpush3.msra.mxu0 %v5466_v38  ;;  %13692 = vmatprep.mubr.msk.f32.mxu0 %vm14785_vm1, %v17127_v14 }
 0x9ff   :  { %v4932_v48 = vmul.f32 %v14478_v40, %v15670_v35  ;;  %13697 = vmatprep.subr.bf16.mxu1 %v14318_v12  ;;  %v5649_v40 = vsel %vm5645_vm3, %v5640_v52, %v14214_v25  ;;  %13707 = vmatprep.subr.bf16.mxu0 %v14319_v39 }
 0xa01   :  { %13693 = vmatmul.mubr.msk.f32.vlgmr.msra.gmra.mxu0 %vm239_vm2, %v4932_v48  ;;  %13698 = vmatpush3.bf16.msra.mxu1 %v14318_v12  ;;  %v14224_v12 = vunpack.i.h.bf16 %v14222_v20 }
 0xa02   :  { %13708 = vmatpush3.bf16.msra.mxu0 %v14319_v39 }
 0xaaf   :  { %v5005_v11 = vpop.f32.mrf.mxu1 }
 0xab1   :  { %v13659_v60 = vpop.f32.mrf.mxu1 }
 0xab2   :  { %v14223_v60 = vunpack.i.l.bf16 %v14222_v20 }
 0xab3   :  { %v5157_v27 = vpop.f32.mrf.mxu1 }
 0xab4   :  { %v5081_v0 = vpop.f32.mrf.mxu0 }
 0xab5   :  { %v14225_v8 = vpack.i.bf16 %v5081_v0, %v5005_v11  ;;  %v13669_v4 = vpop.f32.mrf.mxu1 }
 0xab6   :  { %v13664_v9 = vpop.f32.mrf.mxu0 }
 0xab7   :  { %14226 = vrot.lane.b32.xlu0 %v14225_v8, %s14797_s27 }
 0xab8   :  { %v5309_v18 = vpop.f32.mrf.mxu1 }
 0xab9   :  { %v5233_v19 = vpop.f32.mrf.mxu0 }
 0xaba   :  { %v14235_v5 = vpack.i.bf16 %v5233_v19, %v5157_v27  ;;  %v13679_v17 = vpop.f32.mrf.mxu1 }
 0xabb   :  { %v13674_v6 = vpop.f32.mrf.mxu0  ;;  %14231 = vrot.lane.b32.xlu0 %v14230_v47, %s14780_s25  ;;  %v14207_v47 = vpop.permute.xlu0 %14206 }
 0xabc   :  { %14236 = vrot.lane.b32.xlu1 %v14235_v5, %s14797_s27  ;;  %v5461_v29 = vpop.f32.mrf.mxu1  ;;  %v14209_v49 = vunpack.i.h.bf16 %v14207_v47  ;;  %v14208_v46 = vunpack.i.l.bf16 %v14207_v47 }
 0xabd   :  { %v5385_v21 = vpop.f32.mrf.mxu0 }
 0xabe   :  { %v14245_v35 = vpack.i.bf16 %v5385_v21, %v5309_v18  ;;  %v13689_v23 = vpop.f32.mrf.mxu1  ;;  %v5647_v22 = vsel %vm5645_vm3, %v5638_v1, %v14209_v49  ;;  %v15785_v49 = vld [vmem:[%s17119_s7] sm:$0xf] }
 0xabf   :  { %v13684_v57 = vpop.f32.mrf.mxu0  ;;  %v14217_v41 = vpop.permute.xlu0 %14216 }
 0xac0   :  { %14241 = vrot.lane.b32.xlu1 %v14240_v34, %s14780_s25  ;;  %14246 = vrot.lane.b32.xlu0 %v14245_v35, %s14797_s27  ;;  %v5637_v34 = vsel %vm239_vm2, %v15192_v50, %v14198_v45  ;;  %v5639_v50 = vsel %vm239_vm2, %v15196_v54, %v14203_v13  ;;  %v14219_v32 = vunpack.i.h.bf16 %v14217_v41  ;;  %v14218_v3 = vunpack.i.l.bf16 %v14217_v41 }
 0xac1   :  { %v5537_v28 = vpop.f32.mrf.mxu0  ;;  %v5646_v53 = vsel %vm5645_vm3, %v5637_v34, %v14208_v46  ;;  %v5648_v38 = vsel %vm5645_vm3, %v5639_v50, %v14213_v15 }
 0xac2   :  { %v14250_v31 = vpack.i.bf16 %v5537_v28, %v5461_v29  ;;  %v5642_v8 = vsel %vm239_vm2, %v15202_v59, %v14219_v32  ;;  %v5641_v4 = vsel %vm239_vm2, %v15200_v58, %v14218_v3  ;;  %v5644_v59 = vsel %vm239_vm2, %v15204_v62, %v14224_v12  ;;  %v14320_v62 = vld [vmem:[#allocation7] sm:$0xff]   ;;  %v14645_v12 = vld [vmem:[%s17112_s0 + $0x38] sm:$0xff] }
 0xac3   :  { %v13694_v37 = vpop.f32.mrf.mxu0  ;;  %v5643_v58 = vsel %vm239_vm2, %v15207_v10, %v14223_v60  ;;  %13709 = vmatprep.subr.bf16.mxu0 %v14320_v62  ;;  %v5764_v10 = vlaneseq }
 0xac4   :  { %14251 = vrot.lane.b32.xlu1 %v14250_v31, %s14797_s27  ;;  %13710 = vmatpush3.bf16.msra.mxu0 %v14320_v62 }
 0xac5   :  { %v15779_v41 = vshrl.u32 %v5764_v10, 7 }
 0xac7   :  { %v17126_v45 = vsub.s32 0, %v15779_v41  ;;  %v17125_v20 = vsub.s32 1, %v15779_v41 }
 0xac9   :  { %v5767_v34 = vrot.slane %v15785_v49, %v17126_v45 }
 0xb29   :  { %v14227_v36 = vpop.permute.xlu0 %14226 }
 0xb2a   :  { %v14229_v43 = vunpack.i.h.bf16 %v14227_v36  ;;  %v14228_v51 = vunpack.i.l.bf16 %v14227_v36  ;;  %v14640_v36 = vld [vmem:[%s17112_s0 + $0x10] sm:$0xff] }
 0xb2c   :  { %v5655_v16 = vsel %vm5654_vm4, %v5646_v53, %v14228_v51  ;;  %v5656_v30 = vsel %vm5654_vm4, %v5647_v22, %v14229_v43  ;;  %v14641_v51 = vld [vmem:[%s17112_s0 + $0x18] sm:$0xff] }
 0xb2d   :  { %v14232_v2 = vpop.permute.xlu0 %14231  ;;  %v5663_v7 = vpack.c.bf16 %v5656_v30, %v5655_v16  ;;  %v14642_v16 = vld [vmem:[%s17112_s0 + $0x8] sm:$0xff] }
 0xb2e   :  { %v14237_v26 = vpop.permute.xlu1 %14236  ;;  %v14234_v48 = vunpack.i.h.bf16 %v14232_v2  ;;  %v14233_v55 = vunpack.i.l.bf16 %v14232_v2 }
 0xb2f   :  { %v14239_v61 = vunpack.i.h.bf16 %v14237_v26  ;;  %v14238_v24 = vunpack.i.l.bf16 %v14237_v26  ;;  %13699 = vmatprep.mubr.msk.bf16.mxu1 %vm158_vm0, %v5663_v7  ;;  %v5779_v7 = vrot.slane %v15785_v49, %v17125_v20 }
 0xb30   :  { %v5650_v19 = vsel %vm5645_vm3, %v5641_v4, %v14233_v55  ;;  %v5651_v5 = vsel %vm5645_vm3, %v5642_v8, %v14234_v48  ;;  %v14644_v48 = vld [vmem:[%s17112_s0 + $0x30] sm:$0xff]  ;;  %v14646_v4 = vld [vmem:[%s17112_s0 + $0x28] sm:$0xff] }
 0xb31   :  { %v5658_v11 = vsel %vm5654_vm4, %v5649_v40, %v14239_v61  ;;  %v5657_v56 = vsel %vm5654_vm4, %v5648_v38, %v14238_v24  ;;  %v14643_v24 = vld [vmem:[%s17112_s0 + $0x20] sm:$0xff] }
 0xb32   :  { %v5664_v54 = vpack.c.bf16 %v5658_v11, %v5657_v56  ;;  %v14242_v27 = vpop.permute.xlu1 %14241  ;;  %v14247_v0 = vpop.permute.xlu0 %14246 }
 0xb33   :  { %v14249_v9 = vunpack.i.h.bf16 %v14247_v0  ;;  %v14248_v18 = vunpack.i.l.bf16 %v14247_v0  ;;  %v14244_v17 = vunpack.i.h.bf16 %v14242_v27  ;;  %v14243_v6 = vunpack.i.l.bf16 %v14242_v27 }
 0xb34   :  { %13700 = vmatmul.mubr.msk.bf16.vlgmr.msra.gmra.mxu1 %vm158_vm0, %v5664_v54 }
 0xb35   :  { %v5659_v29 = vsel %vm5654_vm4, %v5650_v19, %v14248_v18  ;;  %v5660_v21 = vsel %vm5654_vm4, %v5651_v5, %v14249_v9  ;;  %v5653_v31 = vsel %vm5645_vm3, %v5644_v59, %v14244_v17  ;;  %v5652_v37 = vsel %vm5645_vm3, %v5643_v58, %v14243_v6  ;;  %v14322_v59 = vld [vmem:[%s17118_s6 + $0x10] sm:$0xff]   ;;  %v14323_v58 = vld [vmem:[%s17118_s6 + $0x8] sm:$0xff]  }
 0xb36   :  { %v14252_v35 = vpop.permute.xlu1 %14251  ;;  %v5665_v23 = vpack.c.bf16 %v5660_v21, %v5659_v29 }
 0xb37   :  { %v14254_v57 = vunpack.i.h.bf16 %v14252_v35  ;;  %v14253_v28 = vunpack.i.l.bf16 %v14252_v35 }
 0xb38   :  { %13703 = vmatprep.mubr.msk.bf16.mxu1 %vm158_vm0, %v5665_v23  ;;  %v14321_v23 = vld [vmem:[%s17118_s6 + $0x18] sm:$0xff]  }
 0xb39   :  { %v5662_v33 = vsel %vm5654_vm4, %v5653_v31, %v14254_v57  ;;  %v5661_v42 = vsel %vm5654_vm4, %v5652_v37, %v14253_v28  ;;  %13719 = vmatprep.subr.bf16.mxu1 %v14321_v23  ;;  %v14324_v57 = vld [vmem:[%s17118_s6] sm:$0xff]  }
 0xb3a   :  { %v5666_v47 = vpack.c.bf16 %v5662_v33, %v5661_v42  ;;  %13720 = vmatpush3.bf16.msra.mxu1 %v14321_v23  ;;  %v12854_v28 = vld [vmem:[#allocation8] ss:$0 sm:$0xff] }
 0xb3b   :  { %13721 = vmatprep.subr.bf16.mxu1 %v14322_v59 }
 0xb3c   :  { %13704 = vmatmul.mubr.msk.bf16.gmra.mxu1 %vm158_vm0, %v5666_v47 }
 0xb3e   :  { %13722 = vmatpush3.bf16.msra.mxu1 %v14322_v59 }
 0xb3f   :  { %13723 = vmatprep.subr.bf16.mxu1 %v14323_v58 }
 0xb42   :  { %13724 = vmatpush3.bf16.msra.mxu1 %v14323_v58 }
 0xb43   :  { %13725 = vmatprep.subr.bf16.mxu1 %v14324_v57 }
 0xb46   :  { %13726 = vmatpush3.bf16.msra.mxu1 %v14324_v57 }
 0xb47   :  { %13747 = vmatprep.subr.mxu1 %v17127_v14 }
 0xbf4   :  { %v13701_v44 = vpop.f32.mrf.mxu1 }
 0xbf5   :  { %v5758_v1 = vadd.f32 %v14640_v36, %v13701_v44 }
 0xbf6   :  { %v5725_v46 = vpop.f32.mrf.mxu1 }
 0xbf7   :  { %v5756_v13 = vadd.f32 %v14639_v63, %v5725_v46  ;;  %v5770_v2 = vmul.f32 %v5767_v34, %v5758_v1 }
 0xbf8   :  { %v13702_v43 = vpop.f32.mrf.mxu1 }
 0xbf9   :  { %v5759_v53 = vadd.f32 %v14641_v51, %v13702_v43  ;;  %v5768_v25 = vmul.f32 %v5767_v34, %v5756_v13  ;;  %v15815_v40 = vadd.f32 %v5779_v7, %v5770_v2 }
 0xbfa   :  { %v5728_v22 = vpop.f32.mrf.mxu1 }
 0xbfb   :  { %v5771_v15 = vmul.f32 %v5767_v34, %v5759_v53  ;;  %v5757_v30 = vadd.f32 %v14642_v16, %v5728_v22  ;;  %v15808_v3 = vadd.f32 %v5779_v7, %v5768_v25 }
 0xbfc   :  { %v13705_v52 = vpop.f32.mrf.mxu1 }
 0xbfd   :  { %v5769_v50 = vmul.f32 %v5767_v34, %v5757_v30  ;;  %v15806_v26 = vadd.f32 %v5779_v7, %v5771_v15  ;;  %v5762_v55 = vadd.f32 %v14644_v48, %v13705_v52 }
 0xbfe   :  { %v5741_v32 = vpop.f32.mrf.mxu1 }
 0xbff   :  { %v15810_v61 = vadd.f32 %v5779_v7, %v5769_v50  ;;  %v5760_v38 = vadd.f32 %v14643_v24, %v5741_v32  ;;  %v5789_v54 = vpack.c.bf16 %v15806_v26, %v15815_v40  ;;  %v5774_v18 = vmul.f32 %v5767_v34, %v5762_v55 }
 0xc00   :  { %v13706_v11 = vpop.f32.mrf.mxu1 }
 0xc01   :  { %v5788_v56 = vpack.c.bf16 %v15810_v61, %v15808_v3  ;;  %v5763_v60 = vadd.f32 %v14645_v12, %v13706_v11  ;;  %v5772_v0 = vmul.f32 %v5767_v34, %v5760_v38  ;;  %v15838_v29 = vadd.f32 %v5779_v7, %v5774_v18 }
 0xc02   :  { %v5744_v27 = vpop.f32.mrf.mxu1 }
 0xc03   :  { %v5775_v8 = vmul.f32 %v5767_v34, %v5763_v60  ;;  %v5761_v9 = vadd.f32 %v14646_v4, %v5744_v27  ;;  %13711 = vmatprep.mubr.msk.bf16.mxu0 %vm158_vm0, %v5788_v56  ;;  %v15834_v17 = vadd.f32 %v5779_v7, %v5772_v0 }
 0xc04   :  { %13712 = vmatmul.mubr.msk.bf16.vlgmr.msra.gmra.mxu0 %vm158_vm0, %v5789_v54 }
 0xc05   :  { %v5773_v19 = vmul.f32 %v5767_v34, %v5761_v9  ;;  %v15832_v5 = vadd.f32 %v5779_v7, %v5775_v8 }
 0xc07   :  { %v15836_v6 = vadd.f32 %v5779_v7, %v5773_v19  ;;  %v5791_v35 = vpack.c.bf16 %v15832_v5, %v15838_v29 }
 0xc09   :  { %v5790_v21 = vpack.c.bf16 %v15836_v6, %v15834_v17 }
 0xc0b   :  { %13715 = vmatprep.mubr.msk.bf16.mxu0 %vm158_vm0, %v5790_v21 }
 0xc0c   :  { %13716 = vmatmul.mubr.msk.bf16.gmra.mxu0 %vm158_vm0, %v5791_v35 }
 0xcc4   :  { %v13713_v31 = vpop.f32.mrf.mxu0 }
 0xcc5   :  { %v15859_v37 = vadd.f32 %v13713_v31, %v12854_v28 }
 0xcc6   :  { %v5856_v33 = vpop.f32.mrf.mxu0 }
 0xcc7   :  { %v5889_v42 = vmul.f32 %v15859_v37, %v15859_v37  ;;  %v15863_v47 = vadd.f32 %v12854_v28, %v5856_v33 }
 0xcc8   :  { %v13714_v39 = vpop.f32.mrf.mxu0 }
 0xcc9   :  { %v5897_v62 = vmul.f32 %v5889_v42, %v15859_v37  ;;  %v5887_v10 = vmul.f32 %v15863_v47, %v15863_v47  ;;  %v15868_v44 = vadd.f32 %v13714_v39, %v12854_v28 }
 0xcca   :  { %v5859_v46 = vpop.f32.mrf.mxu0 }
 0xccb   :  { %v5905_v63 = vmul.f32 0.044715, %v5897_v62  ;;  %v5895_v13 = vmul.f32 %v5887_v10, %v15863_v47  ;;  %v5890_v36 = vmul.f32 %v15868_v44, %v15868_v44  ;;  %v15873_v1 = vadd.f32 %v12854_v28, %v5859_v46 }
 0xccc   :  { %v13717_v34 = vpop.f32.mrf.mxu0 }
 0xccd   :  { %v5913_v43 = vadd.f32 %v5905_v63, %v15859_v37  ;;  %v5903_v51 = vmul.f32 0.044715, %v5895_v13  ;;  %v5898_v53 = vmul.f32 %v5890_v36, %v15868_v44  ;;  %v5888_v22 = vmul.f32 %v15873_v1, %v15873_v1 }
 0xcce   :  { %v15879_v25 = vadd.f32 %v13717_v34, %v12854_v28  ;;  %v5872_v15 = vpop.f32.mrf.mxu0 }
 0xccf   :  { %v5921_v16 = vmul.f32 0.7978846, %v5913_v43  ;;  %v5911_v30 = vadd.f32 %v5903_v51, %v15863_v47  ;;  %v5906_v2 = vmul.f32 0.044715, %v5898_v53  ;;  %v5896_v7 = vmul.f32 %v5888_v22, %v15873_v1 }
 0xcd0   :  { %v5893_v52 = vmul.f32 %v15879_v25, %v15879_v25  ;;  %v15885_v50 = vadd.f32 %v12854_v28, %v5872_v15  ;;  %v13718_v32 = vpop.f32.mrf.mxu0 }
 0xcd1   :  { %v5919_v24 = vmul.f32 0.7978846, %v5911_v30  ;;  %v5914_v38 = vadd.f32 %v5906_v2, %v15868_v44  ;;  %v5904_v48 = vmul.f32 0.044715, %v5896_v7  ;;  %14479 = vtanh.f32 %v5921_v16 }
 0xcd2   :  { %v5901_v55 = vmul.f32 %v5893_v52, %v15879_v25  ;;  %v5891_v11 = vmul.f32 %v15885_v50, %v15885_v50  ;;  %v15891_v56 = vadd.f32 %v13718_v32, %v12854_v28  ;;  %v5875_v12 = vpop.f32.mrf.mxu0 }
 0xcd3   :  { %14481 = vtanh.f32 %v5919_v24  ;;  %v5922_v60 = vmul.f32 0.7978846, %v5914_v38  ;;  %v5912_v54 = vadd.f32 %v5904_v48, %v15873_v1  ;;  %v5876_v27 = vadd.f32 %v12854_v28, %v5875_v12 }
 0xcd4   :  { %v5909_v0 = vmul.f32 0.044715, %v5901_v55  ;;  %v5899_v8 = vmul.f32 %v5891_v11, %v15885_v50  ;;  %v5894_v4 = vmul.f32 %v15891_v56, %v15891_v56 }
 0xcd5   :  { %14483 = vtanh.f32 %v5922_v60  ;;  %v5920_v9 = vmul.f32 0.7978846, %v5912_v54  ;;  %v5892_v18 = vmul.f32 %v5876_v27, %v5876_v27 }
 0xcd6   :  { %v5917_v19 = vadd.f32 %v5909_v0, %v15879_v25  ;;  %v5907_v21 = vmul.f32 0.044715, %v5899_v8  ;;  %v5902_v35 = vmul.f32 %v5894_v4, %v15891_v56 }
 0xcd7   :  { %14485 = vtanh.f32 %v5920_v9  ;;  %v5900_v23 = vmul.f32 %v5892_v18, %v5876_v27 }
 0xcd8   :  { %v5925_v59 = vmul.f32 0.7978846, %v5917_v19  ;;  %v5915_v58 = vadd.f32 %v5907_v21, %v15885_v50  ;;  %v5910_v57 = vmul.f32 0.044715, %v5902_v35  ;;  %v14325_v35 = vld [vmem:[%s17113_s1 + $0x18] sm:$0xff]  }
 0xcd9   :  { %v5908_v28 = vmul.f32 0.044715, %v5900_v23  ;;  %13735 = vmatprep.subr.bf16.mxu0 %v14325_v35 }
 0xcda   :  { %14487 = vtanh.f32 %v5925_v59  ;;  %v5923_v31 = vmul.f32 0.7978846, %v5915_v58  ;;  %v5918_v33 = vadd.f32 %v5910_v57, %v15891_v56  ;;  %13736 = vmatpush3.bf16.msra.mxu0 %v14325_v35  ;;  %v17123_v57 = vsub.s32 3, %v15779_v41 }
 0xcdb   :  { %v5916_v42 = vadd.f32 %v5908_v28, %v5876_v27 }
 0xcdc   :  { %14489 = vtanh.f32 %v5923_v31  ;;  %v5926_v39 = vmul.f32 0.7978846, %v5918_v33 }
 0xcdd   :  { %v5924_v62 = vmul.f32 0.7978846, %v5916_v42 }
 0xcde   :  { %14491 = vtanh.f32 %v5926_v39  ;;  %v14480_v10 = vpop.eup %14479 }
 0xcdf   :  { %14493 = vtanh.f32 %v5924_v62  ;;  %v5937_v36 = vadd.f32 1.0, %v14480_v10 }
 0xce0   :  { %v14482_v46 = vpop.eup %14481 }
 0xce1   :  { %v5935_v63 = vadd.f32 1.0, %v14482_v46  ;;  %v5945_v15 = vmul.f32 0.5, %v5937_v36 }
 0xce2   :  { %v14484_v13 = vpop.eup %14483 }
 0xce3   :  { %v5938_v34 = vadd.f32 1.0, %v14484_v13  ;;  %v5943_v51 = vmul.f32 0.5, %v5935_v63  ;;  %v5953_v24 = vmul.f32 %v5945_v15, %v15859_v37 }
 0xce4   :  { %v14486_v43 = vpop.eup %14485 }
 0xce5   :  { %v5946_v53 = vmul.f32 0.5, %v5938_v34  ;;  %v5936_v22 = vadd.f32 1.0, %v14486_v43  ;;  %v5951_v52 = vmul.f32 %v5943_v51, %v15863_v47 }
 0xce7   :  { %v14488_v16 = vpop.eup %14487  ;;  %v5944_v30 = vmul.f32 0.5, %v5936_v22  ;;  %v5954_v2 = vmul.f32 %v5946_v53, %v15868_v44 }
 0xce8   :  { %v5941_v38 = vadd.f32 1.0, %v14488_v16 }
 0xce9   :  { %v14490_v7 = vpop.eup %14489  ;;  %v5952_v32 = vmul.f32 %v5944_v30, %v15873_v1  ;;  %v5960_v60 = vpack.c.bf16 %v5954_v2, %v5953_v24 }
 0xcea   :  { %v5939_v48 = vadd.f32 1.0, %v14490_v7  ;;  %v5949_v44 = vmul.f32 0.5, %v5941_v38 }
 0xceb   :  { %v14492_v55 = vpop.eup %14491  ;;  %v5959_v11 = vpack.c.bf16 %v5952_v32, %v5951_v52 }
 0xcec   :  { %v14494_v12 = vpop.eup %14493  ;;  %v5942_v54 = vadd.f32 1.0, %v14492_v55  ;;  %v5947_v0 = vmul.f32 0.5, %v5939_v48  ;;  %v5957_v18 = vmul.f32 %v5949_v44, %v15879_v25  ;;  %v12882_v48 = vld [vmem:[#allocation2 + $0x1] ss:$0 sm:$0xff] }
 0xced   :  { %v5940_v8 = vadd.f32 1.0, %v14494_v12  ;;  %13727 = vmatprep.mubr.msk.bf16.mxu1 %vm5987_vm5, %v5959_v11 }
 0xcee   :  { %v5950_v4 = vmul.f32 0.5, %v5942_v54  ;;  %13728 = vmatmul.mubr.msk.bf16.vlgmr.msra.gmra.mxu1 %vm5987_vm5, %v5960_v60  ;;  %v5955_v37 = vmul.f32 %v5947_v0, %v15885_v50  ;;  %v14326_v50 = vld [vmem:[%s17113_s1 + $0x10] sm:$0xff]  }
 0xcef   :  { %v5948_v47 = vmul.f32 0.5, %v5940_v8  ;;  %13737 = vmatprep.subr.bf16.mxu0 %v14326_v50 }
 0xcf0   :  { %v5958_v1 = vmul.f32 %v5950_v4, %v15891_v56  ;;  %13738 = vmatpush3.bf16.msra.mxu0 %v14326_v50  ;;  %v17124_v56 = vsub.s32 2, %v15779_v41 }
 0xcf1   :  { %v5956_v9 = vmul.f32 %v5948_v47, %v5876_v27  ;;  %13752 = vmatprep.subr.mxu0 %v17127_v14 }
 0xcf2   :  { %v5962_v21 = vpack.c.bf16 %v5958_v1, %v5957_v18  ;;  %v6076_v58 = vrot.slane %v15785_v49, %v17124_v56 }
 0xcf3   :  { %v5961_v19 = vpack.c.bf16 %v5956_v9, %v5955_v37 }
 0xcf5   :  { %13731 = vmatprep.mubr.msk.bf16.mxu1 %vm5987_vm5, %v5961_v19 }
 0xcf6   :  { %13732 = vmatmul.mubr.msk.bf16.gmra.mxu1 %vm5987_vm5, %v5962_v21 }
 0xcf7   :  { %13749 = vmatprep.mubr.msk.f32.mxu1 %vm14785_vm1, %v17127_v14 }
 0xdae   :  { %v13729_v25 = vpop.f32.mrf.mxu1 }
 0xdaf   :  { %v6067_v59 = vadd.f32 %v13729_v25, %v15815_v40 }
 0xdb0   :  { %v6034_v27 = vpop.f32.mrf.mxu1 }
 0xdb1   :  { %v6065_v23 = vadd.f32 %v6034_v27, %v15808_v3  ;;  %v6079_v10 = vmul.f32 %v6076_v58, %v6067_v59  ;;  %v6088_v3 = vrot.slane %v15785_v49, %v17123_v57 }
 0xdb2   :  { %v13730_v28 = vpop.f32.mrf.mxu1 }
 0xdb3   :  { %v6068_v31 = vadd.f32 %v13730_v28, %v15806_v26  ;;  %v6077_v42 = vmul.f32 %v6076_v58, %v6065_v23  ;;  %v15940_v43 = vadd.f32 %v6088_v3, %v6079_v10 }
 0xdb4   :  { %v6037_v33 = vpop.f32.mrf.mxu1 }
 0xdb5   :  { %v6080_v39 = vmul.f32 %v6076_v58, %v6068_v31  ;;  %v6066_v62 = vadd.f32 %v6037_v33, %v15810_v61  ;;  %v15935_v36 = vadd.f32 %v6088_v3, %v6077_v42 }
 0xdb6   :  { %v13733_v40 = vpop.f32.mrf.mxu1 }
 0xdb7   :  { %v6078_v46 = vmul.f32 %v6076_v58, %v6066_v62  ;;  %v15933_v63 = vadd.f32 %v6088_v3, %v6080_v39  ;;  %v6071_v61 = vadd.f32 %v13733_v40, %v15838_v29 }
 0xdb8   :  { %v6050_v13 = vpop.f32.mrf.mxu1 }
 0xdb9   :  { %v15937_v34 = vadd.f32 %v6088_v3, %v6078_v46  ;;  %v6069_v26 = vadd.f32 %v6050_v13, %v15834_v17  ;;  %v6128_v22 = vpack.c.bf16 %v15933_v63, %v15940_v43  ;;  %v6083_v17 = vmul.f32 %v6076_v58, %v6071_v61 }
 0xdba   :  { %v13734_v51 = vpop.f32.mrf.mxu1 }
 0xdbb   :  { %v6127_v53 = vpack.c.bf16 %v15937_v34, %v15935_v36  ;;  %v6072_v49 = vadd.f32 %v13734_v51, %v15832_v5  ;;  %v6081_v16 = vmul.f32 %v6076_v58, %v6069_v26  ;;  %v15957_v5 = vadd.f32 %v6088_v3, %v6083_v17 }
 0xdbc   :  { %v6053_v15 = vpop.f32.mrf.mxu1 }
 0xdbd   :  { %v6084_v30 = vmul.f32 %v6076_v58, %v6072_v49  ;;  %v6070_v2 = vadd.f32 %v6053_v15, %v15836_v6  ;;  %13739 = vmatprep.mubr.msk.bf16.mxu0 %vm158_vm0, %v6127_v53  ;;  %v15953_v52 = vadd.f32 %v6088_v3, %v6081_v16 }
 0xdbe   :  { %13740 = vmatmul.mubr.msk.bf16.vlgmr.msra.gmra.mxu0 %vm158_vm0, %v6128_v22 }
 0xdbf   :  { %v6082_v29 = vmul.f32 %v6076_v58, %v6070_v2  ;;  %v15951_v7 = vadd.f32 %v6088_v3, %v6084_v30 }
 0xdc1   :  { %v15955_v32 = vadd.f32 %v6088_v3, %v6082_v29  ;;  %v6130_v6 = vpack.c.bf16 %v15951_v7, %v15957_v5 }
 0xdc3   :  { %v6129_v24 = vpack.c.bf16 %v15955_v32, %v15953_v52 }
 0xdc5   :  { %13743 = vmatprep.mubr.msk.bf16.mxu0 %vm158_vm0, %v6129_v24 }
 0xdc6   :  { %13744 = vmatmul.mubr.msk.bf16.gmra.mxu0 %vm158_vm0, %v6130_v6 }
 0xdc7   :  { %13754 = vmatprep.mubr.msk.f32.mxu0 %vm14785_vm1, %v17127_v14 }
 0xe7e   :  { %v13741_v38 = vpop.f32.mrf.mxu0 }
 0xe7f   :  { %v15971_v54 = vadd.f32 %v13741_v38, %v12882_v48 }
 0xe80   :  { %v6195_v55 = vpop.f32.mrf.mxu0 }
 0xe81   :  { %v15967_v11 = vadd.f32 %v12882_v48, %v6195_v55 }
 0xe82   :  { %v13742_v12 = vpop.f32.mrf.mxu0 }
 0xe83   :  { %6227 = vrot.lane.b32.xlu0 %v15967_v11, %s14786_s2  ;;  %v15979_v4 = vadd.f32 %v13742_v12, %v12882_v48 }
 0xe84   :  { %v6198_v60 = vpop.f32.mrf.mxu0 }
 0xe85   :  { %v15973_v0 = vadd.f32 %v12882_v48, %v6198_v60 }
 0xe86   :  { %v13745_v8 = vpop.f32.mrf.mxu0 }
 0xe87   :  { %6304 = vrot.lane.b32.xlu1 %v15973_v0, %s14786_s2  ;;  %6381 = vrot.lane.b32.xlu0 %v15971_v54, %s14786_s2  ;;  %v15987_v9 = vadd.f32 %v13745_v8, %v12882_v48 }
 0xe88   :  { %v6211_v44 = vpop.f32.mrf.mxu0 }
 0xe89   :  { %v15981_v47 = vadd.f32 %v12882_v48, %v6211_v44 }
 0xe8a   :  { %v13746_v1 = vpop.f32.mrf.mxu0 }
 0xe8b   :  { %6458 = vrot.lane.b32.xlu1 %v15979_v4, %s14786_s2  ;;  %6535 = vrot.lane.b32.xlu0 %v15981_v47, %s14786_s2  ;;  %v15995_v19 = vadd.f32 %v13746_v1, %v12882_v48 }
 0xe8c   :  { %v6214_v37 = vpop.f32.mrf.mxu0 }
 0xe8d   :  { %v15989_v18 = vadd.f32 %v12882_v48, %v6214_v37 }
 0xe8f   :  { %6612 = vrot.lane.b32.xlu1 %v15989_v18, %s14786_s2  ;;  %6689 = vrot.lane.b32.xlu0 %v15987_v9, %s14786_s2 }
 0xe93   :  { %6766 = vrot.lane.b32.xlu1 %v15995_v19, %s14786_s2 }
 0xef5   :  { %v6228_v21 = vpop.permute.xlu0 %6227 }
 0xef6   :  { %13748 = vmatpush3.xpose.msk.msra.mxu1 %vm239_vm2, %v6228_v21 }
 0xef7   :  { %13757 = vmatprep.subr.mxu1 %v17127_v14 }
 0xef9   :  { %v6305_v35 = vpop.permute.xlu1 %6304  ;;  %v6382_v50 = vpop.permute.xlu0 %6381  ;;  %13750 = vmatmul.mubr.msk.f32.vlgmr.msra.gmra.mxu1 %vm239_vm2, %v15967_v11 }
 0xefa   :  { %13753 = vmatpush3.xpose.msk.msra.mxu0 %vm239_vm2, %v6305_v35  ;;  %13758 = vmatpush3.xpose.msk.msra.mxu1 %vm239_vm2, %v6382_v50 }
 0xefb   :  { %13759 = vmatprep.mubr.msk.f32.mxu1 %vm14785_vm1, %v17127_v14  ;;  %13762 = vmatprep.subr.mxu0 %v17127_v14 }
 0xefc   :  { %13767 = vmatprep.subr.mxu1 %v17127_v14 }
 0xefd   :  { %v6459_v25 = vpop.permute.xlu1 %6458  ;;  %13755 = vmatmul.mubr.msk.f32.vlgmr.msra.gmra.mxu0 %vm239_vm2, %v15973_v0  ;;  %13760 = vmatmul.mubr.msk.f32.vlgmr.msra.gmra.mxu1 %vm239_vm2, %v15971_v54  ;;  %v6536_v27 = vpop.permute.xlu0 %6535 }
 0xefe   :  { %13763 = vmatpush3.xpose.msk.msra.mxu0 %vm239_vm2, %v6459_v25  ;;  %13768 = vmatpush3.xpose.msk.msra.mxu1 %vm239_vm2, %v6536_v27 }
 0xeff   :  { %13764 = vmatprep.mubr.msk.f32.mxu0 %vm14785_vm1, %v17127_v14  ;;  %13769 = vmatprep.mubr.msk.f32.mxu1 %vm14785_vm1, %v17127_v14 }
 0xf00   :  { %13772 = vmatprep.subr.mxu0 %v17127_v14  ;;  %13777 = vmatprep.subr.mxu1 %v17127_v14 }
 0xf01   :  { %13765 = vmatmul.mubr.msk.f32.vlgmr.msra.gmra.mxu0 %vm239_vm2, %v15979_v4  ;;  %v6613_v23 = vpop.permute.xlu1 %6612  ;;  %13770 = vmatmul.mubr.msk.f32.vlgmr.msra.gmra.mxu1 %vm239_vm2, %v15981_v47  ;;  %v6690_v59 = vpop.permute.xlu0 %6689 }
 0xf02   :  { %13773 = vmatpush3.xpose.msk.msra.mxu0 %vm239_vm2, %v6613_v23  ;;  %13778 = vmatpush3.xpose.msk.msra.mxu1 %vm239_vm2, %v6690_v59 }
 0xf03   :  { %13774 = vmatprep.mubr.msk.f32.mxu0 %vm14785_vm1, %v17127_v14  ;;  %13779 = vmatprep.mubr.msk.f32.mxu1 %vm14785_vm1, %v17127_v14 }
 0xf04   :  { %13782 = vmatprep.subr.mxu0 %v17127_v14  ;;  %13787 = vmatprep.subr.mxu1 %v17127_v14 }
 0xf05   :  { %13775 = vmatmul.mubr.msk.f32.vlgmr.msra.gmra.mxu0 %vm239_vm2, %v15989_v18  ;;  %v6767_v58 = vpop.permute.xlu1 %6766  ;;  %13780 = vmatmul.mubr.msk.f32.vlgmr.msra.gmra.mxu1 %vm239_vm2, %v15987_v9 }
 0xf06   :  { %13783 = vmatpush3.xpose.msk.msra.mxu0 %vm239_vm2, %v6767_v58  ;;  %13784 = vmatprep.mubr.msk.f32.mxu0 %vm14785_vm1, %v17127_v14 }
 0xf07   :  { %13792 = vmatprep.subr.mxu0 %v17127_v14  ;;  %13789 = vmatprep.mubr.msk.f32.mxu1 %vm14785_vm1, %v17127_v14 }
 0xf09   :  { %13785 = vmatmul.mubr.msk.f32.vlgmr.msra.gmra.mxu0 %vm239_vm2, %v15995_v19 }
 0xf0a   :  { %13794 = vmatprep.mubr.msk.f32.mxu0 %vm14785_vm1, %v17127_v14 }
 0xfb9   :  { %v6299_v28 = vpop.f32.mrf.mxu1 }
 0xfba   :  { %v6842_v31 = vmul.f32 0.35355338, %v6299_v28 }
 0xfbb   :  { %v13751_v33 = vpop.f32.mrf.mxu1 }
 0xfbc   :  { %v6850_v42 = vsel %vm239_vm2, %v6842_v31, -inf }
 0xfbd   :  { %v6376_v39 = vpop.f32.mrf.mxu0  ;;  %v6453_v62 = vpop.f32.mrf.mxu1  ;;  %6851 = vmax.xlane.f32.xlu0 %v6850_v42 }
 0xfbe   :  { %v6843_v10 = vmul.f32 0.35355338, %v6376_v39  ;;  %v6844_v3 = vmul.f32 0.35355338, %v6453_v62 }
 0xfbf   :  { %v13756_v40 = vpop.f32.mrf.mxu0  ;;  %v13761_v46 = vpop.f32.mrf.mxu1 }
 0xfc0   :  { %v6853_v13 = vsel %vm239_vm2, %v6843_v10, -inf  ;;  %v6856_v26 = vsel %vm239_vm2, %v6844_v3, -inf }
 0xfc1   :  { %v6530_v61 = vpop.f32.mrf.mxu0  ;;  %6854 = vmax.xlane.f32.xlu1 %v6853_v13  ;;  %6857 = vmax.xlane.f32.xlu0 %v6856_v26  ;;  %v6607_v51 = vpop.f32.mrf.mxu1 }
 0xfc2   :  { %v6845_v53 = vmul.f32 0.35355338, %v6530_v61  ;;  %v6846_v49 = vmul.f32 0.35355338, %v6607_v51 }
 0xfc3   :  { %v13766_v22 = vpop.f32.mrf.mxu0  ;;  %v13771_v15 = vpop.f32.mrf.mxu1 }
 0xfc4   :  { %v6859_v16 = vsel %vm239_vm2, %v6845_v53, -inf  ;;  %v6862_v30 = vsel %vm239_vm2, %v6846_v49, -inf }
 0xfc5   :  { %v6684_v2 = vpop.f32.mrf.mxu0  ;;  %6860 = vmax.xlane.f32.xlu0 %v6859_v16  ;;  %6863 = vmax.xlane.f32.xlu1 %v6862_v30  ;;  %v6761_v17 = vpop.f32.mrf.mxu1 }
 0xfc6   :  { %v6847_v29 = vmul.f32 0.35355338, %v6684_v2  ;;  %v6848_v24 = vmul.f32 0.35355338, %v6761_v17 }
 0xfc7   :  { %v13776_v6 = vpop.f32.mrf.mxu0  ;;  %v13781_v38 = vpop.f32.mrf.mxu1 }
 0xfc8   :  { %v6865_v48 = vsel %vm239_vm2, %v6847_v29, -inf  ;;  %v6868_v55 = vsel %vm239_vm2, %v6848_v24, -inf }
 0xfc9   :  { %v6838_v12 = vpop.f32.mrf.mxu0  ;;  %6866 = vmax.xlane.f32.xlu0 %v6865_v48  ;;  %6869 = vmax.xlane.f32.xlu1 %v6868_v55 }
 0xfca   :  { %v6849_v60 = vmul.f32 0.35355338, %v6838_v12 }
 0xfcb   :  { %v13786_v8 = vpop.f32.mrf.mxu0 }
 0xfcc   :  { %v6871_v44 = vsel %vm239_vm2, %v6849_v60, -inf }
 0xfcd   :  { %6872 = vmax.xlane.f32.xlu0 %v6871_v44 }
 0xfda   :  { %6938 = vrot.lane.b32.xlu1 %v15967_v11, %s14776_s16 }
 0xfde   :  { %7090 = vrot.lane.b32.xlu1 %v15971_v54, %s14776_s16 }
 0xfe2   :  { %7166 = vrot.lane.b32.xlu1 %v15979_v4, %s14776_s16 }
 0xfe3   :  { %7014 = vrot.lane.b32.xlu0 %v15973_v0, %s14776_s16 }
 0xfe6   :  { %7318 = vrot.lane.b32.xlu1 %v15989_v18, %s14776_s16 }
 0xfe7   :  { %7242 = vrot.lane.b32.xlu0 %v15981_v47, %s14776_s16 }
 0xfea   :  { %7470 = vrot.lane.b32.xlu1 %v15995_v19, %s14776_s16 }
 0xfeb   :  { %7394 = vrot.lane.b32.xlu0 %v15987_v9, %s14776_s16 }
 0xfee   :  { %7626 = vrot.lane.b32.xlu1 %v15973_v0, %s14787_s19 }
 0xfef   :  { %7548 = vrot.lane.b32.xlu0 %v15967_v11, %s14787_s19 }
 0xff2   :  { %7624 = vrot.lane.b32.xlu1 %v15973_v0, %s14788_s20 }
 0xff3   :  { %7546 = vrot.lane.b32.xlu0 %v15967_v11, %s14788_s20 }
 0xff6   :  { %7782 = vrot.lane.b32.xlu1 %v15979_v4, %s14787_s19 }
 0xff7   :  { %7704 = vrot.lane.b32.xlu0 %v15971_v54, %s14787_s19 }
0x1046   :  { %v6852_v1 = vpop.xlane.xlu0 %6851 }
0x1047   :  { %v6874_v37 = vsub.f32 %v6842_v31, %v6852_v1 }
0x1049   :  { %v6882_v21 = vmul.f32 1.442695, %v6874_v37 }
0x104a   :  { %v6855_v35 = vpop.xlane.xlu1 %6854  ;;  %v6858_v50 = vpop.xlane.xlu0 %6857 }
0x104b   :  { %14495 = vpow2.f32 %v6882_v21  ;;  %v6875_v25 = vsub.f32 %v6843_v10, %v6855_v35  ;;  %v6876_v27 = vsub.f32 %v6844_v3, %v6858_v50 }
0x104d   :  { %v6884_v23 = vmul.f32 1.442695, %v6875_v25  ;;  %v6886_v59 = vmul.f32 1.442695, %v6876_v27 }
0x104e   :  { %v6864_v58 = vpop.xlane.xlu1 %6863  ;;  %v6861_v28 = vpop.xlane.xlu0 %6860 }
0x104f   :  { %14497 = vpow2.f32 %v6884_v23  ;;  %v6878_v33 = vsub.f32 %v6846_v49, %v6864_v58  ;;  %v6877_v42 = vsub.f32 %v6845_v53, %v6861_v28 }
0x1050   :  { %14499 = vpow2.f32 %v6886_v59 }
0x1051   :  { %v6890_v39 = vmul.f32 1.442695, %v6878_v33  ;;  %v6888_v62 = vmul.f32 1.442695, %v6877_v42 }
0x1052   :  { %v6870_v40 = vpop.xlane.xlu1 %6869  ;;  %v6867_v46 = vpop.xlane.xlu0 %6866 }
0x1053   :  { %14501 = vpow2.f32 %v6890_v39  ;;  %v6880_v31 = vsub.f32 %v6848_v24, %v6870_v40  ;;  %v6879_v13 = vsub.f32 %v6847_v29, %v6867_v46 }
0x1054   :  { %14503 = vpow2.f32 %v6888_v62 }
0x1055   :  { %v6894_v26 = vmul.f32 1.442695, %v6880_v31  ;;  %v6892_v61 = vmul.f32 1.442695, %v6879_v13 }
0x1056   :  { %v6939_v10 = vpop.permute.xlu1 %6938  ;;  %v6873_v3 = vpop.xlane.xlu0 %6872 }
0x1057   :  { %14505 = vpow2.f32 %v6894_v26  ;;  %v6881_v51 = vsub.f32 %v6849_v60, %v6873_v3  ;;  %13788 = vmatpush3.msra.mxu1 %v6939_v10 }
0x1058   :  { %v16083_v22 = vpop.eup %14495  ;;  %14507 = vpow2.f32 %v6892_v61  ;;  %13797 = vmatprep.subr.mxu1 %v17127_v14 }
0x1059   :  { %v6896_v53 = vmul.f32 1.442695, %v6881_v51  ;;  %v6898_v49 = vsel %vm239_vm2, %v16083_v22, 0.0 }
0x105a   :  { %6899 = vadd.xlane.f32.xlu1 %v6898_v49  ;;  %v7015_v15 = vpop.permute.xlu0 %7014  ;;  %v7091_v1 = vpop.permute.xlu1 %7090 }
0x105b   :  { %14509 = vpow2.f32 %v6896_v53  ;;  %13793 = vmatpush3.msra.mxu0 %v7015_v15 }
0x105c   :  { %v16088_v16 = vpop.eup %14497  ;;  %13802 = vmatprep.subr.mxu0 %v17127_v14 }
0x105d   :  { %v16091_v30 = vpop.eup %14499  ;;  %v6901_v2 = vsel %vm239_vm2, %v16088_v16, 0.0 }
0x105e   :  { %6902 = vadd.xlane.f32.xlu0 %v6901_v2  ;;  %v6904_v17 = vsel %vm239_vm2, %v16091_v30, 0.0  ;;  %v7167_v37 = vpop.permute.xlu1 %7166  ;;  %v7243_v35 = vpop.permute.xlu0 %7242 }
0x105f   :  { %6905 = vadd.xlane.f32.xlu1 %v6904_v17 }
0x1060   :  { %v16097_v29 = vpop.eup %14501 }
0x1061   :  { %v16099_v24 = vpop.eup %14503  ;;  %v6910_v6 = vsel %vm239_vm2, %v16097_v29, 0.0 }
0x1062   :  { %v6907_v38 = vsel %vm239_vm2, %v16099_v24, 0.0  ;;  %v7319_v21 = vpop.permute.xlu1 %7318  ;;  %v7395_v25 = vpop.permute.xlu0 %7394 }
0x1063   :  { %6911 = vadd.xlane.f32.xlu1 %v6910_v6  ;;  %6908 = vadd.xlane.f32.xlu0 %v6907_v38 }
0x1064   :  { %v16105_v48 = vpop.eup %14505 }
0x1065   :  { %v16107_v55 = vpop.eup %14507  ;;  %v6916_v12 = vsel %vm239_vm2, %v16105_v48, 0.0 }
0x1066   :  { %v6913_v60 = vsel %vm239_vm2, %v16107_v55, 0.0  ;;  %v16137_v50 = vpop.permute.xlu1 %7470  ;;  %v7549_v23 = vpop.permute.xlu0 %7548 }
0x1067   :  { %6917 = vadd.xlane.f32.xlu1 %v6916_v12  ;;  %6914 = vadd.xlane.f32.xlu0 %v6913_v60 }
0x1068   :  { %v16113_v8 = vpop.eup %14509 }
0x1069   :  { %v6919_v44 = vsel %vm239_vm2, %v16113_v8, 0.0 }
0x106a   :  { %v16139_v27 = vpop.permute.xlu1 %7626  ;;  %v16143_v58 = vpop.permute.xlu0 %7546 }
0x106b   :  { %6920 = vadd.xlane.f32.xlu0 %v6919_v44 }
0x106e   :  { %v16141_v59 = vpop.permute.xlu1 %7624  ;;  %v16147_v33 = vpop.permute.xlu0 %7704 }
0x1072   :  { %v16145_v28 = vpop.permute.xlu1 %7782 }
0x1078   :  { %7780 = vrot.lane.b32.xlu1 %v15979_v4, %s14788_s20 }
0x107c   :  { %7938 = vrot.lane.b32.xlu1 %v15989_v18, %s14787_s19 }
0x1080   :  { %7936 = vrot.lane.b32.xlu1 %v15989_v18, %s14788_s20 }
0x1081   :  { %7702 = vrot.lane.b32.xlu0 %v15971_v54, %s14788_s20 }
0x1084   :  { %8094 = vrot.lane.b32.xlu1 %v15995_v19, %s14787_s19 }
0x1085   :  { %7860 = vrot.lane.b32.xlu0 %v15981_v47, %s14787_s19 }
0x1088   :  { %8092 = vrot.lane.b32.xlu1 %v15995_v19, %s14788_s20 }
0x1089   :  { %7858 = vrot.lane.b32.xlu0 %v15981_v47, %s14788_s20 }
0x108d   :  { %8016 = vrot.lane.b32.xlu0 %v15987_v9, %s14787_s19 }
0x1091   :  { %8014 = vrot.lane.b32.xlu0 %v15987_v9, %s14788_s20 }
0x10e3   :  { %v6900_v42 = vpop.xlane.xlu1 %6899 }
0x10e4   :  { %14511 = vrcp.f32 %v6900_v42 }
0x10e7   :  { %v6903_v39 = vpop.xlane.xlu0 %6902 }
0x10e8   :  { %v6906_v62 = vpop.xlane.xlu1 %6905  ;;  %14513 = vrcp.f32 %v6903_v39 }
0x10e9   :  { %14515 = vrcp.f32 %v6906_v62 }
0x10ec   :  { %v6912_v40 = vpop.xlane.xlu1 %6911  ;;  %v6909_v46 = vpop.xlane.xlu0 %6908 }
0x10ed   :  { %14517 = vrcp.f32 %v6912_v40 }
0x10ee   :  { %14519 = vrcp.f32 %v6909_v46 }
0x10f0   :  { %v6918_v31 = vpop.xlane.xlu1 %6917  ;;  %v6915_v13 = vpop.xlane.xlu0 %6914 }
0x10f1   :  { %v14512_v26 = vpop.eup %14511  ;;  %14521 = vrcp.f32 %v6918_v31 }
0x10f2   :  { %14523 = vrcp.f32 %v6915_v13  ;;  %v6930_v61 = vmul.f32 %v14512_v26, %v16083_v22 }
0x10f4   :  { %v6921_v10 = vpop.xlane.xlu0 %6920  ;;  %13790 = vmatmul.mubr.msk.f32.vlgmr.msra.gmra.mxu1 %vm239_vm2, %v6930_v61  ;;  %v7781_v17 = vpop.permute.xlu1 %7780 }
0x10f5   :  { %v14514_v3 = vpop.eup %14513  ;;  %14525 = vrcp.f32 %v6921_v10  ;;  %13798 = vmatpush3.msra.mxu1 %v7091_v1  ;;  %13799 = vmatprep.mubr.msk.f32.mxu1 %vm14785_vm1, %v17127_v14 }
0x10f6   :  { %v14516_v51 = vpop.eup %14515  ;;  %13807 = vmatprep.subr.mxu1 %v17127_v14  ;;  %v6931_v53 = vmul.f32 %v14514_v3, %v16088_v16 }
0x10f7   :  { %v6932_v49 = vmul.f32 %v14516_v51, %v16091_v30 }
0x10f8   :  { %v7703_v15 = vpop.permute.xlu0 %7702  ;;  %13795 = vmatmul.mubr.msk.f32.vlgmr.msra.gmra.mxu0 %vm239_vm2, %v6931_v53  ;;  %v7939_v44 = vpop.permute.xlu1 %7938 }
0x10f9   :  { %13800 = vmatmul.mubr.msk.f32.vlgmr.msra.gmra.mxu1 %vm239_vm2, %v6932_v49  ;;  %13803 = vmatpush3.msra.mxu0 %v7167_v37 }
0x10fa   :  { %v14518_v22 = vpop.eup %14517  ;;  %13808 = vmatpush3.msra.mxu1 %v7243_v35  ;;  %13809 = vmatprep.mubr.msk.f32.mxu1 %vm14785_vm1, %v17127_v14 }
0x10fb   :  { %v14520_v2 = vpop.eup %14519  ;;  %13804 = vmatprep.mubr.msk.f32.mxu0 %vm14785_vm1, %v17127_v14  ;;  %13812 = vmatprep.subr.mxu0 %v17127_v14  ;;  %v6934_v16 = vmul.f32 %v14518_v22, %v16097_v29 }
0x10fc   :  { %13817 = vmatprep.subr.mxu1 %v17127_v14  ;;  %v6933_v30 = vmul.f32 %v14520_v2, %v16099_v24  ;;  %v7861_v38 = vpop.permute.xlu0 %7860 }
0x10fd   :  { %13810 = vmatmul.mubr.msk.f32.vlgmr.msra.gmra.mxu1 %vm239_vm2, %v6934_v16 }
0x10fe   :  { %v14522_v6 = vpop.eup %14521  ;;  %13805 = vmatmul.mubr.msk.f32.vlgmr.msra.gmra.mxu0 %vm239_vm2, %v6933_v30  ;;  %13818 = vmatpush3.msra.mxu1 %v7395_v25 }
0x10ff   :  { %v14524_v12 = vpop.eup %14523  ;;  %13813 = vmatpush3.msra.mxu0 %v7319_v21  ;;  %13814 = vmatprep.mubr.msk.f32.mxu0 %vm14785_vm1, %v17127_v14  ;;  %v6936_v60 = vmul.f32 %v14522_v6, %v16105_v48 }
0x1100   :  { %13819 = vmatprep.mubr.msk.f32.mxu1 %vm14785_vm1, %v17127_v14  ;;  %13822 = vmatprep.subr.mxu0 %v17127_v14  ;;  %v6935_v29 = vmul.f32 %v14524_v12, %v16107_v55  ;;  %v7859_v1 = vpop.permute.xlu0 %7858  ;;  %v7937_v55 = vpop.permute.xlu1 %7936 }
0x1101   :  { %13827 = vmatprep.subr.mxu1 %v17127_v14  ;;  %13820 = vmatmul.mubr.msk.f32.vlgmr.msra.gmra.mxu1 %vm239_vm2, %v6936_v60 }
0x1102   :  { %v14526_v24 = vpop.eup %14525  ;;  %13815 = vmatmul.mubr.msk.f32.vlgmr.msra.gmra.mxu0 %vm239_vm2, %v6935_v29  ;;  %13828 = vmatpush3.xpose.msk.msra.mxu1 %vm239_vm2, %v7549_v23 }
0x1103   :  { %13823 = vmatpush3.msra.mxu0 %v16137_v50  ;;  %13824 = vmatprep.mubr.msk.f32.mxu0 %vm14785_vm1, %v17127_v14  ;;  %v6937_v48 = vmul.f32 %v14526_v24, %v16113_v8 }
0x1104   :  { %13829 = vmatprep.mubr.msk.f32.mxu1 %vm14785_vm1, %v17127_v14  ;;  %13832 = vmatprep.subr.mxu0 %v17127_v14  ;;  %v8017_v8 = vpop.permute.xlu0 %8016  ;;  %v8095_v37 = vpop.permute.xlu1 %8094 }
0x1105   :  { %13837 = vmatprep.subr.mxu1 %v17127_v14  ;;  %13830 = vmatmul.mubr.msk.f32.vlgmr.msra.gmra.mxu1 %vm239_vm2, %v16143_v58 }
0x1106   :  { %13825 = vmatmul.mubr.msk.f32.vlgmr.msra.gmra.mxu0 %vm239_vm2, %v6937_v48  ;;  %13838 = vmatpush3.xpose.msk.msra.mxu1 %vm239_vm2, %v16147_v33 }
0x1107   :  { %13833 = vmatpush3.xpose.msk.msra.mxu0 %vm239_vm2, %v16139_v27  ;;  %13834 = vmatprep.mubr.msk.f32.mxu0 %vm14785_vm1, %v17127_v14 }
0x1108   :  { %13839 = vmatprep.mubr.msk.f32.mxu1 %vm14785_vm1, %v17127_v14  ;;  %13842 = vmatprep.subr.mxu0 %v17127_v14  ;;  %v8015_v21 = vpop.permute.xlu0 %8014  ;;  %v8093_v35 = vpop.permute.xlu1 %8092 }
0x1109   :  { %13847 = vmatprep.subr.mxu1 %v17127_v14  ;;  %13840 = vmatmul.mubr.msk.f32.vlgmr.msra.gmra.mxu1 %vm239_vm2, %v7703_v15 }
0x110a   :  { %13835 = vmatmul.mubr.msk.f32.vlgmr.msra.gmra.mxu0 %vm239_vm2, %v16141_v59  ;;  %13848 = vmatpush3.xpose.msk.msra.mxu1 %vm239_vm2, %v7861_v38 }
0x110b   :  { %13843 = vmatpush3.xpose.msk.msra.mxu0 %vm239_vm2, %v16145_v28  ;;  %13844 = vmatprep.mubr.msk.f32.mxu0 %vm14785_vm1, %v17127_v14 }
0x110c   :  { %13849 = vmatprep.mubr.msk.f32.mxu1 %vm14785_vm1, %v17127_v14  ;;  %13852 = vmatprep.subr.mxu0 %v17127_v14 }
0x110d   :  { %13857 = vmatprep.subr.mxu1 %v17127_v14  ;;  %13850 = vmatmul.mubr.msk.f32.vlgmr.msra.gmra.mxu1 %vm239_vm2, %v7859_v1 }
0x110e   :  { %13845 = vmatmul.mubr.msk.f32.vlgmr.msra.gmra.mxu0 %vm239_vm2, %v7781_v17  ;;  %13858 = vmatpush3.xpose.msk.msra.mxu1 %vm239_vm2, %v8017_v8 }
0x110f   :  { %13853 = vmatpush3.xpose.msk.msra.mxu0 %vm239_vm2, %v7939_v44  ;;  %13854 = vmatprep.mubr.msk.f32.mxu0 %vm14785_vm1, %v17127_v14 }
0x1110   :  { %13859 = vmatprep.mubr.msk.f32.mxu1 %vm14785_vm1, %v17127_v14  ;;  %13862 = vmatprep.subr.mxu0 %v17127_v14 }
0x1111   :  { %13860 = vmatmul.mubr.msk.f32.vlgmr.msra.gmra.mxu1 %vm239_vm2, %v8015_v21  ;;  %13867 = vmatprep.subr.mxu1 %v17127_v14 }
0x1112   :  { %13855 = vmatmul.mubr.msk.f32.vlgmr.msra.gmra.mxu0 %vm239_vm2, %v7937_v55  ;;  %13869 = vmatprep.mubr.msk.f32.mxu1 %vm14785_vm1, %v17127_v14 }
0x1113   :  { %13863 = vmatpush3.xpose.msk.msra.mxu0 %vm239_vm2, %v8095_v37  ;;  %13864 = vmatprep.mubr.msk.f32.mxu0 %vm14785_vm1, %v17127_v14 }
0x1114   :  { %13872 = vmatprep.subr.mxu0 %v17127_v14 }
0x1116   :  { %13865 = vmatmul.mubr.msk.f32.vlgmr.msra.gmra.mxu0 %vm239_vm2, %v8093_v35 }
0x1117   :  { %13874 = vmatprep.mubr.msk.f32.mxu0 %vm14785_vm1, %v17127_v14 }
0x11b4   :  { %v16233_v50 = vpop.f32.mrf.mxu1 }
0x11b6   :  { %v13791_v25 = vpop.f32.mrf.mxu1 }
0x11b8   :  { %v16235_v27 = vpop.f32.mrf.mxu0 }
0x11b9   :  { %v16237_v23 = vpop.f32.mrf.mxu1 }
0x11ba   :  { %v13796_v59 = vpop.f32.mrf.mxu0 }
0x11bb   :  { %v13801_v58 = vpop.f32.mrf.mxu1 }
0x11bd   :  { %v16239_v28 = vpop.f32.mrf.mxu1 }
0x11be   :  { %v16241_v33 = vpop.f32.mrf.mxu0 }
0x11bf   :  { %v13811_v42 = vpop.f32.mrf.mxu1 }
0x11c0   :  { %v13806_v39 = vpop.f32.mrf.mxu0 }
0x11c1   :  { %v16243_v62 = vpop.f32.mrf.mxu1 }
0x11c2   :  { %v16245_v40 = vpop.f32.mrf.mxu0 }
0x11c3   :  { %v13821_v46 = vpop.f32.mrf.mxu1 }
0x11c4   :  { %v13816_v31 = vpop.f32.mrf.mxu0 }
0x11c5   :  { %v7620_v13 = vpop.f32.mrf.mxu1 }
0x11c6   :  { %v16247_v26 = vpop.f32.mrf.mxu0  ;;  %v8170_v61 = vmul.f32 0.35355338, %v7620_v13 }
0x11c7   :  { %v13831_v10 = vpop.f32.mrf.mxu1 }
0x11c8   :  { %v13826_v3 = vpop.f32.mrf.mxu0  ;;  %v8178_v51 = vsel %vm239_vm2, %v8170_v61, -inf }
0x11c9   :  { %8179 = vmax.xlane.f32.xlu0 %v8178_v51  ;;  %v7776_v53 = vpop.f32.mrf.mxu1 }
0x11ca   :  { %v7698_v49 = vpop.f32.mrf.mxu0  ;;  %v8172_v15 = vmul.f32 0.35355338, %v7776_v53 }
0x11cb   :  { %v8171_v22 = vmul.f32 0.35355338, %v7698_v49  ;;  %v13841_v2 = vpop.f32.mrf.mxu1 }
0x11cc   :  { %v13836_v16 = vpop.f32.mrf.mxu0  ;;  %v8184_v30 = vsel %vm239_vm2, %v8172_v15, -inf }
0x11cd   :  { %v8181_v17 = vsel %vm239_vm2, %v8171_v22, -inf  ;;  %8185 = vmax.xlane.f32.xlu0 %v8184_v30  ;;  %v7932_v6 = vpop.f32.mrf.mxu1 }
0x11ce   :  { %8182 = vmax.xlane.f32.xlu1 %v8181_v17  ;;  %v7854_v38 = vpop.f32.mrf.mxu0  ;;  %v8174_v12 = vmul.f32 0.35355338, %v7932_v6 }
0x11cf   :  { %v8173_v60 = vmul.f32 0.35355338, %v7854_v38  ;;  %v13851_v29 = vpop.f32.mrf.mxu1 }
0x11d0   :  { %v13846_v24 = vpop.f32.mrf.mxu0  ;;  %v8190_v44 = vsel %vm239_vm2, %v8174_v12, -inf }
0x11d1   :  { %v8187_v48 = vsel %vm239_vm2, %v8173_v60, -inf  ;;  %v8088_v1 = vpop.f32.mrf.mxu1 }
0x11d2   :  { %v8010_v55 = vpop.f32.mrf.mxu0  ;;  %8188 = vmax.xlane.f32.xlu0 %v8187_v48  ;;  %8191 = vmax.xlane.f32.xlu1 %v8190_v44  ;;  %v8176_v8 = vmul.f32 0.35355338, %v8088_v1 }
0x11d3   :  { %v8175_v37 = vmul.f32 0.35355338, %v8010_v55  ;;  %v13861_v21 = vpop.f32.mrf.mxu1 }
0x11d4   :  { %v13856_v35 = vpop.f32.mrf.mxu0  ;;  %v8196_v25 = vsel %vm239_vm2, %v8176_v8, -inf }
0x11d5   :  { %v8193_v59 = vsel %vm239_vm2, %v8175_v37, -inf }
0x11d6   :  { %v8166_v58 = vpop.f32.mrf.mxu0  ;;  %8194 = vmax.xlane.f32.xlu0 %v8193_v59  ;;  %8197 = vmax.xlane.f32.xlu1 %v8196_v25 }
0x11d7   :  { %v8177_v42 = vmul.f32 0.35355338, %v8166_v58 }
0x11d8   :  { %v13866_v39 = vpop.f32.mrf.mxu0 }
0x11d9   :  { %v8199_v46 = vsel %vm239_vm2, %v8177_v42, -inf }
0x11da   :  { %8200 = vmax.xlane.f32.xlu0 %v8199_v46 }
0x11e7   :  { %8266 = vrot.lane.b32.xlu1 %v15967_v11, %s14789_s4 }
0x11eb   :  { %8418 = vrot.lane.b32.xlu1 %v15971_v54, %s14789_s4 }
0x11ef   :  { %8494 = vrot.lane.b32.xlu1 %v15979_v4, %s14789_s4 }
0x11f0   :  { %8342 = vrot.lane.b32.xlu0 %v15973_v0, %s14789_s4 }
0x11f3   :  { %8646 = vrot.lane.b32.xlu1 %v15989_v18, %s14789_s4 }
0x11f4   :  { %8570 = vrot.lane.b32.xlu0 %v15981_v47, %s14789_s4 }
0x11f7   :  { %8798 = vrot.lane.b32.xlu1 %v15995_v19, %s14789_s4 }
0x11f8   :  { %8722 = vrot.lane.b32.xlu0 %v15987_v9, %s14789_s4 }
0x11fb   :  { %8954 = vrot.lane.b32.xlu1 %v15973_v0, %s14790_s21 }
0x11fc   :  { %8876 = vrot.lane.b32.xlu0 %v15967_v11, %s14790_s21 }
0x11ff   :  { %8952 = vrot.lane.b32.xlu1 %v15973_v0, %s14791_s22 }
0x1200   :  { %8874 = vrot.lane.b32.xlu0 %v15967_v11, %s14791_s22 }
0x1203   :  { %9110 = vrot.lane.b32.xlu1 %v15979_v4, %s14790_s21 }
0x1204   :  { %9032 = vrot.lane.b32.xlu0 %v15971_v54, %s14790_s21 }
0x1252   :  { %v8180_v31 = vpop.xlane.xlu0 %8179 }
0x1253   :  { %v8202_v13 = vsub.f32 %v8170_v61, %v8180_v31 }
0x1255   :  { %v8210_v10 = vmul.f32 1.442695, %v8202_v13 }
0x1256   :  { %v8186_v3 = vpop.xlane.xlu0 %8185 }
0x1257   :  { %14527 = vpow2.f32 %v8210_v10  ;;  %v8183_v51 = vpop.xlane.xlu1 %8182  ;;  %v8204_v53 = vsub.f32 %v8172_v15, %v8186_v3 }
0x1258   :  { %v8203_v49 = vsub.f32 %v8171_v22, %v8183_v51 }
0x1259   :  { %v8214_v2 = vmul.f32 1.442695, %v8204_v53 }
0x125a   :  { %v8212_v16 = vmul.f32 1.442695, %v8203_v49 }
0x125b   :  { %14529 = vpow2.f32 %v8214_v2  ;;  %v8192_v30 = vpop.xlane.xlu1 %8191  ;;  %v8189_v17 = vpop.xlane.xlu0 %8188 }
0x125c   :  { %14531 = vpow2.f32 %v8212_v16  ;;  %v8206_v6 = vsub.f32 %v8174_v12, %v8192_v30  ;;  %v8205_v38 = vsub.f32 %v8173_v60, %v8189_v17 }
0x125e   :  { %v8218_v29 = vmul.f32 1.442695, %v8206_v6  ;;  %v8216_v24 = vmul.f32 1.442695, %v8205_v38 }
0x125f   :  { %v8198_v44 = vpop.xlane.xlu1 %8197  ;;  %v8195_v48 = vpop.xlane.xlu0 %8194 }
0x1260   :  { %14533 = vpow2.f32 %v8218_v29  ;;  %v8208_v61 = vsub.f32 %v8176_v8, %v8198_v44  ;;  %v8207_v1 = vsub.f32 %v8175_v37, %v8195_v48 }
0x1261   :  { %14535 = vpow2.f32 %v8216_v24 }
0x1262   :  { %v8222_v55 = vmul.f32 1.442695, %v8208_v61  ;;  %v8220_v21 = vmul.f32 1.442695, %v8207_v1 }
0x1263   :  { %v8267_v15 = vpop.permute.xlu1 %8266  ;;  %v8201_v22 = vpop.xlane.xlu0 %8200 }
0x1264   :  { %v16285_v35 = vpop.eup %14527  ;;  %14537 = vpow2.f32 %v8222_v55  ;;  %v8209_v25 = vsub.f32 %v8177_v42, %v8201_v22  ;;  %13868 = vmatpush3.msra.mxu1 %v8267_v15 }
0x1265   :  { %14539 = vpow2.f32 %v8220_v21  ;;  %v8226_v12 = vsel %vm239_vm2, %v16285_v35, 0.0  ;;  %13877 = vmatprep.subr.mxu1 %v17127_v14 }
0x1266   :  { %v8224_v60 = vmul.f32 1.442695, %v8209_v25  ;;  %8227 = vadd.xlane.f32.xlu1 %v8226_v12 }
0x1267   :  { %v8343_v8 = vpop.permute.xlu0 %8342  ;;  %v8419_v16 = vpop.permute.xlu1 %8418 }
0x1268   :  { %v16290_v37 = vpop.eup %14529  ;;  %14541 = vpow2.f32 %v8224_v60  ;;  %13873 = vmatpush3.msra.mxu0 %v8343_v8 }
0x1269   :  { %v16292_v59 = vpop.eup %14531  ;;  %v8232_v58 = vsel %vm239_vm2, %v16290_v37, 0.0  ;;  %13882 = vmatprep.subr.mxu0 %v17127_v14 }
0x126a   :  { %v8229_v42 = vsel %vm239_vm2, %v16292_v59, 0.0  ;;  %8233 = vadd.xlane.f32.xlu1 %v8232_v58 }
0x126b   :  { %8230 = vadd.xlane.f32.xlu0 %v8229_v42  ;;  %v8495_v30 = vpop.permute.xlu1 %8494  ;;  %v8571_v6 = vpop.permute.xlu0 %8570 }
0x126d   :  { %v16299_v39 = vpop.eup %14533 }
0x126e   :  { %v16301_v46 = vpop.eup %14535  ;;  %v8238_v31 = vsel %vm239_vm2, %v16299_v39, 0.0 }
0x126f   :  { %8239 = vadd.xlane.f32.xlu1 %v8238_v31  ;;  %v8235_v13 = vsel %vm239_vm2, %v16301_v46, 0.0  ;;  %v8647_v17 = vpop.permute.xlu1 %8646  ;;  %v8723_v29 = vpop.permute.xlu0 %8722 }
0x1270   :  { %8236 = vadd.xlane.f32.xlu0 %v8235_v13 }
0x1271   :  { %v16307_v10 = vpop.eup %14537 }
0x1272   :  { %v16309_v3 = vpop.eup %14539  ;;  %v8244_v51 = vsel %vm239_vm2, %v16307_v10, 0.0 }
0x1273   :  { %8245 = vadd.xlane.f32.xlu1 %v8244_v51  ;;  %v8241_v53 = vsel %vm239_vm2, %v16309_v3, 0.0  ;;  %v16339_v38 = vpop.permute.xlu1 %8798  ;;  %v8877_v44 = vpop.permute.xlu0 %8876 }
0x1274   :  { %8242 = vadd.xlane.f32.xlu0 %v8241_v53 }
0x1275   :  { %v16315_v49 = vpop.eup %14541 }
0x1276   :  { %v8247_v2 = vsel %vm239_vm2, %v16315_v49, 0.0 }
0x1277   :  { %v16341_v24 = vpop.permute.xlu1 %8954  ;;  %v16345_v61 = vpop.permute.xlu0 %8874 }
0x1278   :  { %8248 = vadd.xlane.f32.xlu0 %v8247_v2 }
0x127b   :  { %v16343_v48 = vpop.permute.xlu1 %8952  ;;  %v16349_v21 = vpop.permute.xlu0 %9032 }
0x127f   :  { %v16347_v1 = vpop.permute.xlu1 %9110 }
0x1284   :  { %9108 = vrot.lane.b32.xlu1 %v15979_v4, %s14791_s22 }
0x1288   :  { %9266 = vrot.lane.b32.xlu1 %v15989_v18, %s14790_s21 }
0x128c   :  { %9264 = vrot.lane.b32.xlu1 %v15989_v18, %s14791_s22 }
0x128e   :  { %9030 = vrot.lane.b32.xlu0 %v15971_v54, %s14791_s22 }
0x1290   :  { %9422 = vrot.lane.b32.xlu1 %v15995_v19, %s14790_s21 }
0x1292   :  { %9188 = vrot.lane.b32.xlu0 %v15981_v47, %s14790_s21 }
0x1294   :  { %9420 = vrot.lane.b32.xlu1 %v15995_v19, %s14791_s22 }
0x1296   :  { %9186 = vrot.lane.b32.xlu0 %v15981_v47, %s14791_s22 }
0x129a   :  { %9344 = vrot.lane.b32.xlu0 %v15987_v9, %s14790_s21 }
0x129e   :  { %9342 = vrot.lane.b32.xlu0 %v15987_v9, %s14791_s22 }
0x12ef   :  { %v8228_v55 = vpop.xlane.xlu1 %8227 }
0x12f0   :  { %14543 = vrcp.f32 %v8228_v55 }
0x12f3   :  { %v8234_v15 = vpop.xlane.xlu1 %8233 }
0x12f4   :  { %14545 = vrcp.f32 %v8234_v15  ;;  %v8231_v22 = vpop.xlane.xlu0 %8230 }
0x12f5   :  { %14547 = vrcp.f32 %v8231_v22 }
0x12f8   :  { %v8240_v25 = vpop.xlane.xlu1 %8239 }
0x12f9   :  { %14549 = vrcp.f32 %v8240_v25  ;;  %v8237_v12 = vpop.xlane.xlu0 %8236 }
0x12fa   :  { %14551 = vrcp.f32 %v8237_v12 }
0x12fc   :  { %v8246_v60 = vpop.xlane.xlu1 %8245 }
0x12fd   :  { %v14544_v8 = vpop.eup %14543  ;;  %14553 = vrcp.f32 %v8246_v60  ;;  %v8243_v58 = vpop.xlane.xlu0 %8242 }
0x12fe   :  { %14555 = vrcp.f32 %v8243_v58  ;;  %v8258_v42 = vmul.f32 %v14544_v8, %v16285_v35 }
0x1300   :  { %13870 = vmatmul.mubr.msk.f32.vlgmr.msra.gmra.mxu1 %vm239_vm2, %v8258_v42 }
0x1301   :  { %v14546_v31 = vpop.eup %14545  ;;  %v8249_v13 = vpop.xlane.xlu0 %8248  ;;  %13878 = vmatpush3.msra.mxu1 %v8419_v16  ;;  %13879 = vmatprep.mubr.msk.f32.mxu1 %vm14785_vm1, %v17127_v14 }
0x1302   :  { %v14548_v51 = vpop.eup %14547  ;;  %14557 = vrcp.f32 %v8249_v13  ;;  %13887 = vmatprep.subr.mxu1 %v17127_v14  ;;  %v8260_v53 = vmul.f32 %v14546_v31, %v16290_v37 }
0x1303   :  { %v8259_v2 = vmul.f32 %v14548_v51, %v16292_v59  ;;  %v9109_v59 = vpop.permute.xlu1 %9108 }
0x1304   :  { %13880 = vmatmul.mubr.msk.f32.vlgmr.msra.gmra.mxu1 %vm239_vm2, %v8260_v53 }
0x1305   :  { %v9031_v55 = vpop.permute.xlu0 %9030  ;;  %13875 = vmatmul.mubr.msk.f32.vlgmr.msra.gmra.mxu0 %vm239_vm2, %v8259_v2  ;;  %13888 = vmatpush3.msra.mxu1 %v8571_v6 }
0x1306   :  { %v14550_v35 = vpop.eup %14549  ;;  %13883 = vmatpush3.msra.mxu0 %v8495_v30  ;;  %13889 = vmatprep.mubr.msk.f32.mxu1 %vm14785_vm1, %v17127_v14 }
0x1307   :  { %v14552_v16 = vpop.eup %14551  ;;  %v8262_v15 = vmul.f32 %v14550_v35, %v16299_v39  ;;  %13884 = vmatprep.mubr.msk.f32.mxu0 %vm14785_vm1, %v17127_v14  ;;  %13892 = vmatprep.subr.mxu0 %v17127_v14 }
0x1308   :  { %13897 = vmatprep.subr.mxu1 %v17127_v14  ;;  %v8261_v37 = vmul.f32 %v14552_v16, %v16301_v46 }
0x1309   :  { %13890 = vmatmul.mubr.msk.f32.vlgmr.msra.gmra.mxu1 %vm239_vm2, %v8262_v15  ;;  %v9189_v30 = vpop.permute.xlu0 %9188 }
0x130a   :  { %v14554_v6 = vpop.eup %14553  ;;  %13885 = vmatmul.mubr.msk.f32.vlgmr.msra.gmra.mxu0 %vm239_vm2, %v8261_v37  ;;  %13898 = vmatpush3.msra.mxu1 %v8723_v29 }
0x130b   :  { %v14556_v22 = vpop.eup %14555  ;;  %v8264_v39 = vmul.f32 %v14554_v6, %v16307_v10  ;;  %13893 = vmatpush3.msra.mxu0 %v8647_v17  ;;  %13894 = vmatprep.mubr.msk.f32.mxu0 %vm14785_vm1, %v17127_v14  ;;  %v9267_v10 = vpop.permute.xlu1 %9266 }
0x130c   :  { %v8263_v25 = vmul.f32 %v14556_v22, %v16309_v3  ;;  %13899 = vmatprep.mubr.msk.f32.mxu1 %vm14785_vm1, %v17127_v14  ;;  %13902 = vmatprep.subr.mxu0 %v17127_v14 }
0x130d   :  { %13907 = vmatprep.subr.mxu1 %v17127_v14  ;;  %13900 = vmatmul.mubr.msk.f32.vlgmr.msra.gmra.mxu1 %vm239_vm2, %v8264_v39  ;;  %v9187_v17 = vpop.permute.xlu0 %9186 }
0x130e   :  { %13895 = vmatmul.mubr.msk.f32.vlgmr.msra.gmra.mxu0 %vm239_vm2, %v8263_v25  ;;  %13908 = vmatpush3.xpose.msk.msra.mxu1 %vm239_vm2, %v8877_v44 }
0x130f   :  { %v14558_v46 = vpop.eup %14557  ;;  %13903 = vmatpush3.msra.mxu0 %v16339_v38  ;;  %13904 = vmatprep.mubr.msk.f32.mxu0 %vm14785_vm1, %v17127_v14 }
0x1310   :  { %v8265_v3 = vmul.f32 %v14558_v46, %v16315_v49  ;;  %13909 = vmatprep.mubr.msk.f32.mxu1 %vm14785_vm1, %v17127_v14  ;;  %13912 = vmatprep.subr.mxu0 %v17127_v14  ;;  %v9265_v49 = vpop.permute.xlu1 %9264 }
0x1311   :  { %13917 = vmatprep.subr.mxu1 %v17127_v14  ;;  %13910 = vmatmul.mubr.msk.f32.vlgmr.msra.gmra.mxu1 %vm239_vm2, %v16345_v61  ;;  %v9345_v38 = vpop.permute.xlu0 %9344 }
0x1312   :  { %13905 = vmatmul.mubr.msk.f32.vlgmr.msra.gmra.mxu0 %vm239_vm2, %v8265_v3  ;;  %13918 = vmatpush3.xpose.msk.msra.mxu1 %vm239_vm2, %v16349_v21 }
0x1313   :  { %13913 = vmatpush3.xpose.msk.msra.mxu0 %vm239_vm2, %v16341_v24  ;;  %13914 = vmatprep.mubr.msk.f32.mxu0 %vm14785_vm1, %v17127_v14 }
0x1314   :  { %13919 = vmatprep.mubr.msk.f32.mxu1 %vm14785_vm1, %v17127_v14  ;;  %13922 = vmatprep.subr.mxu0 %v17127_v14  ;;  %v9423_v29 = vpop.permute.xlu1 %9422 }
0x1315   :  { %13927 = vmatprep.subr.mxu1 %v17127_v14  ;;  %13920 = vmatmul.mubr.msk.f32.vlgmr.msra.gmra.mxu1 %vm239_vm2, %v9031_v55  ;;  %v9343_v24 = vpop.permute.xlu0 %9342 }
0x1316   :  { %13915 = vmatmul.mubr.msk.f32.vlgmr.msra.gmra.mxu0 %vm239_vm2, %v16343_v48  ;;  %13928 = vmatpush3.xpose.msk.msra.mxu1 %vm239_vm2, %v9189_v30 }
0x1317   :  { %13923 = vmatpush3.xpose.msk.msra.mxu0 %vm239_vm2, %v16347_v1  ;;  %13924 = vmatprep.mubr.msk.f32.mxu0 %vm14785_vm1, %v17127_v14 }
0x1318   :  { %13929 = vmatprep.mubr.msk.f32.mxu1 %vm14785_vm1, %v17127_v14  ;;  %13932 = vmatprep.subr.mxu0 %v17127_v14  ;;  %v9421_v44 = vpop.permute.xlu1 %9420 }
0x1319   :  { %13937 = vmatprep.subr.mxu1 %v17127_v14  ;;  %13930 = vmatmul.mubr.msk.f32.vlgmr.msra.gmra.mxu1 %vm239_vm2, %v9187_v17 }
0x131a   :  { %13925 = vmatmul.mubr.msk.f32.vlgmr.msra.gmra.mxu0 %vm239_vm2, %v9109_v59  ;;  %13938 = vmatpush3.xpose.msk.msra.mxu1 %vm239_vm2, %v9345_v38 }
0x131b   :  { %13933 = vmatpush3.xpose.msk.msra.mxu0 %vm239_vm2, %v9267_v10  ;;  %13934 = vmatprep.mubr.msk.f32.mxu0 %vm14785_vm1, %v17127_v14 }
0x131c   :  { %13939 = vmatprep.mubr.msk.f32.mxu1 %vm14785_vm1, %v17127_v14  ;;  %13942 = vmatprep.subr.mxu0 %v17127_v14 }
0x131d   :  { %13940 = vmatmul.mubr.msk.f32.vlgmr.msra.gmra.mxu1 %vm239_vm2, %v9343_v24  ;;  %13947 = vmatprep.subr.mxu1 %v17127_v14 }
0x131e   :  { %13935 = vmatmul.mubr.msk.f32.vlgmr.msra.gmra.mxu0 %vm239_vm2, %v9265_v49  ;;  %13949 = vmatprep.mubr.msk.f32.mxu1 %vm14785_vm1, %v17127_v14 }
0x131f   :  { %13943 = vmatpush3.xpose.msk.msra.mxu0 %vm239_vm2, %v9423_v29  ;;  %13944 = vmatprep.mubr.msk.f32.mxu0 %vm14785_vm1, %v17127_v14 }
0x1320   :  { %13952 = vmatprep.subr.mxu0 %v17127_v14 }
0x1322   :  { %13945 = vmatmul.mubr.msk.f32.vlgmr.msra.gmra.mxu0 %vm239_vm2, %v9421_v44 }
0x1323   :  { %13954 = vmatprep.mubr.msk.f32.mxu0 %vm14785_vm1, %v17127_v14 }
0x13c0   :  { %v16435_v48 = vpop.f32.mrf.mxu1 }
0x13c2   :  { %v13871_v61 = vpop.f32.mrf.mxu1 }
0x13c4   :  { %v16437_v1 = vpop.f32.mrf.mxu1 }
0x13c5   :  { %v16439_v21 = vpop.f32.mrf.mxu0 }
0x13c6   :  { %v13881_v60 = vpop.f32.mrf.mxu1 }
0x13c7   :  { %v13876_v8 = vpop.f32.mrf.mxu0 }
0x13c9   :  { %v16443_v58 = vpop.f32.mrf.mxu1 }
0x13ca   :  { %v16445_v42 = vpop.f32.mrf.mxu0 }
0x13cb   :  { %v13891_v13 = vpop.f32.mrf.mxu1 }
0x13cc   :  { %v13886_v51 = vpop.f32.mrf.mxu0 }
0x13cd   :  { %v16449_v53 = vpop.f32.mrf.mxu1 }
0x13ce   :  { %v16451_v2 = vpop.f32.mrf.mxu0 }
0x13cf   :  { %v13901_v35 = vpop.f32.mrf.mxu1 }
0x13d0   :  { %v13896_v16 = vpop.f32.mrf.mxu0 }
0x13d1   :  { %v8948_v15 = vpop.f32.mrf.mxu1 }
0x13d2   :  { %v16455_v37 = vpop.f32.mrf.mxu0  ;;  %v9498_v59 = vmul.f32 0.35355338, %v8948_v15 }
0x13d3   :  { %v13911_v30 = vpop.f32.mrf.mxu1 }
0x13d4   :  { %v13906_v22 = vpop.f32.mrf.mxu0  ;;  %v9506_v39 = vsel %vm239_vm2, %v9498_v59, -inf }
0x13d5   :  { %9507 = vmax.xlane.f32.xlu0 %v9506_v39  ;;  %v9104_v25 = vpop.f32.mrf.mxu1 }
0x13d6   :  { %v9026_v46 = vpop.f32.mrf.mxu0  ;;  %v9500_v10 = vmul.f32 0.35355338, %v9104_v25 }
0x13d7   :  { %v9499_v3 = vmul.f32 0.35355338, %v9026_v46  ;;  %v13921_v17 = vpop.f32.mrf.mxu1 }
0x13d8   :  { %v13916_v49 = vpop.f32.mrf.mxu0  ;;  %v9512_v38 = vsel %vm239_vm2, %v9500_v10, -inf }
0x13d9   :  { %v9509_v29 = vsel %vm239_vm2, %v9499_v3, -inf  ;;  %9513 = vmax.xlane.f32.xlu0 %v9512_v38  ;;  %v9260_v24 = vpop.f32.mrf.mxu1 }
0x13da   :  { %9510 = vmax.xlane.f32.xlu1 %v9509_v29  ;;  %v9182_v44 = vpop.f32.mrf.mxu0  ;;  %v9502_v61 = vmul.f32 0.35355338, %v9260_v24 }
0x13db   :  { %v9501_v60 = vmul.f32 0.35355338, %v9182_v44  ;;  %v13931_v8 = vpop.f32.mrf.mxu1 }
0x13dc   :  { %v13926_v13 = vpop.f32.mrf.mxu0  ;;  %v9518_v51 = vsel %vm239_vm2, %v9502_v61, -inf }
0x13dd   :  { %v9515_v35 = vsel %vm239_vm2, %v9501_v60, -inf  ;;  %v9416_v16 = vpop.f32.mrf.mxu1 }
0x13de   :  { %v9338_v15 = vpop.f32.mrf.mxu0  ;;  %9516 = vmax.xlane.f32.xlu0 %v9515_v35  ;;  %9519 = vmax.xlane.f32.xlu1 %v9518_v51  ;;  %v9504_v30 = vmul.f32 0.35355338, %v9416_v16 }
0x13df   :  { %v9503_v22 = vmul.f32 0.35355338, %v9338_v15  ;;  %v13941_v39 = vpop.f32.mrf.mxu1 }
0x13e0   :  { %v13936_v25 = vpop.f32.mrf.mxu0  ;;  %v9524_v46 = vsel %vm239_vm2, %v9504_v30, -inf }
0x13e1   :  { %v9521_v17 = vsel %vm239_vm2, %v9503_v22, -inf }
0x13e2   :  { %v9494_v49 = vpop.f32.mrf.mxu0  ;;  %9522 = vmax.xlane.f32.xlu0 %v9521_v17  ;;  %9525 = vmax.xlane.f32.xlu1 %v9524_v46 }
0x13e3   :  { %v9505_v38 = vmul.f32 0.35355338, %v9494_v49 }
0x13e4   :  { %v13946_v29 = vpop.f32.mrf.mxu0 }
0x13e5   :  { %v9527_v24 = vsel %vm239_vm2, %v9505_v38, -inf }
0x13e6   :  { %9528 = vmax.xlane.f32.xlu0 %v9527_v24 }
0x13f3   :  { %9594 = vrot.lane.b32.xlu1 %v15967_v11, %s14792_s23 }
0x13f7   :  { %9746 = vrot.lane.b32.xlu1 %v15971_v54, %s14792_s23 }
0x13fb   :  { %9822 = vrot.lane.b32.xlu1 %v15979_v4, %s14792_s23 }
0x13fc   :  { %9670 = vrot.lane.b32.xlu0 %v15973_v0, %s14792_s23 }
0x13ff   :  { %9974 = vrot.lane.b32.xlu1 %v15989_v18, %s14792_s23 }
0x1400   :  { %9898 = vrot.lane.b32.xlu0 %v15981_v47, %s14792_s23 }
0x1403   :  { %10126 = vrot.lane.b32.xlu1 %v15995_v19, %s14792_s23 }
0x1404   :  { %10050 = vrot.lane.b32.xlu0 %v15987_v9, %s14792_s23 }
0x1407   :  { %10282 = vrot.lane.b32.xlu1 %v15973_v0, %s14793_s24 }
0x1408   :  { %10204 = vrot.lane.b32.xlu0 %v15967_v11, %s14793_s24 }
0x140b   :  { %10280 = vrot.lane.b32.xlu1 %v15973_v0, %s14794_s26 }
0x140c   :  { %10202 = vrot.lane.b32.xlu0 %v15967_v11, %s14794_s26 }
0x140f   :  { %10438 = vrot.lane.b32.xlu1 %v15979_v4, %s14793_s24 }
0x1410   :  { %10360 = vrot.lane.b32.xlu0 %v15971_v54, %s14793_s24 }
0x145e   :  { %v9508_v44 = vpop.xlane.xlu0 %9507 }
0x145f   :  { %v9530_v8 = vsub.f32 %v9498_v59, %v9508_v44 }
0x1461   :  { %v9538_v13 = vmul.f32 1.442695, %v9530_v8 }
0x1462   :  { %v9514_v51 = vpop.xlane.xlu0 %9513 }
0x1463   :  { %14559 = vpow2.f32 %v9538_v13  ;;  %v9511_v35 = vpop.xlane.xlu1 %9510  ;;  %v9532_v16 = vsub.f32 %v9500_v10, %v9514_v51 }
0x1464   :  { %v9531_v15 = vsub.f32 %v9499_v3, %v9511_v35 }
0x1465   :  { %v9542_v39 = vmul.f32 1.442695, %v9532_v16 }
0x1466   :  { %v9540_v25 = vmul.f32 1.442695, %v9531_v15 }
0x1467   :  { %14561 = vpow2.f32 %v9542_v39  ;;  %v9520_v46 = vpop.xlane.xlu1 %9519  ;;  %v9517_v17 = vpop.xlane.xlu0 %9516 }
0x1468   :  { %14563 = vpow2.f32 %v9540_v25  ;;  %v9534_v49 = vsub.f32 %v9502_v61, %v9520_v46  ;;  %v9533_v29 = vsub.f32 %v9501_v60, %v9517_v17 }
0x146a   :  { %v9546_v24 = vmul.f32 1.442695, %v9534_v49  ;;  %v9544_v57 = vmul.f32 1.442695, %v9533_v29 }
0x146b   :  { %v9526_v56 = vpop.xlane.xlu1 %9525  ;;  %v9523_v20 = vpop.xlane.xlu0 %9522 }
0x146c   :  { %14565 = vpow2.f32 %v9546_v24  ;;  %v9536_v59 = vsub.f32 %v9504_v30, %v9526_v56  ;;  %v9535_v44 = vsub.f32 %v9503_v22, %v9523_v20 }
0x146d   :  { %14567 = vpow2.f32 %v9544_v57 }
0x146e   :  { %v9550_v8 = vmul.f32 1.442695, %v9536_v59  ;;  %v9548_v13 = vmul.f32 1.442695, %v9535_v44 }
0x146f   :  { %v9595_v10 = vpop.permute.xlu1 %9594  ;;  %v9529_v3 = vpop.xlane.xlu0 %9528 }
0x1470   :  { %v16495_v51 = vpop.eup %14559  ;;  %14569 = vpow2.f32 %v9550_v8  ;;  %v9537_v35 = vsub.f32 %v9505_v38, %v9529_v3  ;;  %13948 = vmatpush3.msra.mxu1 %v9595_v10 }
0x1471   :  { %14571 = vpow2.f32 %v9548_v13  ;;  %v9554_v61 = vsel %vm239_vm2, %v16495_v51, 0.0  ;;  %13957 = vmatprep.subr.mxu1 %v17127_v14 }
0x1472   :  { %v9552_v60 = vmul.f32 1.442695, %v9537_v35  ;;  %9555 = vadd.xlane.f32.xlu1 %v9554_v61 }
0x1473   :  { %v9671_v56 = vpop.permute.xlu0 %9670  ;;  %v9747_v59 = vpop.permute.xlu1 %9746 }
0x1474   :  { %v16500_v20 = vpop.eup %14561  ;;  %14573 = vpow2.f32 %v9552_v60  ;;  %13953 = vmatpush3.msra.mxu0 %v9671_v56 }
0x1475   :  { %v16502_v57 = vpop.eup %14563  ;;  %v9560_v30 = vsel %vm239_vm2, %v16500_v20, 0.0  ;;  %13962 = vmatprep.subr.mxu0 %v17127_v14 }
0x1476   :  { %v9557_v22 = vsel %vm239_vm2, %v16502_v57, 0.0  ;;  %9561 = vadd.xlane.f32.xlu1 %v9560_v30 }
0x1477   :  { %9558 = vadd.xlane.f32.xlu0 %v9557_v22  ;;  %v9823_v44 = vpop.permute.xlu1 %9822  ;;  %v9899_v13 = vpop.permute.xlu0 %9898 }
0x1479   :  { %v16509_v38 = vpop.eup %14565 }
0x147a   :  { %v16511_v16 = vpop.eup %14567  ;;  %v9566_v15 = vsel %vm239_vm2, %v16509_v38, 0.0 }
0x147b   :  { %9567 = vadd.xlane.f32.xlu1 %v9566_v15  ;;  %v9563_v39 = vsel %vm239_vm2, %v16511_v16, 0.0  ;;  %v9975_v8 = vpop.permute.xlu1 %9974  ;;  %v10051_v3 = vpop.permute.xlu0 %10050 }
0x147c   :  { %9564 = vadd.xlane.f32.xlu0 %v9563_v39 }
0x147d   :  { %v16517_v25 = vpop.eup %14569 }
0x147e   :  { %v16519_v46 = vpop.eup %14571  ;;  %v9572_v17 = vsel %vm239_vm2, %v16517_v25, 0.0 }
0x147f   :  { %9573 = vadd.xlane.f32.xlu1 %v9572_v17  ;;  %v9569_v49 = vsel %vm239_vm2, %v16519_v46, 0.0  ;;  %v16549_v10 = vpop.permute.xlu1 %10126  ;;  %v10205_v61 = vpop.permute.xlu0 %10204 }
0x1480   :  { %9570 = vadd.xlane.f32.xlu0 %v9569_v49 }
0x1481   :  { %v16525_v29 = vpop.eup %14573 }
0x1482   :  { %v9575_v24 = vsel %vm239_vm2, %v16525_v29, 0.0 }
0x1483   :  { %v16551_v35 = vpop.permute.xlu1 %10282  ;;  %v16555_v56 = vpop.permute.xlu0 %10202 }
0x1484   :  { %9576 = vadd.xlane.f32.xlu0 %v9575_v24 }
0x1487   :  { %v16553_v60 = vpop.permute.xlu1 %10280  ;;  %v16559_v15 = vpop.permute.xlu0 %10360 }
0x148b   :  { %v16557_v30 = vpop.permute.xlu1 %10438 }
0x1490   :  { %10436 = vrot.lane.b32.xlu1 %v15979_v4, %s14794_s26 }
0x1494   :  { %10594 = vrot.lane.b32.xlu1 %v15989_v18, %s14793_s24 }
0x1498   :  { %10592 = vrot.lane.b32.xlu1 %v15989_v18, %s14794_s26 }
0x149a   :  { %10358 = vrot.lane.b32.xlu0 %v15971_v54, %s14794_s26 }
0x149c   :  { %10750 = vrot.lane.b32.xlu1 %v15995_v19, %s14793_s24 }
0x149e   :  { %10516 = vrot.lane.b32.xlu0 %v15981_v47, %s14793_s24 }
0x14a0   :  { %10748 = vrot.lane.b32.xlu1 %v15995_v19, %s14794_s26 }
0x14a2   :  { %10514 = vrot.lane.b32.xlu0 %v15981_v47, %s14794_s26 }
0x14a6   :  { %10672 = vrot.lane.b32.xlu0 %v15987_v9, %s14793_s24  ;;  %s14798_s24 = smov [#allocation11]  }
0x14aa   :  { %10670 = vrot.lane.b32.xlu0 %v15987_v9, %s14794_s26  ;;  %s12734_s26 = sshll.u32 %s14798_s24, 4  ;;  %s12735_s26 = int_to_ptr.vmem [resolvable:$true] %s12734_s26 }
0x14ab   :  { %p14752_p12 = scmp.lt.s32.totalorder %s12735_s26, %s12735_s26 }
0x14fb   :  { %v9556_v22 = vpop.xlane.xlu1 %9555 }
0x14fc   :  { %14575 = vrcp.f32 %v9556_v22  ;;  %v17129_v22 = vmov 0.0  }
0x14ff   :  { %v9562_v39 = vpop.xlane.xlu1 %9561 }
0x1500   :  { %14577 = vrcp.f32 %v9562_v39  ;;  %v9559_v17 = vpop.xlane.xlu0 %9558 }
0x1501   :  { %14579 = vrcp.f32 %v9559_v17 }
0x1504   :  { %v9568_v49 = vpop.xlane.xlu1 %9567 }
0x1505   :  { %14581 = vrcp.f32 %v9568_v49  ;;  %v9565_v24 = vpop.xlane.xlu0 %9564 }
0x1506   :  { %14583 = vrcp.f32 %v9565_v24 }
0x1508   :  { %v9574_v45 = vpop.xlane.xlu1 %9573 }
0x1509   :  { %v14576_v55 = vpop.eup %14575  ;;  %14585 = vrcp.f32 %v9574_v45  ;;  %v9571_v12 = vpop.xlane.xlu0 %9570 }
0x150a   :  { %v9586_v6 = vmul.f32 %v14576_v55, %v16495_v51  ;;  %14587 = vrcp.f32 %v9571_v12 }
0x150c   :  { %13950 = vmatmul.mubr.msk.f32.vlgmr.msra.gmra.mxu1 %vm239_vm2, %v9586_v6 }
0x150d   :  { %v14578_v31 = vpop.eup %14577  ;;  %v9577_v14 = vpop.xlane.xlu0 %9576  ;;  %13958 = vmatpush3.msra.mxu1 %v9747_v59  ;;  %13959 = vmatprep.mubr.msk.f32.mxu1 %vm14785_vm1, %v17129_v22 }
0x150e   :  { %v14580_v39 = vpop.eup %14579  ;;  %v9588_v17 = vmul.f32 %v14578_v31, %v16500_v20  ;;  %14589 = vrcp.f32 %v9577_v14  ;;  %13967 = vmatprep.subr.mxu1 %v17129_v22  ;;  %v10437_v31 = vpop.permute.xlu1 %10436 }
0x150f   :  { %v9587_v45 = vmul.f32 %v14580_v39, %v16502_v57 }
0x1510   :  { %13960 = vmatmul.mubr.msk.f32.vlgmr.msra.gmra.mxu1 %vm239_vm2, %v9588_v17 }
0x1511   :  { %v10359_v55 = vpop.permute.xlu0 %10358  ;;  %13955 = vmatmul.mubr.msk.f32.vlgmr.msra.gmra.mxu0 %vm239_vm2, %v9587_v45  ;;  %13968 = vmatpush3.msra.mxu1 %v9899_v13 }
0x1512   :  { %v14582_v12 = vpop.eup %14581  ;;  %13963 = vmatpush3.msra.mxu0 %v9823_v44  ;;  %13969 = vmatprep.mubr.msk.f32.mxu1 %vm14785_vm1, %v17129_v22 }
0x1513   :  { %v14584_v6 = vpop.eup %14583  ;;  %v9590_v51 = vmul.f32 %v14582_v12, %v16509_v38  ;;  %13964 = vmatprep.mubr.msk.f32.mxu0 %vm14785_vm1, %v17129_v22  ;;  %13972 = vmatprep.subr.mxu0 %v17129_v22 }
0x1514   :  { %v9589_v14 = vmul.f32 %v14584_v6, %v16511_v16  ;;  %13977 = vmatprep.subr.mxu1 %v17129_v22 }
0x1515   :  { %13970 = vmatmul.mubr.msk.f32.vlgmr.msra.gmra.mxu1 %vm239_vm2, %v9590_v51  ;;  %v10517_v57 = vpop.permute.xlu0 %10516 }
0x1516   :  { %v14586_v20 = vpop.eup %14585  ;;  %13965 = vmatmul.mubr.msk.f32.vlgmr.msra.gmra.mxu0 %vm239_vm2, %v9589_v14  ;;  %13978 = vmatpush3.msra.mxu1 %v10051_v3 }
0x1517   :  { %v14588_v59 = vpop.eup %14587  ;;  %v9592_v38 = vmul.f32 %v14586_v20, %v16517_v25  ;;  %13973 = vmatpush3.msra.mxu0 %v9975_v8  ;;  %13974 = vmatprep.mubr.msk.f32.mxu0 %vm14785_vm1, %v17129_v22  ;;  %v10595_v25 = vpop.permute.xlu1 %10594 }
0x1518   :  { %v9591_v44 = vmul.f32 %v14588_v59, %v16519_v46  ;;  %13979 = vmatprep.mubr.msk.f32.mxu1 %vm14785_vm1, %v17129_v22  ;;  %13982 = vmatprep.subr.mxu0 %v17129_v22 }
0x1519   :  { %13987 = vmatprep.subr.mxu1 %v17129_v22  ;;  %13980 = vmatmul.mubr.msk.f32.vlgmr.msra.gmra.mxu1 %vm239_vm2, %v9592_v38  ;;  %v10515_v8 = vpop.permute.xlu0 %10514 }
0x151a   :  { %13975 = vmatmul.mubr.msk.f32.vlgmr.msra.gmra.mxu0 %vm239_vm2, %v9591_v44  ;;  %13988 = vmatpush3.xpose.msk.msra.mxu1 %vm239_vm2, %v10205_v61 }
0x151b   :  { %v14590_v16 = vpop.eup %14589  ;;  %13983 = vmatpush3.msra.mxu0 %v16549_v10  ;;  %13984 = vmatprep.mubr.msk.f32.mxu0 %vm14785_vm1, %v17129_v22 }
0x151c   :  { %v9593_v46 = vmul.f32 %v14590_v16, %v16525_v29  ;;  %13989 = vmatprep.mubr.msk.f32.mxu1 %vm14785_vm1, %v17129_v22  ;;  %13992 = vmatprep.subr.mxu0 %v17129_v22  ;;  %v10593_v29 = vpop.permute.xlu1 %10592 }
0x151d   :  { %13997 = vmatprep.subr.mxu1 %v17129_v22  ;;  %13990 = vmatmul.mubr.msk.f32.vlgmr.msra.gmra.mxu1 %vm239_vm2, %v16555_v56  ;;  %v10673_v13 = vpop.permute.xlu0 %10672 }
0x151e   :  { %13985 = vmatmul.mubr.msk.f32.vlgmr.msra.gmra.mxu0 %vm239_vm2, %v9593_v46  ;;  %13998 = vmatpush3.xpose.msk.msra.mxu1 %vm239_vm2, %v16559_v15 }
0x151f   :  { %13993 = vmatpush3.xpose.msk.msra.mxu0 %vm239_vm2, %v16551_v35  ;;  %13994 = vmatprep.mubr.msk.f32.mxu0 %vm14785_vm1, %v17129_v22 }
0x1520   :  { %13999 = vmatprep.mubr.msk.f32.mxu1 %vm14785_vm1, %v17129_v22  ;;  %14002 = vmatprep.subr.mxu0 %v17129_v22  ;;  %v10751_v10 = vpop.permute.xlu1 %10750 }
0x1521   :  { %14007 = vmatprep.subr.mxu1 %v17129_v22  ;;  %14000 = vmatmul.mubr.msk.f32.vlgmr.msra.gmra.mxu1 %vm239_vm2, %v10359_v55  ;;  %v10671_v3 = vpop.permute.xlu0 %10670 }
0x1522   :  { %13995 = vmatmul.mubr.msk.f32.vlgmr.msra.gmra.mxu0 %vm239_vm2, %v16553_v60  ;;  %14008 = vmatpush3.xpose.msk.msra.mxu1 %vm239_vm2, %v10517_v57 }
0x1523   :  { %14003 = vmatpush3.xpose.msk.msra.mxu0 %vm239_vm2, %v16557_v30  ;;  %14004 = vmatprep.mubr.msk.f32.mxu0 %vm14785_vm1, %v17129_v22 }
0x1524   :  { %14009 = vmatprep.mubr.msk.f32.mxu1 %vm14785_vm1, %v17129_v22  ;;  %14012 = vmatprep.subr.mxu0 %v17129_v22  ;;  %v10749_v35 = vpop.permute.xlu1 %10748 }
0x1525   :  { %14017 = vmatprep.subr.mxu1 %v17129_v22  ;;  %14010 = vmatmul.mubr.msk.f32.vlgmr.msra.gmra.mxu1 %vm239_vm2, %v10515_v8 }
0x1526   :  { %14005 = vmatmul.mubr.msk.f32.vlgmr.msra.gmra.mxu0 %vm239_vm2, %v10437_v31  ;;  %14018 = vmatpush3.xpose.msk.msra.mxu1 %vm239_vm2, %v10673_v13 }
0x1527   :  { %14013 = vmatpush3.xpose.msk.msra.mxu0 %vm239_vm2, %v10595_v25  ;;  %14014 = vmatprep.mubr.msk.f32.mxu0 %vm14785_vm1, %v17129_v22 }
0x1528   :  { %14019 = vmatprep.mubr.msk.f32.mxu1 %vm14785_vm1, %v17129_v22  ;;  %14022 = vmatprep.subr.mxu0 %v17129_v22 }
0x1529   :  { %14020 = vmatmul.mubr.msk.f32.vlgmr.msra.gmra.mxu1 %vm239_vm2, %v10671_v3  ;;  %14027 = vmatprep.subr.mxu1 %v17129_v22 }
0x152a   :  { %14015 = vmatmul.mubr.msk.f32.vlgmr.msra.gmra.mxu0 %vm239_vm2, %v10593_v29  ;;  %14029 = vmatprep.mubr.msk.f32.mxu1 %vm14785_vm1, %v17129_v22 }
0x152b   :  { %14023 = vmatpush3.xpose.msk.msra.mxu0 %vm239_vm2, %v10751_v10  ;;  %14024 = vmatprep.mubr.msk.f32.mxu0 %vm14785_vm1, %v17129_v22 }
0x152c   :  { %14032 = vmatprep.subr.mxu0 %v17129_v22 }
0x152e   :  { %14025 = vmatmul.mubr.msk.f32.vlgmr.msra.gmra.mxu0 %vm239_vm2, %v10749_v35 }
0x152f   :  { %14034 = vmatprep.mubr.msk.f32.mxu0 %vm14785_vm1, %v17129_v22 }
0x15cc   :  { %v16645_v61 = vpop.f32.mrf.mxu1 }
0x15ce   :  { %v13951_v60 = vpop.f32.mrf.mxu1 }
0x15d0   :  { %v16647_v56 = vpop.f32.mrf.mxu1 }
0x15d1   :  { %v16649_v30 = vpop.f32.mrf.mxu0 }
0x15d2   :  { %v14265_v15 = vpack.i.bf16 %v16649_v30, %v16645_v61  ;;  %v13961_v49 = vpop.f32.mrf.mxu1 }
0x15d3   :  { %v13956_v24 = vpop.f32.mrf.mxu0 }
0x15d5   :  { %v16653_v39 = vpop.f32.mrf.mxu1 }
0x15d6   :  { %v16655_v17 = vpop.f32.mrf.mxu0 }
0x15d7   :  { %v14270_v45 = vpack.i.bf16 %v16655_v17, %v16647_v56  ;;  %v13971_v55 = vpop.f32.mrf.mxu1 }
0x15d8   :  { %v13966_v12 = vpop.f32.mrf.mxu0 }
0x15d9   :  { %v16659_v6 = vpop.f32.mrf.mxu1 }
0x15da   :  { %v16661_v51 = vpop.f32.mrf.mxu0 }
0x15db   :  { %v14290_v14 = vpack.i.bf16 %v16661_v51, %v16653_v39  ;;  %v13981_v31 = vpop.f32.mrf.mxu1 }
0x15dc   :  { %v13976_v20 = vpop.f32.mrf.mxu0 }
0x15dd   :  { %v10276_v57 = vpop.f32.mrf.mxu1 }
0x15de   :  { %v16665_v59 = vpop.f32.mrf.mxu0  ;;  %v10826_v38 = vmul.f32 0.35355338, %v10276_v57 }
0x15df   :  { %v13991_v16 = vpop.f32.mrf.mxu1 }
0x15e0   :  { %v13986_v25 = vpop.f32.mrf.mxu0  ;;  %v10834_v46 = vsel %vm239_vm2, %v10826_v38, -inf }
0x15e1   :  { %10835 = vmax.xlane.f32.xlu0 %v10834_v46  ;;  %v10432_v8 = vpop.f32.mrf.mxu1 }
0x15e2   :  { %v10354_v29 = vpop.f32.mrf.mxu0  ;;  %v10828_v13 = vmul.f32 0.35355338, %v10432_v8 }
0x15e3   :  { %v10827_v10 = vmul.f32 0.35355338, %v10354_v29  ;;  %v14001_v3 = vpop.f32.mrf.mxu1 }
0x15e4   :  { %v13996_v35 = vpop.f32.mrf.mxu0  ;;  %v10840_v60 = vsel %vm239_vm2, %v10828_v13, -inf }
0x15e5   :  { %v10837_v49 = vsel %vm239_vm2, %v10827_v10, -inf  ;;  %10841 = vmax.xlane.f32.xlu0 %v10840_v60  ;;  %v10588_v24 = vpop.f32.mrf.mxu1 }
0x15e6   :  { %10838 = vmax.xlane.f32.xlu1 %v10837_v49  ;;  %v10510_v55 = vpop.f32.mrf.mxu0  ;;  %v10830_v12 = vmul.f32 0.35355338, %v10588_v24 }
0x15e7   :  { %v10829_v31 = vmul.f32 0.35355338, %v10510_v55  ;;  %v14011_v20 = vpop.f32.mrf.mxu1 }
0x15e8   :  { %v14006_v57 = vpop.f32.mrf.mxu0  ;;  %v10846_v16 = vsel %vm239_vm2, %v10830_v12, -inf }
0x15e9   :  { %v10843_v25 = vsel %vm239_vm2, %v10829_v31, -inf  ;;  %v10744_v46 = vpop.f32.mrf.mxu1 }
0x15ea   :  { %v10666_v8 = vpop.f32.mrf.mxu0  ;;  %10844 = vmax.xlane.f32.xlu0 %v10843_v25  ;;  %10847 = vmax.xlane.f32.xlu1 %v10846_v16  ;;  %v10832_v29 = vmul.f32 0.35355338, %v10744_v46 }
0x15eb   :  { %v10831_v3 = vmul.f32 0.35355338, %v10666_v8  ;;  %v14021_v35 = vpop.f32.mrf.mxu1 }
0x15ec   :  { %v14016_v44 = vpop.f32.mrf.mxu0  ;;  %v10852_v60 = vsel %vm239_vm2, %v10832_v29, -inf }
0x15ed   :  { %v10849_v49 = vsel %vm239_vm2, %v10831_v3, -inf }
0x15ee   :  { %v10822_v24 = vpop.f32.mrf.mxu0  ;;  %10850 = vmax.xlane.f32.xlu0 %v10849_v49  ;;  %10853 = vmax.xlane.f32.xlu1 %v10852_v60 }
0x15ef   :  { %v10833_v55 = vmul.f32 0.35355338, %v10822_v24 }
0x15f0   :  { %v14026_v20 = vpop.f32.mrf.mxu0 }
0x15f1   :  { %v10855_v57 = vsel %vm239_vm2, %v10833_v55, -inf }
0x15f2   :  { %10856 = vmax.xlane.f32.xlu0 %v10855_v57 }
0x15ff   :  { %10922 = vrot.lane.b32.xlu1 %v15967_v11, %s14795_s8 }
0x1603   :  { %11074 = vrot.lane.b32.xlu1 %v15971_v54, %s14795_s8 }
0x1607   :  { %11150 = vrot.lane.b32.xlu1 %v15979_v4, %s14795_s8 }
0x1608   :  { %10998 = vrot.lane.b32.xlu0 %v15973_v0, %s14795_s8 }
0x160b   :  { %11302 = vrot.lane.b32.xlu1 %v15989_v18, %s14795_s8 }
0x160c   :  { %11226 = vrot.lane.b32.xlu0 %v15981_v47, %s14795_s8 }
0x166a   :  { %v10836_v44 = vpop.xlane.xlu0 %10835 }
0x166b   :  { %v10858_v16 = vsub.f32 %v10826_v38, %v10836_v44 }
0x166d   :  { %v10866_v25 = vmul.f32 1.442695, %v10858_v16 }
0x166e   :  { %v10842_v46 = vpop.xlane.xlu0 %10841 }
0x166f   :  { %14591 = vpow2.f32 %v10866_v25  ;;  %v10839_v11 = vpop.xlane.xlu1 %10838  ;;  %v10860_v8 = vsub.f32 %v10828_v13, %v10842_v46 }
0x1670   :  { %v10859_v54 = vsub.f32 %v10827_v10, %v10839_v11 }
0x1671   :  { %v10870_v35 = vmul.f32 1.442695, %v10860_v8 }
0x1672   :  { %v10868_v60 = vmul.f32 1.442695, %v10859_v54 }
0x1673   :  { %14593 = vpow2.f32 %v10870_v35  ;;  %v10848_v4 = vpop.xlane.xlu1 %10847  ;;  %v10845_v49 = vpop.xlane.xlu0 %10844 }
0x1674   :  { %14595 = vpow2.f32 %v10868_v60  ;;  %v10862_v0 = vsub.f32 %v10830_v12, %v10848_v4  ;;  %v10861_v24 = vsub.f32 %v10829_v31, %v10845_v49 }
0x1676   :  { %v10874_v18 = vmul.f32 1.442695, %v10862_v0  ;;  %v10872_v20 = vmul.f32 1.442695, %v10861_v24 }
0x1677   :  { %v10854_v57 = vpop.xlane.xlu1 %10853  ;;  %v10851_v47 = vpop.xlane.xlu0 %10850 }
0x1678   :  { %14597 = vpow2.f32 %v10874_v18  ;;  %v10864_v38 = vsub.f32 %v10832_v29, %v10854_v57  ;;  %v10863_v44 = vsub.f32 %v10831_v3, %v10851_v47 }
0x1679   :  { %14599 = vpow2.f32 %v10872_v20 }
0x167a   :  { %v10878_v16 = vmul.f32 1.442695, %v10864_v38  ;;  %v10876_v25 = vmul.f32 1.442695, %v10863_v44  ;;  %v17130_v38 = vpack.i.bf16 %v16445_v42, %v16437_v1  ;;  %v17131_v44 = vpack.i.bf16 %v16455_v37, %v16449_v53 }
0x167b   :  { %v10923_v13 = vpop.permute.xlu1 %10922  ;;  %v10857_v10 = vpop.xlane.xlu0 %10856  ;;  %v17133_v1 = vpack.i.bf16 %v16451_v2, %v16443_v58 }
0x167c   :  { %v14592_v46 = vpop.eup %14591  ;;  %14601 = vpow2.f32 %v10878_v16  ;;  %v10865_v11 = vsub.f32 %v10833_v55, %v10857_v10  ;;  %14028 = vmatpush3.msra.mxu1 %v10923_v13 }
0x167d   :  { %14603 = vpow2.f32 %v10876_v25  ;;  %v10882_v12 = vsel %vm239_vm2, %v14592_v46, 0.0  ;;  %14037 = vmatprep.subr.mxu1 %v17129_v22 }
0x167e   :  { %v10880_v31 = vmul.f32 1.442695, %v10865_v11  ;;  %10883 = vadd.xlane.f32.xlu1 %v10882_v12 }
0x167f   :  { %v10999_v8 = vpop.permute.xlu0 %10998 }
0x1680   :  { %v14594_v54 = vpop.eup %14593  ;;  %14605 = vpow2.f32 %v10880_v31  ;;  %14033 = vmatpush3.msra.mxu0 %v10999_v8 }
0x1681   :  { %v14596_v29 = vpop.eup %14595  ;;  %v10888_v3 = vsel %vm239_vm2, %v14594_v54, 0.0  ;;  %14042 = vmatprep.subr.mxu0 %v17129_v22 }
0x1682   :  { %v10885_v35 = vsel %vm239_vm2, %v14596_v29, 0.0  ;;  %10889 = vadd.xlane.f32.xlu1 %v10888_v3 }
0x1683   :  { %10886 = vadd.xlane.f32.xlu0 %v10885_v35  ;;  %v11227_v37 = vpop.permute.xlu0 %11226 }
0x1685   :  { %v14598_v55 = vpop.eup %14597 }
0x1686   :  { %v14600_v60 = vpop.eup %14599  ;;  %v10894_v4 = vsel %vm239_vm2, %v14598_v55, 0.0 }
0x1687   :  { %10895 = vadd.xlane.f32.xlu1 %v10894_v4  ;;  %v10891_v49 = vsel %vm239_vm2, %v14600_v60, 0.0 }
0x1688   :  { %10892 = vadd.xlane.f32.xlu0 %v10891_v49  ;;  %v14327_v49 = vld [vmem:[#allocation5 + $0x18] sm:$0xff]  }
0x1689   :  { %v16696_v0 = vpop.eup %14601 }
0x168a   :  { %v16698_v24 = vpop.eup %14603  ;;  %v10900_v18 = vsel %vm239_vm2, %v16696_v0, 0.0 }
0x168b   :  { %10901 = vadd.xlane.f32.xlu1 %v10900_v18  ;;  %v10897_v20 = vsel %vm239_vm2, %v16698_v24, 0.0 }
0x168c   :  { %10898 = vadd.xlane.f32.xlu0 %v10897_v20 }
0x168d   :  { %v16704_v57 = vpop.eup %14605 }
0x168e   :  { %v10903_v47 = vsel %vm239_vm2, %v16704_v57, 0.0 }
0x1690   :  { %10904 = vadd.xlane.f32.xlu0 %v10903_v47 }
0x169c   :  { %11454 = vrot.lane.b32.xlu1 %v15995_v19, %s14795_s8  ;;  %v17132_v19 = vpack.i.bf16 %v16439_v21, %v16435_v48 }
0x16a0   :  { %14261 = vrot.lane.b32.xlu1 %v17130_v38, %s14796_s17 }
0x16a4   :  { %14271 = vrot.lane.b32.xlu1 %v14270_v45, %s14780_s25 }
0x16a6   :  { %11378 = vrot.lane.b32.xlu0 %v15987_v9, %s14795_s8  ;;  %v11075_v9 = vpop.permute.xlu1 %11074  ;;  %s14747_s8 = scalar_lea.vmem %s12735_s26, 128 }
0x16a7   :  { %p14748_p11 = scmp.ne.s32.totalorder %s12735_s26, %s14747_s8  ;;  %p14753_p13 = scmp.lt.s32.totalorder %s14747_s8, %s14747_s8 }
0x16a8   :  { %14281 = vrot.lane.b32.xlu1 %v17131_v44, %s14796_s17 }
0x16a9   :  { %p14754_p0 = por %p14753_p13, %p14752_p12 }
0x16aa   :  { %14256 = vrot.lane.b32.xlu0 %v17132_v19, %s14796_s17  ;;  %v11151_v42 = vpop.permute.xlu1 %11150 }
0x16ab   :  { %p14755_p1 = pnand %p14754_p0, %p14748_p11 }
0x16ae   :  { %14266 = vrot.lane.b32.xlu0 %v14265_v15, %s14780_s25  ;;  %v11303_v56 = vpop.permute.xlu1 %11302 }
0x16b2   :  { %14276 = vrot.lane.b32.xlu0 %v17133_v1, %s14796_s17 }
0x1707   :  { %v10884_v53 = vpop.xlane.xlu1 %10883 }
0x1708   :  { %14607 = vrcp.f32 %v10884_v53 }
0x170b   :  { %v10890_v17 = vpop.xlane.xlu1 %10889 }
0x170c   :  { %14609 = vrcp.f32 %v10890_v17  ;;  %v10887_v48 = vpop.xlane.xlu0 %10886 }
0x170d   :  { %14611 = vrcp.f32 %v10887_v48 }
0x1710   :  { %v10896_v21 = vpop.xlane.xlu1 %10895 }
0x1711   :  { %14613 = vrcp.f32 %v10896_v21  ;;  %v10893_v45 = vpop.xlane.xlu0 %10892 }
0x1712   :  { %14615 = vrcp.f32 %v10893_v45  ;;  %v17134_v45 = vpack.i.bf16 %v16665_v59, %v16659_v6 }
0x1714   :  { %v10902_v61 = vpop.xlane.xlu1 %10901 }
0x1715   :  { %v14608_v30 = vpop.eup %14607  ;;  %14617 = vrcp.f32 %v10902_v61  ;;  %v10899_v15 = vpop.xlane.xlu0 %10898 }
0x1716   :  { %v10914_v58 = vmul.f32 %v14608_v30, %v14592_v46  ;;  %14619 = vrcp.f32 %v10899_v15 }
0x1718   :  { %14030 = vmatmul.mubr.msk.f32.vlgmr.msra.gmra.mxu1 %vm239_vm2, %v10914_v58 }
0x1719   :  { %v14610_v2 = vpop.eup %14609  ;;  %v10905_v16 = vpop.xlane.xlu0 %10904  ;;  %14038 = vmatpush3.msra.mxu1 %v11075_v9  ;;  %14039 = vmatprep.mubr.msk.f32.mxu1 %vm14785_vm1, %v17129_v22 }
0x171a   :  { %v14612_v25 = vpop.eup %14611  ;;  %v10916_v13 = vmul.f32 %v14610_v2, %v14594_v54  ;;  %14621 = vrcp.f32 %v10905_v16  ;;  %14047 = vmatprep.subr.mxu1 %v17129_v22 }
0x171b   :  { %v10915_v10 = vmul.f32 %v14612_v25, %v14596_v29 }
0x171c   :  { %14040 = vmatmul.mubr.msk.f32.vlgmr.msra.gmra.mxu1 %vm239_vm2, %v10916_v13 }
0x171d   :  { %14035 = vmatmul.mubr.msk.f32.vlgmr.msra.gmra.mxu0 %vm239_vm2, %v10915_v10  ;;  %14048 = vmatpush3.msra.mxu1 %v11227_v37  ;;  %v11379_v8 = vpop.permute.xlu0 %11378 }
0x171e   :  { %v14614_v46 = vpop.eup %14613  ;;  %14043 = vmatpush3.msra.mxu0 %v11151_v42  ;;  %14049 = vmatprep.mubr.msk.f32.mxu1 %vm14785_vm1, %v17129_v22 }
0x171f   :  { %v14616_v11 = vpop.eup %14615  ;;  %v10918_v12 = vmul.f32 %v14614_v46, %v14598_v55  ;;  %14044 = vmatprep.mubr.msk.f32.mxu0 %vm14785_vm1, %v17129_v22  ;;  %14052 = vmatprep.subr.mxu0 %v17129_v22  ;;  %v11455_v55 = vpop.permute.xlu1 %11454 }
0x1720   :  { %v10917_v31 = vmul.f32 %v14616_v11, %v14600_v60  ;;  %14057 = vmatprep.subr.mxu1 %v17129_v22 }
0x1721   :  { %14050 = vmatmul.mubr.msk.f32.vlgmr.msra.gmra.mxu1 %vm239_vm2, %v10918_v12  ;;  %v14257_v39 = vpop.permute.xlu0 %14256 }
0x1722   :  { %v14618_v54 = vpop.eup %14617  ;;  %14045 = vmatmul.mubr.msk.f32.vlgmr.msra.gmra.mxu0 %vm239_vm2, %v10917_v31  ;;  %14058 = vmatpush3.msra.mxu1 %v11379_v8  ;;  %v14259_v16 = vunpack.i.h.bf16 %v14257_v39  ;;  %v14258_v25 = vunpack.i.l.bf16 %v14257_v39 }
0x1723   :  { %v14620_v29 = vpop.eup %14619  ;;  %v10920_v3 = vmul.f32 %v14618_v54, %v16696_v0  ;;  %14053 = vmatpush3.msra.mxu0 %v11303_v56  ;;  %14054 = vmatprep.mubr.msk.f32.mxu0 %vm14785_vm1, %v17129_v22  ;;  %v14262_v51 = vpop.permute.xlu1 %14261 }
0x1724   :  { %v10919_v35 = vmul.f32 %v14620_v29, %v16698_v24  ;;  %14059 = vmatprep.mubr.msk.f32.mxu1 %vm14785_vm1, %v17129_v22  ;;  %14062 = vmatprep.subr.mxu0 %v17129_v22  ;;  %v14328_v24 = vld [vmem:[#allocation5 + $0x10] sm:$0xff]   ;;  %v14264_v46 = vunpack.i.h.bf16 %v14262_v51  ;;  %v14263_v11 = vunpack.i.l.bf16 %v14262_v51  ;;  %v11627_v59 = vsel %vm239_vm2, %v16235_v27, %v14259_v16 }
0x1725   :  { %14060 = vmatmul.mubr.msk.f32.vlgmr.msra.gmra.mxu1 %vm239_vm2, %v10920_v3  ;;  %14067 = vmatprep.subr.bf16.mxu1 %v14327_v49  ;;  %v11626_v12 = vsel %vm239_vm2, %v16233_v50, %v14258_v25 }
0x1726   :  { %14055 = vmatmul.mubr.msk.f32.vlgmr.msra.gmra.mxu0 %vm239_vm2, %v10919_v35  ;;  %14068 = vmatpush3.bf16.msra.mxu1 %v14327_v49  ;;  %v11629_v27 = vsel %vm239_vm2, %v16241_v33, %v14264_v46  ;;  %v11628_v50 = vsel %vm239_vm2, %v16237_v23, %v14263_v11 }
0x1727   :  { %v14622_v60 = vpop.eup %14621  ;;  %14063 = vmatpush3.msra.mxu0 %v11455_v55  ;;  %14064 = vmatprep.mubr.msk.f32.mxu0 %vm14785_vm1, %v17129_v22  ;;  %v14272_v58 = vpop.permute.xlu1 %14271 }
0x1728   :  { %v10921_v4 = vmul.f32 %v14622_v60, %v16704_v57  ;;  %14069 = vmatprep.subr.bf16.mxu1 %v14328_v24  ;;  %v14274_v35 = vunpack.i.h.bf16 %v14272_v58  ;;  %v14273_v55 = vunpack.i.l.bf16 %v14272_v58 }
0x172a   :  { %14065 = vmatmul.mubr.msk.f32.vlgmr.msra.gmra.mxu0 %vm239_vm2, %v10921_v4  ;;  %14070 = vmatpush3.bf16.msra.mxu1 %v14328_v24 }
0x172b   :  { %v14282_v31 = vpop.permute.xlu1 %14281 }
0x17d8   :  { %v10994_v0 = vpop.f32.mrf.mxu1 }
0x17da   :  { %v14031_v18 = vpop.f32.mrf.mxu1 }
0x17dc   :  { %v11146_v20 = vpop.f32.mrf.mxu1 }
0x17dd   :  { %v11070_v47 = vpop.f32.mrf.mxu0 }
0x17de   :  { %v14285_v38 = vpack.i.bf16 %v11070_v47, %v10994_v0  ;;  %v14041_v44 = vpop.f32.mrf.mxu1 }
0x17df   :  { %v14036_v19 = vpop.f32.mrf.mxu0  ;;  %v11636_v44 = vsel %vm5645_vm3, %v11628_v50, %v14273_v55  ;;  %v17136_v50 = vsub.s32 1, %v15779_v41 }
0x17e0   :  { %14286 = vrot.lane.b32.xlu0 %v14285_v38, %s14797_s27  ;;  %v11637_v19 = vsel %vm5645_vm3, %v11629_v27, %v14274_v35 }
0x17e1   :  { %v11298_v1 = vpop.f32.mrf.mxu1 }
0x17e2   :  { %v11222_v9 = vpop.f32.mrf.mxu0 }
0x17e3   :  { %v14295_v57 = vpack.i.bf16 %v11222_v9, %v11146_v20  ;;  %v14051_v42 = vpop.f32.mrf.mxu1 }
0x17e4   :  { %v14046_v56 = vpop.f32.mrf.mxu0  ;;  %14291 = vrot.lane.b32.xlu0 %v14290_v14, %s14780_s25  ;;  %v14267_v14 = vpop.permute.xlu0 %14266  ;;  %v14284_v42 = vunpack.i.h.bf16 %v14282_v31 }
0x17e5   :  { %14296 = vrot.lane.b32.xlu1 %v14295_v57, %s14797_s27  ;;  %v11450_v53 = vpop.f32.mrf.mxu1  ;;  %v14269_v13 = vunpack.i.h.bf16 %v14267_v14  ;;  %v14268_v10 = vunpack.i.l.bf16 %v14267_v14  ;;  %v14283_v56 = vunpack.i.l.bf16 %v14282_v31 }
0x17e6   :  { %v11374_v37 = vpop.f32.mrf.mxu0 }
0x17e7   :  { %v14305_v17 = vpack.i.bf16 %v11374_v37, %v11298_v1  ;;  %v14061_v48 = vpop.f32.mrf.mxu1  ;;  %v11634_v29 = vsel %vm5645_vm3, %v11626_v12, %v14268_v10  ;;  %v11635_v3 = vsel %vm5645_vm3, %v11627_v59, %v14269_v13  ;;  %v14329_v59 = vld [vmem:[#allocation7 + $0x18] sm:$0xff]   ;;  %v16815_v12 = vld [vmem:[%s17119_s7 + $0x4] sm:$0xf] }
0x17e8   :  { %v14056_v21 = vpop.f32.mrf.mxu0  ;;  %v14277_v2 = vpop.permute.xlu0 %14276  ;;  %14079 = vmatprep.subr.bf16.mxu0 %v14329_v59 }
0x17e9   :  { %14301 = vrot.lane.b32.xlu1 %v17134_v45, %s14780_s25  ;;  %14306 = vrot.lane.b32.xlu0 %v14305_v17, %s14797_s27  ;;  %v14279_v18 = vunpack.i.h.bf16 %v14277_v2  ;;  %v14278_v20 = vunpack.i.l.bf16 %v14277_v2 }
0x17ea   :  { %v11526_v61 = vpop.f32.mrf.mxu0  ;;  %14080 = vmatpush3.bf16.msra.mxu0 %v14329_v59 }
0x17eb   :  { %v14310_v30 = vpack.i.bf16 %v11526_v61, %v11450_v53  ;;  %v11631_v17 = vsel %vm239_vm2, %v16245_v40, %v14279_v18  ;;  %v11630_v48 = vsel %vm239_vm2, %v16239_v28, %v14278_v20  ;;  %v11633_v40 = vsel %vm239_vm2, %v16247_v26, %v14284_v42  ;;  %v14330_v26 = vld [vmem:[#allocation7 + $0x10] sm:$0xff]  }
0x17ec   :  { %v14066_v15 = vpop.f32.mrf.mxu0  ;;  %v11632_v28 = vsel %vm239_vm2, %v16243_v62, %v14283_v56  ;;  %14081 = vmatprep.subr.bf16.mxu0 %v14330_v26 }
0x17ed   :  { %14311 = vrot.lane.b32.xlu1 %v14310_v30, %s14797_s27 }
0x17ee   :  { %14082 = vmatpush3.bf16.msra.mxu0 %v14330_v26 }
0x17ef   :  { %14107 = vmatprep.subr.bf16.mxu0 %v17129_v22 }
0x1852   :  { %v14287_v6 = vpop.permute.xlu0 %14286 }
0x1853   :  { %v14289_v8 = vunpack.i.h.bf16 %v14287_v6  ;;  %v14288_v54 = vunpack.i.l.bf16 %v14287_v6 }
0x1855   :  { %v11642_v60 = vsel %vm5654_vm4, %v11634_v29, %v14288_v54  ;;  %v11643_v4 = vsel %vm5654_vm4, %v11635_v3, %v14289_v8  ;;  %v17135_v29 = vsub.s32 0, %v15779_v41 }
0x1856   :  { %v11650_v49 = vpack.c.bf16 %v11643_v4, %v11642_v60  ;;  %v14292_v0 = vpop.permute.xlu0 %14291 }
0x1857   :  { %v14297_v24 = vpop.permute.xlu1 %14296  ;;  %v14294_v1 = vunpack.i.h.bf16 %v14292_v0  ;;  %v14293_v9 = vunpack.i.l.bf16 %v14292_v0  ;;  %v11754_v3 = vrot.slane %v16815_v12, %v17135_v29 }
0x1858   :  { %v14299_v47 = vunpack.i.h.bf16 %v14297_v24  ;;  %v14298_v38 = vunpack.i.l.bf16 %v14297_v24  ;;  %14071 = vmatprep.mubr.msk.bf16.mxu1 %vm158_vm0, %v11650_v49  ;;  %v11766_v24 = vrot.slane %v16815_v12, %v17136_v50 }
0x1859   :  { %v11638_v61 = vsel %vm5645_vm3, %v11630_v48, %v14293_v9  ;;  %v11639_v30 = vsel %vm5645_vm3, %v11631_v17, %v14294_v1 }
0x185a   :  { %v11645_v57 = vsel %vm5654_vm4, %v11637_v19, %v14299_v47  ;;  %v11644_v33 = vsel %vm5654_vm4, %v11636_v44, %v14298_v38 }
0x185b   :  { %v11651_v23 = vpack.c.bf16 %v11645_v57, %v11644_v33  ;;  %v14302_v53 = vpop.permute.xlu1 %14301  ;;  %v14307_v37 = vpop.permute.xlu0 %14306 }
0x185c   :  { %v14309_v21 = vunpack.i.h.bf16 %v14307_v37  ;;  %v14308_v45 = vunpack.i.l.bf16 %v14307_v37  ;;  %v14304_v15 = vunpack.i.h.bf16 %v14302_v53  ;;  %v14303_v39 = vunpack.i.l.bf16 %v14302_v53 }
0x185d   :  { %14072 = vmatmul.mubr.msk.bf16.vlgmr.msra.gmra.mxu1 %vm158_vm0, %v11651_v23 }
0x185e   :  { %v11646_v51 = vsel %vm5654_vm4, %v11638_v61, %v14308_v45  ;;  %v11647_v14 = vsel %vm5654_vm4, %v11639_v30, %v14309_v21  ;;  %v11641_v13 = vsel %vm5645_vm3, %v11633_v40, %v14304_v15  ;;  %v11640_v10 = vsel %vm5645_vm3, %v11632_v28, %v14303_v39  ;;  %v14331_v21 = vld [vmem:[%s17118_s6 + $0x38] sm:$0xff]   ;;  %v14332_v45 = vld [vmem:[%s17118_s6 + $0x30] sm:$0xff]   ;;  %v14333_v61 = vld [vmem:[%s17118_s6 + $0x28] sm:$0xff]  }
0x185f   :  { %v11652_v58 = vpack.c.bf16 %v11647_v14, %v11646_v51  ;;  %v14312_v2 = vpop.permute.xlu1 %14311  ;;  %14091 = vmatprep.subr.bf16.mxu1 %v14331_v21  ;;  %v14334_v30 = vld [vmem:[%s17118_s6 + $0x20] sm:$0xff]  }
0x1860   :  { %v14314_v16 = vunpack.i.h.bf16 %v14312_v2  ;;  %v14313_v25 = vunpack.i.l.bf16 %v14312_v2  ;;  %14092 = vmatpush3.bf16.msra.mxu1 %v14331_v21  ;;  %v12991_v15 = vld [vmem:[#allocation8 + $0x1] ss:$0 sm:$0xff] }
0x1861   :  { %14075 = vmatprep.mubr.msk.bf16.mxu1 %vm158_vm0, %v11652_v58  ;;  %14093 = vmatprep.subr.bf16.mxu1 %v14332_v45 }
0x1862   :  { %v11649_v46 = vsel %vm5654_vm4, %v11641_v13, %v14314_v16  ;;  %v11648_v11 = vsel %vm5654_vm4, %v11640_v10, %v14313_v25 }
0x1863   :  { %v11653_v6 = vpack.c.bf16 %v11649_v46, %v11648_v11 }
0x1864   :  { %14094 = vmatpush3.bf16.msra.mxu1 %v14332_v45 }
0x1865   :  { %14076 = vmatmul.mubr.msk.bf16.gmra.mxu1 %vm158_vm0, %v11653_v6  ;;  %14095 = vmatprep.subr.bf16.mxu1 %v14333_v61 }
0x1868   :  { %14096 = vmatpush3.bf16.msra.mxu1 %v14333_v61 }
0x1869   :  { %14097 = vmatprep.subr.bf16.mxu1 %v14334_v30 }
0x186c   :  { %14098 = vmatpush3.bf16.msra.mxu1 %v14334_v30 }
0x186d   :  { %14123 = vmatprep.subr.bf16.mxu1 %v17129_v22 }
0x191d   :  { %v14073_v62 = vpop.f32.mrf.mxu1 }
0x191e   :  { %v11745_v54 = vadd.f32 %v14073_v62, %v15940_v43 }
0x191f   :  { %v11712_v31 = vpop.f32.mrf.mxu1 }
0x1920   :  { %v11743_v8 = vadd.f32 %v11712_v31, %v15935_v36  ;;  %v11757_v27 = vmul.f32 %v11754_v3, %v11745_v54 }
0x1921   :  { %v14074_v35 = vpop.f32.mrf.mxu1 }
0x1922   :  { %v11746_v55 = vadd.f32 %v14074_v35, %v15933_v63  ;;  %v11755_v4 = vmul.f32 %v11754_v3, %v11743_v8  ;;  %v16834_v44 = vadd.f32 %v11766_v24, %v11757_v27 }
0x1923   :  { %v11715_v60 = vpop.f32.mrf.mxu1 }
0x1924   :  { %v11758_v49 = vmul.f32 %v11754_v3, %v11746_v55  ;;  %v11744_v0 = vadd.f32 %v11715_v60, %v15937_v34  ;;  %v16829_v47 = vadd.f32 %v11766_v24, %v11755_v4 }
0x1925   :  { %v14077_v36 = vpop.f32.mrf.mxu1 }
0x1926   :  { %v11756_v18 = vmul.f32 %v11754_v3, %v11744_v0  ;;  %v16827_v43 = vadd.f32 %v11766_v24, %v11758_v49  ;;  %v11749_v34 = vadd.f32 %v14077_v36, %v15957_v5 }
0x1927   :  { %v11728_v20 = vpop.f32.mrf.mxu1 }
0x1928   :  { %v16831_v38 = vadd.f32 %v11766_v24, %v11756_v18  ;;  %v11747_v63 = vadd.f32 %v11728_v20, %v15953_v52  ;;  %v11776_v57 = vpack.c.bf16 %v16827_v43, %v16834_v44  ;;  %v11761_v52 = vmul.f32 %v11754_v3, %v11749_v34 }
0x1929   :  { %v14078_v19 = vpop.f32.mrf.mxu1 }
0x192a   :  { %v11775_v1 = vpack.c.bf16 %v16831_v38, %v16829_v47  ;;  %v11750_v9 = vadd.f32 %v14078_v19, %v15951_v7  ;;  %v11759_v42 = vmul.f32 %v11754_v3, %v11747_v63  ;;  %v16851_v7 = vadd.f32 %v11766_v24, %v11761_v52 }
0x192b   :  { %v11731_v33 = vpop.f32.mrf.mxu1 }
0x192c   :  { %v11762_v56 = vmul.f32 %v11754_v3, %v11750_v9  ;;  %v11748_v23 = vadd.f32 %v11731_v33, %v15955_v32  ;;  %14083 = vmatprep.mubr.msk.bf16.mxu0 %vm158_vm0, %v11775_v1  ;;  %v16847_v37 = vadd.f32 %v11766_v24, %v11759_v42 }
0x192d   :  { %14084 = vmatmul.mubr.msk.bf16.vlgmr.msra.gmra.mxu0 %vm158_vm0, %v11776_v57 }
0x192e   :  { %v11760_v5 = vmul.f32 %v11754_v3, %v11748_v23  ;;  %v16845_v53 = vadd.f32 %v11766_v24, %v11762_v56 }
0x1930   :  { %v16849_v17 = vadd.f32 %v11766_v24, %v11760_v5  ;;  %v11778_v32 = vpack.c.bf16 %v16845_v53, %v16851_v7 }
0x1932   :  { %v11777_v48 = vpack.c.bf16 %v16849_v17, %v16847_v37 }
0x1934   :  { %14087 = vmatprep.mubr.msk.bf16.mxu0 %vm158_vm0, %v11777_v48 }
0x1935   :  { %14088 = vmatmul.mubr.msk.bf16.gmra.mxu0 %vm158_vm0, %v11778_v32 }
0x1936   :  { %14111 = vmatprep.mubr.msk.bf16.mxu0 %vm14785_vm1, %v17129_v22 }
0x19ed   :  { %v14085_v39 = vpop.f32.mrf.mxu0 }
0x19ee   :  { %v16874_v51 = vadd.f32 %v14085_v39, %v12991_v15 }
0x19ef   :  { %v11843_v14 = vpop.f32.mrf.mxu0 }
0x19f0   :  { %v11876_v58 = vmul.f32 %v16874_v51, %v16874_v51  ;;  %v16878_v2 = vadd.f32 %v12991_v15, %v11843_v14 }
0x19f1   :  { %v14086_v40 = vpop.f32.mrf.mxu0 }
0x19f2   :  { %v11884_v28 = vmul.f32 %v11876_v58, %v16874_v51  ;;  %v11874_v16 = vmul.f32 %v16878_v2, %v16878_v2  ;;  %v16883_v25 = vadd.f32 %v14086_v40, %v12991_v15 }
0x19f3   :  { %v11846_v13 = vpop.f32.mrf.mxu0 }
0x19f4   :  { %v11892_v10 = vmul.f32 0.044715, %v11884_v28  ;;  %v11882_v46 = vmul.f32 %v11874_v16, %v16878_v2  ;;  %v11877_v11 = vmul.f32 %v16883_v25, %v16883_v25  ;;  %v16888_v6 = vadd.f32 %v12991_v15, %v11846_v13 }
0x19f5   :  { %v14089_v59 = vpop.f32.mrf.mxu0 }
0x19f6   :  { %v11900_v26 = vadd.f32 %v11892_v10, %v16874_v51  ;;  %v11890_v62 = vmul.f32 0.044715, %v11882_v46  ;;  %v11885_v31 = vmul.f32 %v11877_v11, %v16883_v25  ;;  %v11875_v8 = vmul.f32 %v16888_v6, %v16888_v6 }
0x19f7   :  { %v16894_v54 = vadd.f32 %v14089_v59, %v12991_v15  ;;  %v11859_v29 = vpop.f32.mrf.mxu0 }
0x19f8   :  { %v11908_v3 = vmul.f32 0.7978846, %v11900_v26  ;;  %v11898_v35 = vadd.f32 %v11890_v62, %v16878_v2  ;;  %v11893_v55 = vmul.f32 0.044715, %v11885_v31  ;;  %v11883_v60 = vmul.f32 %v11875_v8, %v16888_v6 }
0x19f9   :  { %v11880_v4 = vmul.f32 %v16894_v54, %v16894_v54  ;;  %v16900_v49 = vadd.f32 %v12991_v15, %v11859_v29  ;;  %v14090_v0 = vpop.f32.mrf.mxu0 }
0x19fa   :  { %v11906_v27 = vmul.f32 0.7978846, %v11898_v35  ;;  %v11901_v50 = vadd.f32 %v11893_v55, %v16883_v25  ;;  %v11891_v24 = vmul.f32 0.044715, %v11883_v60  ;;  %14623 = vtanh.f32 %v11908_v3 }
0x19fb   :  { %v11888_v36 = vmul.f32 %v11880_v4, %v16894_v54  ;;  %v11878_v18 = vmul.f32 %v16900_v49, %v16900_v49  ;;  %v11871_v20 = vadd.f32 %v14090_v0, %v12991_v15  ;;  %v11862_v63 = vpop.f32.mrf.mxu0 }
0x19fc   :  { %14625 = vtanh.f32 %v11906_v27  ;;  %v11909_v34 = vmul.f32 0.7978846, %v11901_v50  ;;  %v11899_v19 = vadd.f32 %v11891_v24, %v16888_v6  ;;  %v11863_v1 = vadd.f32 %v12991_v15, %v11862_v63 }
0x19fd   :  { %v11896_v9 = vmul.f32 0.044715, %v11888_v36  ;;  %v11886_v57 = vmul.f32 %v11878_v18, %v16900_v49  ;;  %v11881_v33 = vmul.f32 %v11871_v20, %v11871_v20 }
0x19fe   :  { %14627 = vtanh.f32 %v11909_v34  ;;  %v11907_v42 = vmul.f32 0.7978846, %v11899_v19  ;;  %v11879_v56 = vmul.f32 %v11863_v1, %v11863_v1 }
0x19ff   :  { %v11904_v23 = vadd.f32 %v11896_v9, %v16894_v54  ;;  %v11894_v52 = vmul.f32 0.044715, %v11886_v57  ;;  %v11889_v5 = vmul.f32 %v11881_v33, %v11871_v20 }
0x1a00   :  { %14629 = vtanh.f32 %v11907_v42  ;;  %v11887_v48 = vmul.f32 %v11879_v56, %v11863_v1 }
0x1a01   :  { %v11912_v32 = vmul.f32 0.7978846, %v11904_v23  ;;  %v11902_v21 = vadd.f32 %v11894_v52, %v16900_v49  ;;  %v11897_v45 = vmul.f32 0.044715, %v11889_v5  ;;  %v14335_v23 = vld [vmem:[#allocation10 + $0x18] sm:$0xff]   ;;  %v14336_v52 = vld [vmem:[#allocation10 + $0x28] sm:$0xff]  }
0x1a02   :  { %v11895_v61 = vmul.f32 0.044715, %v11887_v48  ;;  %14108 = vmatpush3.bf16.msra.mxu0 %v14335_v23  ;;  %v14337_v5 = vld [vmem:[#allocation10 + $0x10] sm:$0xff]  }
0x1a03   :  { %14631 = vtanh.f32 %v11912_v32  ;;  %v11910_v30 = vmul.f32 0.7978846, %v11902_v21  ;;  %v11905_v15 = vadd.f32 %v11897_v45, %v11871_v20  ;;  %14109 = vmatprep.subr.bf16.mxu0 %v17129_v22  ;;  %v17138_v32 = vsub.s32 3, %v15779_v41 }
0x1a04   :  { %v11903_v39 = vadd.f32 %v11895_v61, %v11863_v1 }
0x1a05   :  { %14633 = vtanh.f32 %v11910_v30  ;;  %v11913_v14 = vmul.f32 0.7978846, %v11905_v15  ;;  %v12074_v21 = vrot.slane %v16815_v12, %v17138_v32 }
0x1a06   :  { %v11911_v58 = vmul.f32 0.7978846, %v11903_v39  ;;  %14110 = vmatpush3.bf16.msra.mxu0 %v14337_v5 }
0x1a07   :  { %14635 = vtanh.f32 %v11913_v14  ;;  %v14624_v40 = vpop.eup %14623  ;;  %14115 = vmatprep.subr.bf16.mxu0 %v17129_v22 }
0x1a08   :  { %14637 = vtanh.f32 %v11911_v58  ;;  %v11924_v10 = vadd.f32 1.0, %v14624_v40 }
0x1a09   :  { %v14626_v28 = vpop.eup %14625 }
0x1a0a   :  { %v11922_v16 = vadd.f32 1.0, %v14626_v28  ;;  %v11932_v31 = vmul.f32 0.5, %v11924_v10 }
0x1a0b   :  { %v14628_v13 = vpop.eup %14627 }
0x1a0c   :  { %v11925_v46 = vadd.f32 1.0, %v14628_v13  ;;  %v11930_v59 = vmul.f32 0.5, %v11922_v16  ;;  %v11940_v4 = vmul.f32 %v11932_v31, %v16874_v51 }
0x1a0d   :  { %v14630_v11 = vpop.eup %14629 }
0x1a0e   :  { %v11933_v26 = vmul.f32 0.5, %v11925_v46  ;;  %v11923_v62 = vadd.f32 1.0, %v14630_v11  ;;  %v11938_v55 = vmul.f32 %v11930_v59, %v16878_v2 }
0x1a10   :  { %v14632_v8 = vpop.eup %14631  ;;  %v11931_v29 = vmul.f32 0.5, %v11923_v62  ;;  %v11941_v3 = vmul.f32 %v11933_v26, %v16883_v25 }
0x1a11   :  { %v11928_v0 = vadd.f32 1.0, %v14632_v8 }
0x1a12   :  { %v14634_v35 = vpop.eup %14633  ;;  %v11939_v60 = vmul.f32 %v11931_v29, %v16888_v6  ;;  %v11947_v18 = vpack.c.bf16 %v11941_v3, %v11940_v4 }
0x1a13   :  { %v11926_v27 = vadd.f32 1.0, %v14634_v35  ;;  %v11936_v9 = vmul.f32 0.5, %v11928_v0 }
0x1a14   :  { %v14636_v50 = vpop.eup %14635  ;;  %v11946_v24 = vpack.c.bf16 %v11939_v60, %v11938_v55 }
0x1a15   :  { %v14638_v36 = vpop.eup %14637  ;;  %v11929_v63 = vadd.f32 1.0, %v14636_v50  ;;  %v11934_v34 = vmul.f32 0.5, %v11926_v27  ;;  %v11944_v33 = vmul.f32 %v11936_v9, %v16894_v54  ;;  %v17137_v54 = vsub.s32 2, %v15779_v41 }
0x1a16   :  { %v11927_v19 = vadd.f32 1.0, %v14638_v36  ;;  %14099 = vmatprep.mubr.msk.bf16.mxu1 %vm5987_vm5, %v11946_v24 }
0x1a17   :  { %v11937_v25 = vmul.f32 0.5, %v11929_v63  ;;  %14100 = vmatmul.mubr.msk.bf16.vlgmr.msra.gmra.mxu1 %vm5987_vm5, %v11947_v18  ;;  %v11942_v6 = vmul.f32 %v11934_v34, %v16900_v49  ;;  %v12062_v49 = vrot.slane %v16815_v12, %v17137_v54 }
0x1a18   :  { %v11935_v2 = vmul.f32 0.5, %v11927_v19  ;;  %14124 = vmatpush3.bf16.msra.mxu1 %v14336_v52 }
0x1a19   :  { %v11945_v57 = vmul.f32 %v11937_v25, %v11871_v20  ;;  %v14338_v20 = vld [vmem:[#allocation10 + $0x20] sm:$0xff]   ;;  %14125 = vmatprep.subr.bf16.mxu1 %v17129_v22 }
0x1a1a   :  { %v11943_v51 = vmul.f32 %v11935_v2, %v11863_v1 }
0x1a1b   :  { %v11949_v56 = vpack.c.bf16 %v11945_v57, %v11944_v33 }
0x1a1c   :  { %v11948_v42 = vpack.c.bf16 %v11943_v51, %v11942_v6  ;;  %14126 = vmatpush3.bf16.msra.mxu1 %v14338_v20 }
0x1a1d   :  { %14139 = vmatprep.subr.bf16.mxu1 %v17129_v22 }
0x1a1e   :  { %14103 = vmatprep.mubr.msk.bf16.mxu1 %vm5987_vm5, %v11948_v42 }
0x1a1f   :  { %14104 = vmatmul.mubr.msk.bf16.gmra.mxu1 %vm5987_vm5, %v11949_v56 }
0x1a20   :  { %14127 = vmatprep.mubr.msk.bf16.mxu1 %vm14785_vm1, %v17129_v22 }
0x1ad7   :  { %v14101_v1 = vpop.f32.mrf.mxu1 }
0x1ad8   :  { %v12053_v48 = vadd.f32 %v14101_v1, %v16834_v44 }
0x1ad9   :  { %v12020_v45 = vpop.f32.mrf.mxu1 }
0x1ada   :  { %v12065_v61 = vmul.f32 %v12062_v49, %v12053_v48  ;;  %v12051_v30 = vadd.f32 %v12020_v45, %v16829_v47 }
0x1adb   :  { %v14102_v15 = vpop.f32.mrf.mxu1 }
0x1adc   :  { %v12077_v39 = vadd.f32 %v12074_v21, %v12065_v61  ;;  %v12063_v14 = vmul.f32 %v12062_v49, %v12051_v30  ;;  %v12054_v58 = vadd.f32 %v14102_v15, %v16827_v43 }
0x1add   :  { %v12023_v40 = vpop.f32.mrf.mxu1 }
0x1ade   :  { %v12089_v28 = vpack.c.bf16 %v12077_v39, %v12077_v39  ;;  %v12075_v16 = vadd.f32 %v12074_v21, %v12063_v14  ;;  %v12066_v13 = vmul.f32 %v12062_v49, %v12054_v58  ;;  %v12052_v10 = vadd.f32 %v12023_v40, %v16831_v38 }
0x1adf   :  { %v14105_v44 = vpop.f32.mrf.mxu1 }
0x1ae0   :  { %v16936_v46 = vunpack.c.l.b16 %v12089_v28  ;;  %v12087_v41 = vpack.c.bf16 %v12075_v16, %v12075_v16  ;;  %v12078_v12 = vadd.f32 %v12074_v21, %v12066_v13  ;;  %v12064_v11 = vmul.f32 %v12062_v49, %v12052_v10 }
0x1ae1   :  { %v12057_v47 = vadd.f32 %v14105_v44, %v16851_v7  ;;  %v12036_v59 = vpop.f32.mrf.mxu1 }
0x1ae2   :  { %v16939_v26 = vunpack.c.l.b16 %v12087_v41  ;;  %v12090_v43 = vpack.c.bf16 %v12078_v12, %v12078_v12  ;;  %v12076_v62 = vadd.f32 %v12074_v21, %v12064_v11  ;;  %v12119_v31 = vrot.slane %v16936_v46, 7 }
0x1ae3   :  { %v12069_v8 = vmul.f32 %v12062_v49, %v12057_v47  ;;  %v12055_v38 = vadd.f32 %v12036_v59, %v16847_v37  ;;  %v14106_v29 = vpop.f32.mrf.mxu1  ;;  %v12195_v3 = vrot.slane %v16936_v46, 6  ;;  %v12423_v60 = vrot.slane %v16936_v46, 2 }
0x1ae4   :  { %v12116_v35 = vrot.slane %v16939_v26, 1  ;;  %v16945_v55 = vunpack.c.l.b16 %v12090_v43  ;;  %v12088_v7 = vpack.c.bf16 %v12076_v62, %v12076_v62  ;;  %v12268_v4 = vrot.slane %v16939_v26, 2 }
0x1ae5   :  { %v12081_v0 = vadd.f32 %v12074_v21, %v12069_v8  ;;  %v12067_v27 = vmul.f32 %v12062_v49, %v12055_v38  ;;  %v12058_v50 = vadd.f32 %v14106_v29, %v16845_v53  ;;  %v12039_v24 = vpop.f32.mrf.mxu1  ;;  %v12420_v63 = vrot.slane %v16939_v26, 4 }
0x1ae6   :  { %v12122_v37 = vrot.slane %v16945_v55, 6  ;;  %v16951_v36 = vunpack.c.l.b16 %v12088_v7  ;;  %v12056_v18 = vadd.f32 %v12039_v24, %v16849_v17  ;;  %v12272_v34 = vrot.slane %v16945_v55, 7  ;;  %v14339_v24 = vld [vmem:[#allocation10 + $0x8] sm:$0xff]  }
0x1ae7   :  { %v12093_v19 = vpack.c.bf16 %v12081_v0, %v12081_v0  ;;  %v12079_v9 = vadd.f32 %v12074_v21, %v12067_v27  ;;  %v12070_v25 = vmul.f32 %v12062_v49, %v12058_v50  ;;  %v12197_v5 = vrot.slane %v16945_v55, 5 }
0x1ae8   :  { %v12118_v2 = vsel %vm12117_vm6, %v16951_v36, %v12116_v35  ;;  %v12269_v57 = vrot.slane %v16951_v36, 1  ;;  %v12068_v53 = vmul.f32 %v12062_v49, %v12056_v18  ;;  %v12193_v6 = vrot.slane %v16951_v36, 7 }
0x1ae9   :  { %v16960_v51 = vunpack.c.l.b16 %v12093_v19  ;;  %v12091_v33 = vpack.c.bf16 %v12079_v9, %v12079_v9  ;;  %v12082_v42 = vadd.f32 %v12074_v21, %v12070_v25  ;;  %v12121_v17 = vsel %vm12120_vm7, %v12119_v31, %v12118_v2 }
0x1aea   :  { %v12080_v56 = vadd.f32 %v12074_v21, %v12068_v53  ;;  %v12270_v23 = vsel %vm12117_vm6, %v12269_v57, %v12268_v4  ;;  %v12194_v52 = vsel %vm12117_vm6, %v12193_v6, %v16939_v26  ;;  %v12124_v49 = vsel %vm12123_vm8, %v12122_v37, %v12121_v17  ;;  %v14340_v37 = vld [vmem:[#allocation10 + $0x48] sm:$0xff]  }
0x1aeb   :  { %v16967_v20 = vunpack.c.l.b16 %v12091_v33  ;;  %v12094_v54 = vpack.c.bf16 %v12082_v42, %v12082_v42  ;;  %v12271_v1 = vsel %vm12120_vm7, %v16936_v46, %v12270_v23  ;;  %v12131_v32 = vrot.slane %v16960_v51, 3  ;;  %v14341_v33 = vld [vmem:[#allocation10] sm:$0xff]  }
0x1aec   :  { %v12092_v48 = vpack.c.bf16 %v12080_v56, %v12080_v56  ;;  %v12273_v21 = vsel %vm12123_vm8, %v12272_v34, %v12271_v1  ;;  %v12196_v45 = vsel %vm12120_vm7, %v12195_v3, %v12194_v52  ;;  %v12278_v39 = vrot.slane %v16960_v51, 4  ;;  %v14342_v42 = vld [vmem:[#allocation10 + $0x40] sm:$0xff]  }
0x1aed   :  { %v16975_v61 = vunpack.c.l.b16 %v12094_v54  ;;  %v12125_v30 = vrot.slane %v16967_v20, 5  ;;  %v12274_v15 = vrot.slane %v16967_v20, 6  ;;  %v12198_v58 = vsel %vm12123_vm8, %v12197_v5, %v12196_v45 }
0x1aee   :  { %v16980_v14 = vunpack.c.l.b16 %v12092_v48  ;;  %v12199_v40 = vrot.slane %v16967_v20, 4  ;;  %v12421_v28 = vrot.slane %v16951_v36, 3  ;;  %v12203_v44 = vrot.slane %v16960_v51, 2 }
0x1aef   :  { %v12127_v16 = vsel %vm12126_vm9, %v12125_v30, %v12124_v49  ;;  %v12134_v13 = vrot.slane %v16975_v61, 2  ;;  %v12275_v10 = vsel %vm12126_vm9, %v12274_v15, %v12273_v21  ;;  %v12280_v11 = vrot.slane %v16975_v61, 3 }
0x1af0   :  { %v12128_v41 = vrot.slane %v16980_v14, 4  ;;  %v12276_v12 = vrot.slane %v16980_v14, 5  ;;  %v12201_v47 = vrot.slane %v16980_v14, 3  ;;  %v12200_v59 = vsel %vm12126_vm9, %v12199_v40, %v12198_v58  ;;  %v14343_v40 = vld [vmem:[#allocation10 + $0x38] sm:$0xff]  }
0x1af1   :  { %v12422_v43 = vsel %vm12117_vm6, %v12421_v28, %v12420_v63  ;;  %v12425_v62 = vrot.slane %v16945_v55, 1  ;;  %v12428_v31 = vrot.slane %v16980_v14, 7  ;;  %v12205_v18 = vrot.slane %v16975_v61, 1  ;;  %v14344_v28 = vld [vmem:[#allocation10 + $0x68] sm:$0xff]  }
0x1af2   :  { %v12130_v8 = vsel %vm12129_vm10, %v12128_v41, %v12127_v16  ;;  %v12277_v38 = vsel %vm12129_vm10, %v12276_v12, %v12275_v10  ;;  %v12202_v29 = vsel %vm12129_vm10, %v12201_v47, %v12200_v59  ;;  %v12424_v3 = vsel %vm12120_vm7, %v12423_v60, %v12422_v43 }
0x1af3   :  { %v12133_v35 = vsel %vm12132_vm11, %v12131_v32, %v12130_v8  ;;  %v12279_v7 = vsel %vm12132_vm11, %v12278_v39, %v12277_v38  ;;  %v12204_v4 = vsel %vm12132_vm11, %v12203_v44, %v12202_v29  ;;  %v12426_v0 = vsel %vm12123_vm8, %v12425_v62, %v12424_v3  ;;  %v14345_v3 = vld [vmem:[#allocation10 + $0x30] sm:$0xff]  }
0x1af4   :  { %v12136_v27 = vsel %vm12135_vm12, %v12134_v13, %v12133_v35  ;;  %v12281_v50 = vsel %vm12135_vm12, %v12280_v11, %v12279_v7  ;;  %v12427_v63 = vsel %vm12126_vm9, %v16967_v20, %v12426_v0  ;;  %v12206_v9 = vsel %vm12135_vm12, %v12205_v18, %v12204_v4  ;;  %v14346_v35 = vld [vmem:[#allocation10 + $0x60] sm:$0xff]  }
0x1af5   :  { %v12137_v60 = vpack.c.b16 %v12136_v27, %v12136_v27  ;;  %v12282_v34 = vpack.c.b16 %v12281_v50, %v12281_v50  ;;  %v12429_v19 = vsel %vm12129_vm10, %v12428_v31, %v12427_v63  ;;  %v12430_v25 = vrot.slane %v16960_v51, 6 }
0x1af6   :  { %v12344_v2 = vrot.slane %v16939_v26, 3  ;;  %v12345_v57 = vrot.slane %v16951_v36, 2  ;;  %v12347_v53 = vrot.slane %v16936_v46, 1  ;;  %v12350_v6 = vrot.slane %v16967_v20, 7 }
0x1af7   :  { %14112 = vmatmul.mubr.msk.bf16.vlgmr.msra.gmra.mxu0 %vm158_vm0, %v12137_v60  ;;  %14128 = vmatmul.mubr.msk.bf16.vlgmr.msra.gmra.mxu1 %vm158_vm0, %v12282_v34  ;;  %v12431_v17 = vsel %vm12132_vm11, %v12430_v25, %v12429_v19  ;;  %v12432_v56 = vrot.slane %v16975_v61, 5  ;;  %v12352_v52 = vrot.slane %v16980_v14, 6  ;;  %v12207_v5 = vpack.c.b16 %v12206_v9, %v12206_v9  ;;  %v14347_v19 = vld [vmem:[#allocation10 + $0x58] sm:$0xff]  }
0x1af8   :  { %14116 = vmatpush3.bf16.msra.mxu0 %v14339_v24  ;;  %14140 = vmatpush3.bf16.msra.mxu1 %v14340_v37  ;;  %v12346_v23 = vsel %vm12117_vm6, %v12345_v57, %v12344_v2  ;;  %v12572_v49 = vrot.slane %v16939_v26, 6  ;;  %v12573_v1 = vrot.slane %v16951_v36, 5  ;;  %v12575_v21 = vrot.slane %v16936_v46, 4 }
0x1af9   :  { %14117 = vmatprep.subr.bf16.mxu0 %v17129_v22  ;;  %14141 = vmatprep.subr.bf16.mxu1 %v17129_v22  ;;  %v12348_v54 = vsel %vm12120_vm7, %v12347_v53, %v12346_v23  ;;  %v12433_v48 = vsel %vm12135_vm12, %v12432_v56, %v12431_v17  ;;  %v12579_v45 = vrot.slane %v16967_v20, 2  ;;  %v12577_v39 = vrot.slane %v16945_v55, 3  ;;  %v14349_v23 = vld [vmem:[#allocation10 + $0x78] sm:$0xff]  }
0x1afa   :  { %14119 = vmatprep.mubr.msk.bf16.mxu0 %vm14785_vm1, %v17129_v22  ;;  %14143 = vmatprep.mubr.msk.bf16.mxu1 %vm14785_vm1, %v17129_v22  ;;  %v12349_v32 = vsel %vm12123_vm8, %v16945_v55, %v12348_v54  ;;  %v12574_v15 = vsel %vm12117_vm6, %v12573_v1, %v12572_v49  ;;  %v12581_v58 = vrot.slane %v16980_v14, 1  ;;  %v12496_v10 = vrot.slane %v16939_v26, 5 }
0x1afb   :  { %v12351_v30 = vsel %vm12126_vm9, %v12350_v6, %v12349_v32  ;;  %v12576_v13 = vsel %vm12120_vm7, %v12575_v21, %v12574_v15  ;;  %v12497_v44 = vrot.slane %v16951_v36, 4  ;;  %v12434_v41 = vpack.c.b16 %v12433_v48, %v12433_v48  ;;  %v14348_v6 = vld [vmem:[#allocation10 + $0x50] sm:$0xff]  }
0x1afc   :  { %14118 = vmatpush3.bf16.msra.mxu0 %v14341_v33  ;;  %14142 = vmatpush3.bf16.msra.mxu1 %v14342_v42  ;;  %v12353_v16 = vsel %vm12129_vm10, %v12352_v52, %v12351_v30  ;;  %v12354_v12 = vrot.slane %v16960_v51, 5  ;;  %v12578_v11 = vsel %vm12123_vm8, %v12577_v39, %v12576_v13  ;;  %v12499_v47 = vrot.slane %v16936_v46, 3 }
0x1afd   :  { %14131 = vmatprep.subr.bf16.mxu0 %v17129_v22  ;;  %14155 = vmatprep.subr.bf16.mxu1 %v17129_v22  ;;  %v12580_v59 = vsel %vm12126_vm9, %v12579_v45, %v12578_v11  ;;  %v12498_v43 = vsel %vm12117_vm6, %v12497_v44, %v12496_v10  ;;  %v12501_v62 = vrot.slane %v16945_v55, 2  ;;  %v12503_v31 = vrot.slane %v16967_v20, 1 }
0x1afe   :  { %v12355_v8 = vsel %vm12132_vm11, %v12354_v12, %v12353_v16  ;;  %v12582_v38 = vsel %vm12129_vm10, %v12581_v58, %v12580_v59  ;;  %v12500_v29 = vsel %vm12120_vm7, %v12499_v47, %v12498_v43  ;;  %v12356_v7 = vrot.slane %v16975_v61, 4 }
0x1aff   :  { %14120 = vmatmul.mubr.msk.bf16.vlgmr.msra.gmra.mxu0 %vm158_vm0, %v12207_v5  ;;  %14144 = vmatmul.mubr.msk.bf16.vlgmr.msra.gmra.mxu1 %vm158_vm0, %v12434_v41  ;;  %v12583_v4 = vsel %vm12132_vm11, %v16960_v51, %v12582_v38  ;;  %v12584_v0 = vrot.slane %v16975_v61, 7  ;;  %v12502_v27 = vsel %vm12123_vm8, %v12501_v62, %v12500_v29  ;;  %v12648_v24 = vrot.slane %v16939_v26, 7 }
0x1b00   :  { %14132 = vmatpush3.bf16.msra.mxu0 %v14343_v40  ;;  %14156 = vmatpush3.bf16.msra.mxu1 %v14344_v28  ;;  %v12504_v50 = vsel %vm12126_vm9, %v12503_v31, %v12502_v27  ;;  %v12649_v37 = vrot.slane %v16951_v36, 6  ;;  %v12357_v18 = vsel %vm12135_vm12, %v12356_v7, %v12355_v8  ;;  %v12651_v34 = vrot.slane %v16936_v46, 5 }
0x1b01   :  { %14133 = vmatprep.subr.bf16.mxu0 %v17129_v22  ;;  %14157 = vmatprep.subr.bf16.mxu1 %v17129_v22  ;;  %v12585_v63 = vsel %vm12135_vm12, %v12584_v0, %v12583_v4  ;;  %v12505_v26 = vsel %vm12129_vm10, %v16980_v14, %v12504_v50  ;;  %v12358_v36 = vpack.c.b16 %v12357_v18, %v12357_v18  ;;  %v12506_v25 = vrot.slane %v16960_v51, 7 }
0x1b02   :  { %14135 = vmatprep.mubr.msk.bf16.mxu0 %vm14785_vm1, %v17129_v22  ;;  %14159 = vmatprep.mubr.msk.bf16.mxu1 %vm14785_vm1, %v17129_v22  ;;  %v12650_v60 = vsel %vm12117_vm6, %v12649_v37, %v12648_v24  ;;  %v12586_v9 = vpack.c.b16 %v12585_v63, %v12585_v63  ;;  %v12653_v57 = vrot.slane %v16945_v55, 4  ;;  %v12655_v53 = vrot.slane %v16967_v20, 3  ;;  %v13030_v24 = vld [vmem:[%s17121_s9] ss:$0 sm:$0xff] }
0x1b03   :  { %v12652_v2 = vsel %vm12120_vm7, %v12651_v34, %v12650_v60  ;;  %v12507_v46 = vsel %vm12132_vm11, %v12506_v25, %v12505_v26  ;;  %v12508_v33 = vrot.slane %v16975_v61, 6  ;;  %v12657_v17 = vrot.slane %v16980_v14, 2  ;;  %v14350_v14 = vld [vmem:[#allocation10 + $0x70] sm:$0xff]  }
0x1b04   :  { %14134 = vmatpush3.bf16.msra.mxu0 %v14345_v3  ;;  %14158 = vmatpush3.bf16.msra.mxu1 %v14346_v35  ;;  %v12654_v42 = vsel %vm12123_vm8, %v12653_v57, %v12652_v2  ;;  %v12659_v5 = vrot.slane %v16960_v51, 1 }
0x1b05   :  { %14147 = vmatprep.subr.bf16.mxu0 %v17129_v22  ;;  %v12509_v55 = vsel %vm12135_vm12, %v12508_v33, %v12507_v46  ;;  %v12656_v56 = vsel %vm12126_vm9, %v12655_v53, %v12654_v42 }
0x1b06   :  { %v12658_v20 = vsel %vm12129_vm10, %v12657_v17, %v12656_v56  ;;  %v12510_v52 = vpack.c.b16 %v12509_v55, %v12509_v55 }
0x1b07   :  { %14136 = vmatmul.mubr.msk.bf16.vlgmr.msra.gmra.mxu0 %vm158_vm0, %v12358_v36  ;;  %14160 = vmatmul.mubr.msk.bf16.vlgmr.msra.gmra.mxu1 %vm158_vm0, %v12586_v9  ;;  %v12660_v54 = vsel %vm12132_vm11, %v12659_v5, %v12658_v20 }
0x1b08   :  { %14148 = vmatpush3.bf16.msra.mxu0 %v14347_v19  ;;  %14151 = vmatprep.mubr.msk.bf16.mxu0 %vm14785_vm1, %v17129_v22  ;;  %v12661_v49 = vsel %vm12135_vm12, %v16975_v61, %v12660_v54 }
0x1b09   :  { %14149 = vmatprep.subr.bf16.mxu0 %v17129_v22  ;;  %v12662_v1 = vpack.c.b16 %v12661_v49, %v12661_v49 }
0x1b0c   :  { %14150 = vmatpush3.bf16.msra.mxu0 %v14348_v6 }
0x1b0d   :  { %14163 = vmatprep.subr.bf16.mxu0 %v17129_v22 }
0x1b0f   :  { %14152 = vmatmul.mubr.msk.bf16.vlgmr.msra.gmra.mxu0 %vm158_vm0, %v12510_v52 }
0x1b10   :  { %14164 = vmatpush3.bf16.msra.mxu0 %v14349_v23  ;;  %14167 = vmatprep.mubr.msk.bf16.mxu0 %vm14785_vm1, %v17129_v22 }
0x1b11   :  { %14165 = vmatprep.subr.bf16.mxu0 %v17129_v22 }
0x1b14   :  { %14166 = vmatpush3.bf16.msra.mxu0 %v14350_v14 }
0x1b17   :  { %14168 = vmatmul.mubr.msk.bf16.vlgmr.msra.gmra.mxu0 %vm158_vm0, %v12662_v1 }
0x1bb7   :  { %v12187_v48 = vpop.f32.mrf.mxu0  ;;  %v12332_v51 = vpop.f32.mrf.mxu1 }
0x1bb9   :  { %v14113_v32 = vpop.f32.mrf.mxu0  ;;  %v14129_v21 = vpop.f32.mrf.mxu1 }
0x1bbb   :  { %v12190_v45 = vpop.f32.mrf.mxu0  ;;  %v12335_v30 = vpop.f32.mrf.mxu1 }
0x1bbd   :  { %v14114_v15 = vpop.f32.mrf.mxu0  ;;  %v14130_v39 = vpop.f32.mrf.mxu1 }
0x1bbf   :  { %v12257_v58 = vpop.f32.mrf.mxu0  ;;  %v12484_v40 = vpop.f32.mrf.mxu1 }
0x1bc0   :  { %v12258_v44 = vadd.f32 %v12257_v58, %v12187_v48 }
0x1bc1   :  { %v14121_v28 = vpop.f32.mrf.mxu0  ;;  %v14145_v16 = vpop.f32.mrf.mxu1 }
0x1bc2   :  { %v12338_v59 = vadd.f32 %v12332_v51, %v12258_v44 }
0x1bc3   :  { %v12260_v22 = vpop.f32.mrf.mxu0  ;;  %v12487_v13 = vpop.f32.mrf.mxu1 }
0x1bc5   :  { %v14122_v10 = vpop.f32.mrf.mxu0  ;;  %v14146_v61 = vpop.f32.mrf.mxu1 }
0x1bc7   :  { %v12408_v41 = vpop.f32.mrf.mxu0  ;;  %v12636_v12 = vpop.f32.mrf.mxu1 }
0x1bc8   :  { %v12414_v31 = vadd.f32 %v12408_v41, %v12338_v59 }
0x1bc9   :  { %v14137_v11 = vpop.f32.mrf.mxu0  ;;  %v14161_v47 = vpop.f32.mrf.mxu1 }
0x1bca   :  { %v12490_v3 = vadd.f32 %v12484_v40, %v12414_v31 }
0x1bcb   :  { %v12411_v43 = vpop.f32.mrf.mxu0  ;;  %v12639_v62 = vpop.f32.mrf.mxu1 }
0x1bcd   :  { %v14138_v8 = vpop.f32.mrf.mxu0  ;;  %v14162_v38 = vpop.f32.mrf.mxu1 }
0x1bcf   :  { %v12560_v29 = vpop.f32.mrf.mxu0 }
0x1bd0   :  { %v12566_v7 = vadd.f32 %v12560_v29, %v12490_v3 }
0x1bd1   :  { %v14153_v35 = vpop.f32.mrf.mxu0 }
0x1bd2   :  { %v12642_v27 = vadd.f32 %v12636_v12, %v12566_v7 }
0x1bd3   :  { %v12563_v4 = vpop.f32.mrf.mxu0 }
0x1bd5   :  { %v14154_v0 = vpop.f32.mrf.mxu0 }
0x1bd7   :  { %v12712_v50 = vpop.f32.mrf.mxu0 }
0x1bd8   :  { %v12718_v37 = vadd.f32 %v12712_v50, %v12642_v27 }
0x1bd9   :  { %v14169_v18 = vpop.f32.mrf.mxu0 }
0x1bda   :  { %v12726_v63 = vadd.f32 %v13030_v24, %v12718_v37 }
0x1bdb   :  { %v12715_v60 = vpop.f32.mrf.mxu0 }
0x1bdc   :  { %12727 = vst [vmem:[#allocation11] sm:$0xff] %v12726_v63 }
0x1bdd   :  { %v14170_v34 = vpop.f32.mrf.mxu0 }
0x1bde   :  { %14758 = shalt.err (!%p14755_p1)
}
0x1bdf   :  { %12737 = dma.vmem_to_hbm [thread:$0]  %s12735_s26, 128, %s17122_s10, [#allocation4]  }
0x1be0   :  { %14773 = dma.done.wait [#allocation4], 128  }
0x1be1   :  { %14774 = vsyncadd [#allocation4], 4294967168 }
0x1be2   :  { %12741 = vsyncpa [#allocation3], 1 }
0x1be3   :  { %12742 = vsyncpa [#allocation6], 1 }
0x1be4   :  { %12743 = vsyncpa [#allocation9], 1 }
0x1be5   :  { %12744 = vsyncpa [#allocation4], 1 }

</bundles_post_ra>
